<compile_context>
chip_gen: v5e
topology: v5e:2x2
jax: 0.10.0
libtpu: 0.0.40
codegen_flags: <defaults>
</compile_context>

<pallas_src>
import functools

import jax
import jax.numpy as jnp
import numpy as np
from jax.experimental import pallas as pl
from jax.experimental.pallas import tpu as pltpu


# ----------------------------------------------------------------------------
# Config (mirrors the PyTorch `config` object)
# ----------------------------------------------------------------------------
VOCAB = 50
EMBED = 32          # config.embed
HIDDEN = 32         # config.hidden_size
NUM_LAYERS = 1      # config.num_layers  (see TODO below)
PAD_SIZE = 8        # config.pad_size == sequence length (MaxPool1d kernel size)
NUM_CLASSES = 4     # config.num_classes
BATCH = 2
# TODO(synk): config.num_layers > 1 stacking (and inter-layer dropout) not implemented;
#             dropout is a no-op in eval mode anyway.


# ----------------------------------------------------------------------------
# Fused Pallas kernel: embedding gather -> bi-GRU -> ReLU-max pool -> Linear
# ----------------------------------------------------------------------------
def _rcnn_fused_kernel(tok_ref, emb_ref,
                       wih_f_ref, whh_f_ref, bias_f_ref,
                       wih_b_ref, whh_b_ref, bias_b_ref,
                       wfc_e_ref, wfc_f_ref, wfc_b_ref, bfc_ref,
                       out_ref, emb_scr, *, seq, batch, embed, hidden):
    S, B, E, H = seq, batch, embed, hidden

    # ---- 1. embedding gather: SMEM token ids index the VMEM table ------------------
    # emb_scr row (t*B + b) <- embedding[tokens[b, t]]   (time-major, batch minor)
    for t in range(S):
        for b in range(B):
            tok = tok_ref[b, t]                              # scalar int32 from SMEM
            emb_scr[pl.ds(t * B + b, 1), :] = emb_ref[tok]   # table is [V, 1, E] -> [1, E]

    x_all = emb_scr[...]                                     # [S*B, E]

    # ---- 2. hoisted input projections: one matmul per gate per direction -----------
    def proj(w_ref, g, bias):
        return jnp.dot(x_all, w_ref[g], preferred_element_type=jnp.float32) + bias

    gi_r_f = proj(wih_f_ref, 0, bias_f_ref[0])   # [S*B, H] each; biases pre-combined
    gi_z_f = proj(wih_f_ref, 1, bias_f_ref[1])
    gi_n_f = proj(wih_f_ref, 2, bias_f_ref[2])   # b_in only (b_hn stays r-gated)
    gi_r_b = proj(wih_b_ref, 0, bias_b_ref[0])
    gi_z_b = proj(wih_b_ref, 1, bias_b_ref[1])
    gi_n_b = proj(wih_b_ref, 2, bias_b_ref[2])
    b_hn_f = bias_f_ref[3]                        # [1, H]
    b_hn_b = bias_b_ref[3]

    whh_r_f, whh_z_f, whh_n_f = whh_f_ref[0], whh_f_ref[1], whh_f_ref[2]
    whh_r_b, whh_z_b, whh_n_b = whh_b_ref[0], whh_b_ref[1], whh_b_ref[2]

    # ---- 3. both GRU directions, fully unrolled over S, with running ReLU-max ------
    h_f = jnp.zeros((B, H), jnp.float32)
    h_b = jnp.zeros((B, H), jnp.float32)
    # zeros init == ReLU folded into the running max: max(0, x_1..x_S) = max_t relu(x_t)
    max_emb = jnp.zeros((B, E), jnp.float32)
    max_hf = jnp.zeros((B, H), jnp.float32)
    max_hb = jnp.zeros((B, H), jnp.float32)

    for t in range(S):
        f0, f1 = t * B, (t + 1) * B                 # forward direction reads time t
        r0, r1 = (S - 1 - t) * B, (S - t) * B       # backward direction reads time S-1-t

        gh_r_f = jnp.dot(h_f, whh_r_f, preferred_element_type=jnp.float32)
        gh_z_f = jnp.dot(h_f, whh_z_f, preferred_element_type=jnp.float32)
        gh_n_f = jnp.dot(h_f, whh_n_f, preferred_element_type=jnp.float32)
        gh_r_b = jnp.dot(h_b, whh_r_b, preferred_element_type=jnp.float32)
        gh_z_b = jnp.dot(h_b, whh_z_b, preferred_element_type=jnp.float32)
        gh_n_b = jnp.dot(h_b, whh_n_b, preferred_element_type=jnp.float32)

        # PyTorch GRU gate order [r, z, n]; b_hn stays inside the r-gated term.
        r = jax.nn.sigmoid(gi_r_f[f0:f1] + gh_r_f)
        z = jax.nn.sigmoid(gi_z_f[f0:f1] + gh_z_f)
        n = jnp.tanh(gi_n_f[f0:f1] + r * (gh_n_f + b_hn_f))
        h_f = (1.0 - z) * n + z * h_f

        r = jax.nn.sigmoid(gi_r_b[r0:r1] + gh_r_b)
        z = jax.nn.sigmoid(gi_z_b[r0:r1] + gh_z_b)
        n = jnp.tanh(gi_n_b[r0:r1] + r * (gh_n_b + b_hn_b))
        h_b = (1.0 - z) * n + z * h_b

        max_emb = jnp.maximum(max_emb, x_all[f0:f1])
        max_hf = jnp.maximum(max_hf, h_f)
        max_hb = jnp.maximum(max_hb, h_b)

    # ---- 4. split FC (feature order of torch.cat((embed, out), 2)) -----------------
    logits = (jnp.dot(max_emb, wfc_e_ref[...], preferred_element_type=jnp.float32)
              + jnp.dot(max_hf, wfc_f_ref[...], preferred_element_type=jnp.float32)
              + jnp.dot(max_hb, wfc_b_ref[...], preferred_element_type=jnp.float32)
              + bfc_ref[...])
    out_ref[...] = logits.astype(out_ref.dtype)


def _rcnn_pallas(x_tokens, prep):
    kernel = functools.partial(_rcnn_fused_kernel, seq=PAD_SIZE, batch=BATCH,
                               embed=EMBED, hidden=HIDDEN)
    vmem = pl.BlockSpec(memory_space=pltpu.MemorySpace.VMEM)
    smem = pl.BlockSpec(memory_space=pltpu.MemorySpace.SMEM)
    return pl.pallas_call(
        kernel,
        out_shape=jax.ShapeDtypeStruct((BATCH, NUM_CLASSES), jnp.float32),
        in_specs=[smem] + [vmem] * 11,
        out_specs=vmem,
        scratch_shapes=[pltpu.VMEM((PAD_SIZE * BATCH, EMBED), jnp.float32)],
    )(x_tokens,
      prep["emb"],
      prep["wih_f"], prep["whh_f"], prep["bias_f"],
      prep["wih_b"], prep["whh_b"], prep["bias_b"],
      prep["wfc_e"], prep["wfc_f"], prep["wfc_b"], prep["bfc"])


# ----------------------------------------------------------------------------
# One-time parameter preprocessing (outside the jitted forward)
# ----------------------------------------------------------------------------
def prepare_params(params):
    E, H, C = EMBED, HIDDEN, NUM_CLASSES

    def gates_t(w):                      # [3H, X] -> [3, X, H]  (r, z, n)
        return jnp.stack([jnp.transpose(w[g * H:(g + 1) * H]) for g in range(3)])

    def biases(b_ih, b_hh):              # -> [4, 1, H]: (b_ir+b_hr), (b_iz+b_hz), b_in, b_hn
        return jnp.stack([
            (b_ih[0:H] + b_hh[0:H]).reshape(1, H),
            (b_ih[H:2 * H] + b_hh[H:2 * H]).reshape(1, H),
            b_ih[2 * H:3 * H].reshape(1, H),
            b_hh[2 * H:3 * H].reshape(1, H),
        ])

    w_fc_t = jnp.transpose(params["w_fc"])          # [E + 2H, C]
    return {
        "emb": params["embedding"].reshape(VOCAB, 1, E),
        "wih_f": gates_t(params["w_ih_f"]), "whh_f": gates_t(params["w_hh_f"]),
        "bias_f": biases(params["b_ih_f"], params["b_hh_f"]),
        "wih_b": gates_t(params["w_ih_b"]), "whh_b": gates_t(params["w_hh_b"]),
        "bias_b": biases(params["b_ih_b"], params["b_hh_b"]),
        "wfc_e": w_fc_t[:E], "wfc_f": w_fc_t[E:E + H], "wfc_b": w_fc_t[E + H:],
        "bfc": params["b_fc"].reshape(1, C),
    }


@jax.jit
def rcnn_forward(prep, x_tokens):
    # single op in the jitted graph: the fused pallas_call
    return _rcnn_pallas(x_tokens, prep)


# ----------------------------------------------------------------------------
# Pure-JAX reference (same math) for a correctness check
# ----------------------------------------------------------------------------
def _gru_ref(x_sbE, w_ih, w_hh, b_ih, b_hh):
    H = w_hh.shape[1]

    def step(h, x_t):
        gi = x_t @ w_ih.T + b_ih
        gh = h @ w_hh.T + b_hh
        r = jax.nn.sigmoid(gi[:, :H] + gh[:, :H])
        z = jax.nn.sigmoid(gi[:, H:2 * H] + gh[:, H:2 * H])
        n = jnp.tanh(gi[:, 2 * H:] + r * gh[:, 2 * H:])
        h_new = (1.0 - z) * n + z * h
        return h_new, h_new

    h0 = jnp.zeros((x_sbE.shape[1], H), jnp.float32)
    _, hs = jax.lax.scan(step, h0, x_sbE)
    return hs


def rcnn_ref(params, x_tokens):
    emb = jnp.take(params["embedding"], x_tokens, axis=0)
    emb_t = jnp.transpose(emb, (1, 0, 2))
    hf = _gru_ref(emb_t, params["w_ih_f"], params["w_hh_f"], params["b_ih_f"], params["b_hh_f"])
    hb = _gru_ref(emb_t[::-1], params["w_ih_b"], params["w_hh_b"],
                  params["b_ih_b"], params["b_hh_b"])[::-1]
    feat = jnp.concatenate([emb_t, hf, hb], axis=-1)
    pooled = jnp.max(jnp.maximum(feat, 0.0), axis=0)
    return pooled @ params["w_fc"].T + params["b_fc"]


# ----------------------------------------------------------------------------
# Deterministic parameter init + run
# ----------------------------------------------------------------------------
def init_params(key):
    ks = jax.random.split(key, 12)
    k = 1.0 / np.sqrt(HIDDEN)
    F = EMBED + 2 * HIDDEN
    u = lambda kk, shape, s: jax.random.uniform(kk, shape, jnp.float32, -s, s)
    return {
        "embedding": jax.random.normal(ks[0], (VOCAB, EMBED), jnp.float32),
        "w_ih_f": u(ks[1], (3 * HIDDEN, EMBED), k),
        "w_hh_f": u(ks[2], (3 * HIDDEN, HIDDEN), k),
        "b_ih_f": u(ks[3], (3 * HIDDEN,), k),
        "b_hh_f": u(ks[4], (3 * HIDDEN,), k),
        "w_ih_b": u(ks[5], (3 * HIDDEN, EMBED), k),
        "w_hh_b": u(ks[6], (3 * HIDDEN, HIDDEN), k),
        "b_ih_b": u(ks[7], (3 * HIDDEN,), k),
        "b_hh_b": u(ks[8], (3 * HIDDEN,), k),
        "w_fc": u(ks[9], (NUM_CLASSES, F), 1.0 / np.sqrt(F)),
        "b_fc": u(ks[10], (NUM_CLASSES,), 1.0 / np.sqrt(F)),
    }


if __name__ == "__main__":
    key = jax.random.PRNGKey(0)
    pkey, xkey = jax.random.split(key)
    params = init_params(pkey)
    prep = prepare_params(params)              # one-time weight layout prep

    x = jax.random.randint(xkey, (BATCH, PAD_SIZE), 0, VOCAB, dtype=jnp.int32)  # tokens
    x1 = jnp.full((BATCH,), PAD_SIZE, dtype=jnp.int32)  # seq lengths (unused by forward)

    out = rcnn_forward(prep, x)
    out = jax.block_until_ready(out)

    ref = rcnn_ref(params, x)
    np.testing.assert_allclose(np.asarray(out), np.asarray(ref), rtol=1e-4, atol=1e-4)
    assert out.shape == (BATCH, NUM_CLASSES)

    print("KERNEL_OK")
</pallas_src>

<mosaic_0001>
module attributes {stable_mosaic.version = 11 : i64} {
  func.func @_rcnn_fused_kernel(%arg0: memref<2x8xi32, #tpu.memory_space<smem>>, %arg1: memref<50x1x32xf32, #tpu.memory_space<vmem>>, %arg2: memref<3x32x32xf32, #tpu.memory_space<vmem>>, %arg3: memref<3x32x32xf32, #tpu.memory_space<vmem>>, %arg4: memref<4x1x32xf32, #tpu.memory_space<vmem>>, %arg5: memref<3x32x32xf32, #tpu.memory_space<vmem>>, %arg6: memref<3x32x32xf32, #tpu.memory_space<vmem>>, %arg7: memref<4x1x32xf32, #tpu.memory_space<vmem>>, %arg8: memref<32x4xf32, #tpu.memory_space<vmem>>, %arg9: memref<32x4xf32, #tpu.memory_space<vmem>>, %arg10: memref<32x4xf32, #tpu.memory_space<vmem>>, %arg11: memref<1x4xf32, #tpu.memory_space<vmem>>, %arg12: memref<2x4xf32, #tpu.memory_space<vmem>>, %arg13: memref<16x32xf32, #tpu.memory_space<vmem>>) attributes {dimension_semantics = [], scalar_prefetch = 0 : i64, scratch_operands = 1 : i64, tpu.core_type = #tpu.core_type<tc>} {
    %c0 = arith.constant 0 : index
    %c0_0 = arith.constant 0 : index
    %0 = memref.load %arg0[%c0, %c0_0] : memref<2x8xi32, #tpu.memory_space<smem>>
    %1 = arith.index_cast %0 : i32 to index
    %c0_1 = arith.constant 0 : index
    %c0_2 = arith.constant 0 : index
    %2 = vector.load %arg1[%1, %c0_1, %c0_2] : memref<50x1x32xf32, #tpu.memory_space<vmem>>, vector<1x1x32xf32>
    %3 = vector.shape_cast %2 : vector<1x1x32xf32> to vector<1x32xf32>
    %c0_3 = arith.constant 0 : index
    %c0_4 = arith.constant 0 : index
    %4 = vector.load %arg13[%c0_3, %c0_4] : memref<16x32xf32, #tpu.memory_space<vmem>>, vector<1x32xf32>
    tpu.vector_store %arg13[%c0_3, %c0_4], %3 {strides = array<i32>} : memref<16x32xf32, #tpu.memory_space<vmem>>, vector<1x32xf32>,
    %c1 = arith.constant 1 : index
    %c0_5 = arith.constant 0 : index
    %5 = memref.load %arg0[%c1, %c0_5] : memref<2x8xi32, #tpu.memory_space<smem>>
    %6 = arith.index_cast %5 : i32 to index
    %c0_6 = arith.constant 0 : index
    %c0_7 = arith.constant 0 : index
    %7 = vector.load %arg1[%6, %c0_6, %c0_7] : memref<50x1x32xf32, #tpu.memory_space<vmem>>, vector<1x1x32xf32>
    %8 = vector.shape_cast %7 : vector<1x1x32xf32> to vector<1x32xf32>
    %c1_8 = arith.constant 1 : index
    %c0_9 = arith.constant 0 : index
    %9 = vector.load %arg13[%c1_8, %c0_9] : memref<16x32xf32, #tpu.memory_space<vmem>>, vector<1x32xf32>
    tpu.vector_store %arg13[%c1_8, %c0_9], %8 {strides = array<i32>} : memref<16x32xf32, #tpu.memory_space<vmem>>, vector<1x32xf32>,
    %c0_10 = arith.constant 0 : index
    %c1_11 = arith.constant 1 : index
    %10 = memref.load %arg0[%c0_10, %c1_11] : memref<2x8xi32, #tpu.memory_space<smem>>
    %11 = arith.index_cast %10 : i32 to index
    %c0_12 = arith.constant 0 : index
    %c0_13 = arith.constant 0 : index
    %12 = vector.load %arg1[%11, %c0_12, %c0_13] : memref<50x1x32xf32, #tpu.memory_space<vmem>>, vector<1x1x32xf32>
    %13 = vector.shape_cast %12 : vector<1x1x32xf32> to vector<1x32xf32>
    %c2 = arith.constant 2 : index
    %c0_14 = arith.constant 0 : index
    %14 = vector.load %arg13[%c2, %c0_14] : memref<16x32xf32, #tpu.memory_space<vmem>>, vector<1x32xf32>
    tpu.vector_store %arg13[%c2, %c0_14], %13 {strides = array<i32>} : memref<16x32xf32, #tpu.memory_space<vmem>>, vector<1x32xf32>,
    %c1_15 = arith.constant 1 : index
    %c1_16 = arith.constant 1 : index
    %15 = memref.load %arg0[%c1_15, %c1_16] : memref<2x8xi32, #tpu.memory_space<smem>>
    %16 = arith.index_cast %15 : i32 to index
    %c0_17 = arith.constant 0 : index
    %c0_18 = arith.constant 0 : index
    %17 = vector.load %arg1[%16, %c0_17, %c0_18] : memref<50x1x32xf32, #tpu.memory_space<vmem>>, vector<1x1x32xf32>
    %18 = vector.shape_cast %17 : vector<1x1x32xf32> to vector<1x32xf32>
    %c3 = arith.constant 3 : index
    %c0_19 = arith.constant 0 : index
    %19 = vector.load %arg13[%c3, %c0_19] : memref<16x32xf32, #tpu.memory_space<vmem>>, vector<1x32xf32>
    tpu.vector_store %arg13[%c3, %c0_19], %18 {strides = array<i32>} : memref<16x32xf32, #tpu.memory_space<vmem>>, vector<1x32xf32>,
    %c0_20 = arith.constant 0 : index
    %c2_21 = arith.constant 2 : index
    %20 = memref.load %arg0[%c0_20, %c2_21] : memref<2x8xi32, #tpu.memory_space<smem>>
    %21 = arith.index_cast %20 : i32 to index
    %c0_22 = arith.constant 0 : index
    %c0_23 = arith.constant 0 : index
    %22 = vector.load %arg1[%21, %c0_22, %c0_23] : memref<50x1x32xf32, #tpu.memory_space<vmem>>, vector<1x1x32xf32>
    %23 = vector.shape_cast %22 : vector<1x1x32xf32> to vector<1x32xf32>
    %c4 = arith.constant 4 : index
    %c0_24 = arith.constant 0 : index
    %24 = vector.load %arg13[%c4, %c0_24] : memref<16x32xf32, #tpu.memory_space<vmem>>, vector<1x32xf32>
    tpu.vector_store %arg13[%c4, %c0_24], %23 {strides = array<i32>} : memref<16x32xf32, #tpu.memory_space<vmem>>, vector<1x32xf32>,
    %c1_25 = arith.constant 1 : index
    %c2_26 = arith.constant 2 : index
    %25 = memref.load %arg0[%c1_25, %c2_26] : memref<2x8xi32, #tpu.memory_space<smem>>
    %26 = arith.index_cast %25 : i32 to index
    %c0_27 = arith.constant 0 : index
    %c0_28 = arith.constant 0 : index
    %27 = vector.load %arg1[%26, %c0_27, %c0_28] : memref<50x1x32xf32, #tpu.memory_space<vmem>>, vector<1x1x32xf32>
    %28 = vector.shape_cast %27 : vector<1x1x32xf32> to vector<1x32xf32>
    %c5 = arith.constant 5 : index
    %c0_29 = arith.constant 0 : index
    %29 = vector.load %arg13[%c5, %c0_29] : memref<16x32xf32, #tpu.memory_space<vmem>>, vector<1x32xf32>
    tpu.vector_store %arg13[%c5, %c0_29], %28 {strides = array<i32>} : memref<16x32xf32, #tpu.memory_space<vmem>>, vector<1x32xf32>,
    %c0_30 = arith.constant 0 : index
    %c3_31 = arith.constant 3 : index
    %30 = memref.load %arg0[%c0_30, %c3_31] : memref<2x8xi32, #tpu.memory_space<smem>>
    %31 = arith.index_cast %30 : i32 to index
    %c0_32 = arith.constant 0 : index
    %c0_33 = arith.constant 0 : index
    %32 = vector.load %arg1[%31, %c0_32, %c0_33] : memref<50x1x32xf32, #tpu.memory_space<vmem>>, vector<1x1x32xf32>
    %33 = vector.shape_cast %32 : vector<1x1x32xf32> to vector<1x32xf32>
    %c6 = arith.constant 6 : index
    %c0_34 = arith.constant 0 : index
    %34 = vector.load %arg13[%c6, %c0_34] : memref<16x32xf32, #tpu.memory_space<vmem>>, vector<1x32xf32>
    tpu.vector_store %arg13[%c6, %c0_34], %33 {strides = array<i32>} : memref<16x32xf32, #tpu.memory_space<vmem>>, vector<1x32xf32>,
    %c1_35 = arith.constant 1 : index
    %c3_36 = arith.constant 3 : index
    %35 = memref.load %arg0[%c1_35, %c3_36] : memref<2x8xi32, #tpu.memory_space<smem>>
    %36 = arith.index_cast %35 : i32 to index
    %c0_37 = arith.constant 0 : index
    %c0_38 = arith.constant 0 : index
    %37 = vector.load %arg1[%36, %c0_37, %c0_38] : memref<50x1x32xf32, #tpu.memory_space<vmem>>, vector<1x1x32xf32>
    %38 = vector.shape_cast %37 : vector<1x1x32xf32> to vector<1x32xf32>
    %c7 = arith.constant 7 : index
    %c0_39 = arith.constant 0 : index
    %39 = vector.load %arg13[%c7, %c0_39] : memref<16x32xf32, #tpu.memory_space<vmem>>, vector<1x32xf32>
    tpu.vector_store %arg13[%c7, %c0_39], %38 {strides = array<i32>} : memref<16x32xf32, #tpu.memory_space<vmem>>, vector<1x32xf32>,
    %c0_40 = arith.constant 0 : index
    %c4_41 = arith.constant 4 : index
    %40 = memref.load %arg0[%c0_40, %c4_41] : memref<2x8xi32, #tpu.memory_space<smem>>
    %41 = arith.index_cast %40 : i32 to index
    %c0_42 = arith.constant 0 : index
    %c0_43 = arith.constant 0 : index
    %42 = vector.load %arg1[%41, %c0_42, %c0_43] : memref<50x1x32xf32, #tpu.memory_space<vmem>>, vector<1x1x32xf32>
    %43 = vector.shape_cast %42 : vector<1x1x32xf32> to vector<1x32xf32>
    %c8 = arith.constant 8 : index
    %c0_44 = arith.constant 0 : index
    %44 = vector.load %arg13[%c8, %c0_44] : memref<16x32xf32, #tpu.memory_space<vmem>>, vector<1x32xf32>
    tpu.vector_store %arg13[%c8, %c0_44], %43 {strides = array<i32>} : memref<16x32xf32, #tpu.memory_space<vmem>>, vector<1x32xf32>,
    %c1_45 = arith.constant 1 : index
    %c4_46 = arith.constant 4 : index
    %45 = memref.load %arg0[%c1_45, %c4_46] : memref<2x8xi32, #tpu.memory_space<smem>>
    %46 = arith.index_cast %45 : i32 to index
    %c0_47 = arith.constant 0 : index
    %c0_48 = arith.constant 0 : index
    %47 = vector.load %arg1[%46, %c0_47, %c0_48] : memref<50x1x32xf32, #tpu.memory_space<vmem>>, vector<1x1x32xf32>
    %48 = vector.shape_cast %47 : vector<1x1x32xf32> to vector<1x32xf32>
    %c9 = arith.constant 9 : index
    %c0_49 = arith.constant 0 : index
    %49 = vector.load %arg13[%c9, %c0_49] : memref<16x32xf32, #tpu.memory_space<vmem>>, vector<1x32xf32>
    tpu.vector_store %arg13[%c9, %c0_49], %48 {strides = array<i32>} : memref<16x32xf32, #tpu.memory_space<vmem>>, vector<1x32xf32>,
    %c0_50 = arith.constant 0 : index
    %c5_51 = arith.constant 5 : index
    %50 = memref.load %arg0[%c0_50, %c5_51] : memref<2x8xi32, #tpu.memory_space<smem>>
    %51 = arith.index_cast %50 : i32 to index
    %c0_52 = arith.constant 0 : index
    %c0_53 = arith.constant 0 : index
    %52 = vector.load %arg1[%51, %c0_52, %c0_53] : memref<50x1x32xf32, #tpu.memory_space<vmem>>, vector<1x1x32xf32>
    %53 = vector.shape_cast %52 : vector<1x1x32xf32> to vector<1x32xf32>
    %c10 = arith.constant 10 : index
    %c0_54 = arith.constant 0 : index
    %54 = vector.load %arg13[%c10, %c0_54] : memref<16x32xf32, #tpu.memory_space<vmem>>, vector<1x32xf32>
    tpu.vector_store %arg13[%c10, %c0_54], %53 {strides = array<i32>} : memref<16x32xf32, #tpu.memory_space<vmem>>, vector<1x32xf32>,
    %c1_55 = arith.constant 1 : index
    %c5_56 = arith.constant 5 : index
    %55 = memref.load %arg0[%c1_55, %c5_56] : memref<2x8xi32, #tpu.memory_space<smem>>
    %56 = arith.index_cast %55 : i32 to index
    %c0_57 = arith.constant 0 : index
    %c0_58 = arith.constant 0 : index
    %57 = vector.load %arg1[%56, %c0_57, %c0_58] : memref<50x1x32xf32, #tpu.memory_space<vmem>>, vector<1x1x32xf32>
    %58 = vector.shape_cast %57 : vector<1x1x32xf32> to vector<1x32xf32>
    %c11 = arith.constant 11 : index
    %c0_59 = arith.constant 0 : index
    %59 = vector.load %arg13[%c11, %c0_59] : memref<16x32xf32, #tpu.memory_space<vmem>>, vector<1x32xf32>
    tpu.vector_store %arg13[%c11, %c0_59], %58 {strides = array<i32>} : memref<16x32xf32, #tpu.memory_space<vmem>>, vector<1x32xf32>,
    %c0_60 = arith.constant 0 : index
    %c6_61 = arith.constant 6 : index
    %60 = memref.load %arg0[%c0_60, %c6_61] : memref<2x8xi32, #tpu.memory_space<smem>>
    %61 = arith.index_cast %60 : i32 to index
    %c0_62 = arith.constant 0 : index
    %c0_63 = arith.constant 0 : index
    %62 = vector.load %arg1[%61, %c0_62, %c0_63] : memref<50x1x32xf32, #tpu.memory_space<vmem>>, vector<1x1x32xf32>
    %63 = vector.shape_cast %62 : vector<1x1x32xf32> to vector<1x32xf32>
    %c12 = arith.constant 12 : index
    %c0_64 = arith.constant 0 : index
    %64 = vector.load %arg13[%c12, %c0_64] : memref<16x32xf32, #tpu.memory_space<vmem>>, vector<1x32xf32>
    tpu.vector_store %arg13[%c12, %c0_64], %63 {strides = array<i32>} : memref<16x32xf32, #tpu.memory_space<vmem>>, vector<1x32xf32>,
    %c1_65 = arith.constant 1 : index
    %c6_66 = arith.constant 6 : index
    %65 = memref.load %arg0[%c1_65, %c6_66] : memref<2x8xi32, #tpu.memory_space<smem>>
    %66 = arith.index_cast %65 : i32 to index
    %c0_67 = arith.constant 0 : index
    %c0_68 = arith.constant 0 : index
    %67 = vector.load %arg1[%66, %c0_67, %c0_68] : memref<50x1x32xf32, #tpu.memory_space<vmem>>, vector<1x1x32xf32>
    %68 = vector.shape_cast %67 : vector<1x1x32xf32> to vector<1x32xf32>
    %c13 = arith.constant 13 : index
    %c0_69 = arith.constant 0 : index
    %69 = vector.load %arg13[%c13, %c0_69] : memref<16x32xf32, #tpu.memory_space<vmem>>, vector<1x32xf32>
    tpu.vector_store %arg13[%c13, %c0_69], %68 {strides = array<i32>} : memref<16x32xf32, #tpu.memory_space<vmem>>, vector<1x32xf32>,
    %c0_70 = arith.constant 0 : index
    %c7_71 = arith.constant 7 : index
    %70 = memref.load %arg0[%c0_70, %c7_71] : memref<2x8xi32, #tpu.memory_space<smem>>
    %71 = arith.index_cast %70 : i32 to index
    %c0_72 = arith.constant 0 : index
    %c0_73 = arith.constant 0 : index
    %72 = vector.load %arg1[%71, %c0_72, %c0_73] : memref<50x1x32xf32, #tpu.memory_space<vmem>>, vector<1x1x32xf32>
    %73 = vector.shape_cast %72 : vector<1x1x32xf32> to vector<1x32xf32>
    %c14 = arith.constant 14 : index
    %c0_74 = arith.constant 0 : index
    %74 = vector.load %arg13[%c14, %c0_74] : memref<16x32xf32, #tpu.memory_space<vmem>>, vector<1x32xf32>
    tpu.vector_store %arg13[%c14, %c0_74], %73 {strides = array<i32>} : memref<16x32xf32, #tpu.memory_space<vmem>>, vector<1x32xf32>,
    %c1_75 = arith.constant 1 : index
    %c7_76 = arith.constant 7 : index
    %75 = memref.load %arg0[%c1_75, %c7_76] : memref<2x8xi32, #tpu.memory_space<smem>>
    %76 = arith.index_cast %75 : i32 to index
    %c0_77 = arith.constant 0 : index
    %c0_78 = arith.constant 0 : index
    %77 = vector.load %arg1[%76, %c0_77, %c0_78] : memref<50x1x32xf32, #tpu.memory_space<vmem>>, vector<1x1x32xf32>
    %78 = vector.shape_cast %77 : vector<1x1x32xf32> to vector<1x32xf32>
    %c15 = arith.constant 15 : index
    %c0_79 = arith.constant 0 : index
    %79 = vector.load %arg13[%c15, %c0_79] : memref<16x32xf32, #tpu.memory_space<vmem>>, vector<1x32xf32>
    tpu.vector_store %arg13[%c15, %c0_79], %78 {strides = array<i32>} : memref<16x32xf32, #tpu.memory_space<vmem>>, vector<1x32xf32>,
    %c0_80 = arith.constant 0 : index
    %c0_81 = arith.constant 0 : index
    %80 = vector.load %arg13[%c0_80, %c0_81] : memref<16x32xf32, #tpu.memory_space<vmem>>, vector<16x32xf32>
    %c0_82 = arith.constant 0 : index
    %c0_83 = arith.constant 0 : index
    %c0_84 = arith.constant 0 : index
    %81 = vector.load %arg4[%c0_82, %c0_83, %c0_84] : memref<4x1x32xf32, #tpu.memory_space<vmem>>, vector<1x1x32xf32>
    %82 = vector.shape_cast %81 : vector<1x1x32xf32> to vector<1x32xf32>
    %c0_85 = arith.constant 0 : index
    %c0_86 = arith.constant 0 : index
    %c0_87 = arith.constant 0 : index
    %83 = vector.load %arg2[%c0_85, %c0_86, %c0_87] : memref<3x32x32xf32, #tpu.memory_space<vmem>>, vector<1x32x32xf32>
    %84 = vector.shape_cast %83 : vector<1x32x32xf32> to vector<32x32xf32>
    %cst = arith.constant dense<0.000000e+00> : vector<16x32xf32>
    %85 = tpu.matmul %80, %84, %cst {dimension_numbers = #tpu.dot_dimension_numbers<[1], [0], [0], [1], [0, 0, 1, 1], [], []>} : vector<16x32xf32>, vector<32x32xf32>, vector<16x32xf32> -> vector<16x32xf32>
    %86 = vector.broadcast %82 : vector<1x32xf32> to vector<16x32xf32>
    %87 = arith.addf %85, %86 : vector<16x32xf32>
    %c1_88 = arith.constant 1 : index
    %c0_89 = arith.constant 0 : index
    %c0_90 = arith.constant 0 : index
    %88 = vector.load %arg4[%c1_88, %c0_89, %c0_90] : memref<4x1x32xf32, #tpu.memory_space<vmem>>, vector<1x1x32xf32>
    %89 = vector.shape_cast %88 : vector<1x1x32xf32> to vector<1x32xf32>
    %c1_91 = arith.constant 1 : index
    %c0_92 = arith.constant 0 : index
    %c0_93 = arith.constant 0 : index
    %90 = vector.load %arg2[%c1_91, %c0_92, %c0_93] : memref<3x32x32xf32, #tpu.memory_space<vmem>>, vector<1x32x32xf32>
    %91 = vector.shape_cast %90 : vector<1x32x32xf32> to vector<32x32xf32>
    %cst_94 = arith.constant dense<0.000000e+00> : vector<16x32xf32>
    %92 = tpu.matmul %80, %91, %cst_94 {dimension_numbers = #tpu.dot_dimension_numbers<[1], [0], [0], [1], [0, 0, 1, 1], [], []>} : vector<16x32xf32>, vector<32x32xf32>, vector<16x32xf32> -> vector<16x32xf32>
    %93 = vector.broadcast %89 : vector<1x32xf32> to vector<16x32xf32>
    %94 = arith.addf %92, %93 : vector<16x32xf32>
    %c2_95 = arith.constant 2 : index
    %c0_96 = arith.constant 0 : index
    %c0_97 = arith.constant 0 : index
    %95 = vector.load %arg4[%c2_95, %c0_96, %c0_97] : memref<4x1x32xf32, #tpu.memory_space<vmem>>, vector<1x1x32xf32>
    %96 = vector.shape_cast %95 : vector<1x1x32xf32> to vector<1x32xf32>
    %c2_98 = arith.constant 2 : index
    %c0_99 = arith.constant 0 : index
    %c0_100 = arith.constant 0 : index
    %97 = vector.load %arg2[%c2_98, %c0_99, %c0_100] : memref<3x32x32xf32, #tpu.memory_space<vmem>>, vector<1x32x32xf32>
    %98 = vector.shape_cast %97 : vector<1x32x32xf32> to vector<32x32xf32>
    %cst_101 = arith.constant dense<0.000000e+00> : vector<16x32xf32>
    %99 = tpu.matmul %80, %98, %cst_101 {dimension_numbers = #tpu.dot_dimension_numbers<[1], [0], [0], [1], [0, 0, 1, 1], [], []>} : vector<16x32xf32>, vector<32x32xf32>, vector<16x32xf32> -> vector<16x32xf32>
    %100 = vector.broadcast %96 : vector<1x32xf32> to vector<16x32xf32>
    %101 = arith.addf %99, %100 : vector<16x32xf32>
    %c0_102 = arith.constant 0 : index
    %c0_103 = arith.constant 0 : index
    %c0_104 = arith.constant 0 : index
    %102 = vector.load %arg7[%c0_102, %c0_103, %c0_104] : memref<4x1x32xf32, #tpu.memory_space<vmem>>, vector<1x1x32xf32>
    %103 = vector.shape_cast %102 : vector<1x1x32xf32> to vector<1x32xf32>
    %c0_105 = arith.constant 0 : index
    %c0_106 = arith.constant 0 : index
    %c0_107 = arith.constant 0 : index
    %104 = vector.load %arg5[%c0_105, %c0_106, %c0_107] : memref<3x32x32xf32, #tpu.memory_space<vmem>>, vector<1x32x32xf32>
    %105 = vector.shape_cast %104 : vector<1x32x32xf32> to vector<32x32xf32>
    %cst_108 = arith.constant dense<0.000000e+00> : vector<16x32xf32>
    %106 = tpu.matmul %80, %105, %cst_108 {dimension_numbers = #tpu.dot_dimension_numbers<[1], [0], [0], [1], [0, 0, 1, 1], [], []>} : vector<16x32xf32>, vector<32x32xf32>, vector<16x32xf32> -> vector<16x32xf32>
    %107 = vector.broadcast %103 : vector<1x32xf32> to vector<16x32xf32>
    %108 = arith.addf %106, %107 : vector<16x32xf32>
    %c1_109 = arith.constant 1 : index
    %c0_110 = arith.constant 0 : index
    %c0_111 = arith.constant 0 : index
    %109 = vector.load %arg7[%c1_109, %c0_110, %c0_111] : memref<4x1x32xf32, #tpu.memory_space<vmem>>, vector<1x1x32xf32>
    %110 = vector.shape_cast %109 : vector<1x1x32xf32> to vector<1x32xf32>
    %c1_112 = arith.constant 1 : index
    %c0_113 = arith.constant 0 : index
    %c0_114 = arith.constant 0 : index
    %111 = vector.load %arg5[%c1_112, %c0_113, %c0_114] : memref<3x32x32xf32, #tpu.memory_space<vmem>>, vector<1x32x32xf32>
    %112 = vector.shape_cast %111 : vector<1x32x32xf32> to vector<32x32xf32>
    %cst_115 = arith.constant dense<0.000000e+00> : vector<16x32xf32>
    %113 = tpu.matmul %80, %112, %cst_115 {dimension_numbers = #tpu.dot_dimension_numbers<[1], [0], [0], [1], [0, 0, 1, 1], [], []>} : vector<16x32xf32>, vector<32x32xf32>, vector<16x32xf32> -> vector<16x32xf32>
    %114 = vector.broadcast %110 : vector<1x32xf32> to vector<16x32xf32>
    %115 = arith.addf %113, %114 : vector<16x32xf32>
    %c2_116 = arith.constant 2 : index
    %c0_117 = arith.constant 0 : index
    %c0_118 = arith.constant 0 : index
    %116 = vector.load %arg7[%c2_116, %c0_117, %c0_118] : memref<4x1x32xf32, #tpu.memory_space<vmem>>, vector<1x1x32xf32>
    %117 = vector.shape_cast %116 : vector<1x1x32xf32> to vector<1x32xf32>
    %c2_119 = arith.constant 2 : index
    %c0_120 = arith.constant 0 : index
    %c0_121 = arith.constant 0 : index
    %118 = vector.load %arg5[%c2_119, %c0_120, %c0_121] : memref<3x32x32xf32, #tpu.memory_space<vmem>>, vector<1x32x32xf32>
    %119 = vector.shape_cast %118 : vector<1x32x32xf32> to vector<32x32xf32>
    %cst_122 = arith.constant dense<0.000000e+00> : vector<16x32xf32>
    %120 = tpu.matmul %80, %119, %cst_122 {dimension_numbers = #tpu.dot_dimension_numbers<[1], [0], [0], [1], [0, 0, 1, 1], [], []>} : vector<16x32xf32>, vector<32x32xf32>, vector<16x32xf32> -> vector<16x32xf32>
    %121 = vector.broadcast %117 : vector<1x32xf32> to vector<16x32xf32>
    %122 = arith.addf %120, %121 : vector<16x32xf32>
    %c3_123 = arith.constant 3 : index
    %c0_124 = arith.constant 0 : index
    %c0_125 = arith.constant 0 : index
    %123 = vector.load %arg4[%c3_123, %c0_124, %c0_125] : memref<4x1x32xf32, #tpu.memory_space<vmem>>, vector<1x1x32xf32>
    %124 = vector.shape_cast %123 : vector<1x1x32xf32> to vector<1x32xf32>
    %c3_126 = arith.constant 3 : index
    %c0_127 = arith.constant 0 : index
    %c0_128 = arith.constant 0 : index
    %125 = vector.load %arg7[%c3_126, %c0_127, %c0_128] : memref<4x1x32xf32, #tpu.memory_space<vmem>>, vector<1x1x32xf32>
    %126 = vector.shape_cast %125 : vector<1x1x32xf32> to vector<1x32xf32>
    %c0_129 = arith.constant 0 : index
    %c0_130 = arith.constant 0 : index
    %c0_131 = arith.constant 0 : index
    %127 = vector.load %arg3[%c0_129, %c0_130, %c0_131] : memref<3x32x32xf32, #tpu.memory_space<vmem>>, vector<1x32x32xf32>
    %128 = vector.shape_cast %127 : vector<1x32x32xf32> to vector<32x32xf32>
    %c1_132 = arith.constant 1 : index
    %c0_133 = arith.constant 0 : index
    %c0_134 = arith.constant 0 : index
    %129 = vector.load %arg3[%c1_132, %c0_133, %c0_134] : memref<3x32x32xf32, #tpu.memory_space<vmem>>, vector<1x32x32xf32>
    %130 = vector.shape_cast %129 : vector<1x32x32xf32> to vector<32x32xf32>
    %c2_135 = arith.constant 2 : index
    %c0_136 = arith.constant 0 : index
    %c0_137 = arith.constant 0 : index
    %131 = vector.load %arg3[%c2_135, %c0_136, %c0_137] : memref<3x32x32xf32, #tpu.memory_space<vmem>>, vector<1x32x32xf32>
    %132 = vector.shape_cast %131 : vector<1x32x32xf32> to vector<32x32xf32>
    %c0_138 = arith.constant 0 : index
    %c0_139 = arith.constant 0 : index
    %c0_140 = arith.constant 0 : index
    %133 = vector.load %arg6[%c0_138, %c0_139, %c0_140] : memref<3x32x32xf32, #tpu.memory_space<vmem>>, vector<1x32x32xf32>
    %134 = vector.shape_cast %133 : vector<1x32x32xf32> to vector<32x32xf32>
    %c1_141 = arith.constant 1 : index
    %c0_142 = arith.constant 0 : index
    %c0_143 = arith.constant 0 : index
    %135 = vector.load %arg6[%c1_141, %c0_142, %c0_143] : memref<3x32x32xf32, #tpu.memory_space<vmem>>, vector<1x32x32xf32>
    %136 = vector.shape_cast %135 : vector<1x32x32xf32> to vector<32x32xf32>
    %c2_144 = arith.constant 2 : index
    %c0_145 = arith.constant 0 : index
    %c0_146 = arith.constant 0 : index
    %137 = vector.load %arg6[%c2_144, %c0_145, %c0_146] : memref<3x32x32xf32, #tpu.memory_space<vmem>>, vector<1x32x32xf32>
    %138 = vector.shape_cast %137 : vector<1x32x32xf32> to vector<32x32xf32>
    %cst_147 = arith.constant 0.000000e+00 : f32
    %139 = vector.broadcast %cst_147 : f32 to vector<2x32xf32>
    %cst_148 = arith.constant 0.000000e+00 : f32
    %140 = vector.broadcast %cst_148 : f32 to vector<2x32xf32>
    %cst_149 = arith.constant 0.000000e+00 : f32
    %141 = vector.broadcast %cst_149 : f32 to vector<2x32xf32>
    %cst_150 = arith.constant 0.000000e+00 : f32
    %142 = vector.broadcast %cst_150 : f32 to vector<2x32xf32>
    %cst_151 = arith.constant 0.000000e+00 : f32
    %143 = vector.broadcast %cst_151 : f32 to vector<2x32xf32>
    %cst_152 = arith.constant dense<0.000000e+00> : vector<2x32xf32>
    %144 = tpu.matmul %139, %128, %cst_152 {dimension_numbers = #tpu.dot_dimension_numbers<[1], [0], [0], [1], [0, 0, 1, 1], [], []>} : vector<2x32xf32>, vector<32x32xf32>, vector<2x32xf32> -> vector<2x32xf32>
    %cst_153 = arith.constant dense<0.000000e+00> : vector<2x32xf32>
    %145 = tpu.matmul %139, %130, %cst_153 {dimension_numbers = #tpu.dot_dimension_numbers<[1], [0], [0], [1], [0, 0, 1, 1], [], []>} : vector<2x32xf32>, vector<32x32xf32>, vector<2x32xf32> -> vector<2x32xf32>
    %cst_154 = arith.constant dense<0.000000e+00> : vector<2x32xf32>
    %146 = tpu.matmul %139, %132, %cst_154 {dimension_numbers = #tpu.dot_dimension_numbers<[1], [0], [0], [1], [0, 0, 1, 1], [], []>} : vector<2x32xf32>, vector<32x32xf32>, vector<2x32xf32> -> vector<2x32xf32>
    %cst_155 = arith.constant dense<0.000000e+00> : vector<2x32xf32>
    %147 = tpu.matmul %140, %134, %cst_155 {dimension_numbers = #tpu.dot_dimension_numbers<[1], [0], [0], [1], [0, 0, 1, 1], [], []>} : vector<2x32xf32>, vector<32x32xf32>, vector<2x32xf32> -> vector<2x32xf32>
    %cst_156 = arith.constant dense<0.000000e+00> : vector<2x32xf32>
    %148 = tpu.matmul %140, %136, %cst_156 {dimension_numbers = #tpu.dot_dimension_numbers<[1], [0], [0], [1], [0, 0, 1, 1], [], []>} : vector<2x32xf32>, vector<32x32xf32>, vector<2x32xf32> -> vector<2x32xf32>
    %cst_157 = arith.constant dense<0.000000e+00> : vector<2x32xf32>
    %149 = tpu.matmul %140, %138, %cst_157 {dimension_numbers = #tpu.dot_dimension_numbers<[1], [0], [0], [1], [0, 0, 1, 1], [], []>} : vector<2x32xf32>, vector<32x32xf32>, vector<2x32xf32> -> vector<2x32xf32>
    %150 = vector.extract_strided_slice %87 {offsets = [0, 0], sizes = [2, 32], strides = [1, 1]} : vector<16x32xf32> to vector<2x32xf32>
    %151 = arith.addf %150, %144 : vector<2x32xf32>
    %152 = arith.negf %151 : vector<2x32xf32>
    %153 = math.exp %152 : vector<2x32xf32>
    %cst_158 = arith.constant 1.000000e+00 : f32
    %154 = vector.broadcast %cst_158 : f32 to vector<2x32xf32>
    %155 = arith.addf %154, %153 : vector<2x32xf32>
    %156 = arith.divf %154, %155 : vector<2x32xf32>
    %157 = vector.extract_strided_slice %94 {offsets = [0, 0], sizes = [2, 32], strides = [1, 1]} : vector<16x32xf32> to vector<2x32xf32>
    %158 = arith.addf %157, %145 : vector<2x32xf32>
    %159 = arith.negf %158 : vector<2x32xf32>
    %160 = math.exp %159 : vector<2x32xf32>
    %cst_159 = arith.constant 1.000000e+00 : f32
    %161 = vector.broadcast %cst_159 : f32 to vector<2x32xf32>
    %162 = arith.addf %161, %160 : vector<2x32xf32>
    %163 = arith.divf %161, %162 : vector<2x32xf32>
    %164 = vector.extract_strided_slice %101 {offsets = [0, 0], sizes = [2, 32], strides = [1, 1]} : vector<16x32xf32> to vector<2x32xf32>
    %165 = vector.broadcast %124 : vector<1x32xf32> to vector<2x32xf32>
    %166 = arith.addf %146, %165 : vector<2x32xf32>
    %167 = arith.mulf %156, %166 : vector<2x32xf32>
    %168 = arith.addf %164, %167 : vector<2x32xf32>
    %169 = math.tanh %168 : vector<2x32xf32>
    %cst_160 = arith.constant 1.000000e+00 : f32
    %170 = vector.broadcast %cst_160 : f32 to vector<2x32xf32>
    %171 = arith.subf %170, %163 : vector<2x32xf32>
    %172 = arith.mulf %171, %169 : vector<2x32xf32>
    %173 = arith.mulf %163, %139 : vector<2x32xf32>
    %174 = arith.addf %172, %173 : vector<2x32xf32>
    %175 = vector.extract_strided_slice %108 {offsets = [14, 0], sizes = [2, 32], strides = [1, 1]} : vector<16x32xf32> to vector<2x32xf32>
    %176 = arith.addf %175, %147 : vector<2x32xf32>
    %177 = arith.negf %176 : vector<2x32xf32>
    %178 = math.exp %177 : vector<2x32xf32>
    %cst_161 = arith.constant 1.000000e+00 : f32
    %179 = vector.broadcast %cst_161 : f32 to vector<2x32xf32>
    %180 = arith.addf %179, %178 : vector<2x32xf32>
    %181 = arith.divf %179, %180 : vector<2x32xf32>
    %182 = vector.extract_strided_slice %115 {offsets = [14, 0], sizes = [2, 32], strides = [1, 1]} : vector<16x32xf32> to vector<2x32xf32>
    %183 = arith.addf %182, %148 : vector<2x32xf32>
    %184 = arith.negf %183 : vector<2x32xf32>
    %185 = math.exp %184 : vector<2x32xf32>
    %cst_162 = arith.constant 1.000000e+00 : f32
    %186 = vector.broadcast %cst_162 : f32 to vector<2x32xf32>
    %187 = arith.addf %186, %185 : vector<2x32xf32>
    %188 = arith.divf %186, %187 : vector<2x32xf32>
    %189 = vector.extract_strided_slice %122 {offsets = [14, 0], sizes = [2, 32], strides = [1, 1]} : vector<16x32xf32> to vector<2x32xf32>
    %190 = vector.broadcast %126 : vector<1x32xf32> to vector<2x32xf32>
    %191 = arith.addf %149, %190 : vector<2x32xf32>
    %192 = arith.mulf %181, %191 : vector<2x32xf32>
    %193 = arith.addf %189, %192 : vector<2x32xf32>
    %194 = math.tanh %193 : vector<2x32xf32>
    %cst_163 = arith.constant 1.000000e+00 : f32
    %195 = vector.broadcast %cst_163 : f32 to vector<2x32xf32>
    %196 = arith.subf %195, %188 : vector<2x32xf32>
    %197 = arith.mulf %196, %194 : vector<2x32xf32>
    %198 = arith.mulf %188, %140 : vector<2x32xf32>
    %199 = arith.addf %197, %198 : vector<2x32xf32>
    %200 = vector.extract_strided_slice %80 {offsets = [0, 0], sizes = [2, 32], strides = [1, 1]} : vector<16x32xf32> to vector<2x32xf32>
    %201 = arith.maximumf %141, %200 : vector<2x32xf32>
    %202 = arith.maximumf %142, %174 : vector<2x32xf32>
    %203 = arith.maximumf %143, %199 : vector<2x32xf32>
    %cst_164 = arith.constant dense<0.000000e+00> : vector<2x32xf32>
    %204 = tpu.matmul %174, %128, %cst_164 {dimension_numbers = #tpu.dot_dimension_numbers<[1], [0], [0], [1], [0, 0, 1, 1], [], []>} : vector<2x32xf32>, vector<32x32xf32>, vector<2x32xf32> -> vector<2x32xf32>
    %cst_165 = arith.constant dense<0.000000e+00> : vector<2x32xf32>
    %205 = tpu.matmul %174, %130, %cst_165 {dimension_numbers = #tpu.dot_dimension_numbers<[1], [0], [0], [1], [0, 0, 1, 1], [], []>} : vector<2x32xf32>, vector<32x32xf32>, vector<2x32xf32> -> vector<2x32xf32>
    %cst_166 = arith.constant dense<0.000000e+00> : vector<2x32xf32>
    %206 = tpu.matmul %174, %132, %cst_166 {dimension_numbers = #tpu.dot_dimension_numbers<[1], [0], [0], [1], [0, 0, 1, 1], [], []>} : vector<2x32xf32>, vector<32x32xf32>, vector<2x32xf32> -> vector<2x32xf32>
    %cst_167 = arith.constant dense<0.000000e+00> : vector<2x32xf32>
    %207 = tpu.matmul %199, %134, %cst_167 {dimension_numbers = #tpu.dot_dimension_numbers<[1], [0], [0], [1], [0, 0, 1, 1], [], []>} : vector<2x32xf32>, vector<32x32xf32>, vector<2x32xf32> -> vector<2x32xf32>
    %cst_168 = arith.constant dense<0.000000e+00> : vector<2x32xf32>
    %208 = tpu.matmul %199, %136, %cst_168 {dimension_numbers = #tpu.dot_dimension_numbers<[1], [0], [0], [1], [0, 0, 1, 1], [], []>} : vector<2x32xf32>, vector<32x32xf32>, vector<2x32xf32> -> vector<2x32xf32>
    %cst_169 = arith.constant dense<0.000000e+00> : vector<2x32xf32>
    %209 = tpu.matmul %199, %138, %cst_169 {dimension_numbers = #tpu.dot_dimension_numbers<[1], [0], [0], [1], [0, 0, 1, 1], [], []>} : vector<2x32xf32>, vector<32x32xf32>, vector<2x32xf32> -> vector<2x32xf32>
    %210 = vector.extract_strided_slice %87 {offsets = [2, 0], sizes = [2, 32], strides = [1, 1]} : vector<16x32xf32> to vector<2x32xf32>
    %211 = arith.addf %210, %204 : vector<2x32xf32>
    %212 = arith.negf %211 : vector<2x32xf32>
    %213 = math.exp %212 : vector<2x32xf32>
    %cst_170 = arith.constant 1.000000e+00 : f32
    %214 = vector.broadcast %cst_170 : f32 to vector<2x32xf32>
    %215 = arith.addf %214, %213 : vector<2x32xf32>
    %216 = arith.divf %214, %215 : vector<2x32xf32>
    %217 = vector.extract_strided_slice %94 {offsets = [2, 0], sizes = [2, 32], strides = [1, 1]} : vector<16x32xf32> to vector<2x32xf32>
    %218 = arith.addf %217, %205 : vector<2x32xf32>
    %219 = arith.negf %218 : vector<2x32xf32>
    %220 = math.exp %219 : vector<2x32xf32>
    %cst_171 = arith.constant 1.000000e+00 : f32
    %221 = vector.broadcast %cst_171 : f32 to vector<2x32xf32>
    %222 = arith.addf %221, %220 : vector<2x32xf32>
    %223 = arith.divf %221, %222 : vector<2x32xf32>
    %224 = vector.extract_strided_slice %101 {offsets = [2, 0], sizes = [2, 32], strides = [1, 1]} : vector<16x32xf32> to vector<2x32xf32>
    %225 = vector.broadcast %124 : vector<1x32xf32> to vector<2x32xf32>
    %226 = arith.addf %206, %225 : vector<2x32xf32>
    %227 = arith.mulf %216, %226 : vector<2x32xf32>
    %228 = arith.addf %224, %227 : vector<2x32xf32>
    %229 = math.tanh %228 : vector<2x32xf32>
    %cst_172 = arith.constant 1.000000e+00 : f32
    %230 = vector.broadcast %cst_172 : f32 to vector<2x32xf32>
    %231 = arith.subf %230, %223 : vector<2x32xf32>
    %232 = arith.mulf %231, %229 : vector<2x32xf32>
    %233 = arith.mulf %223, %174 : vector<2x32xf32>
    %234 = arith.addf %232, %233 : vector<2x32xf32>
    %235 = vector.extract_strided_slice %108 {offsets = [12, 0], sizes = [2, 32], strides = [1, 1]} : vector<16x32xf32> to vector<2x32xf32>
    %236 = arith.addf %235, %207 : vector<2x32xf32>
    %237 = arith.negf %236 : vector<2x32xf32>
    %238 = math.exp %237 : vector<2x32xf32>
    %cst_173 = arith.constant 1.000000e+00 : f32
    %239 = vector.broadcast %cst_173 : f32 to vector<2x32xf32>
    %240 = arith.addf %239, %238 : vector<2x32xf32>
    %241 = arith.divf %239, %240 : vector<2x32xf32>
    %242 = vector.extract_strided_slice %115 {offsets = [12, 0], sizes = [2, 32], strides = [1, 1]} : vector<16x32xf32> to vector<2x32xf32>
    %243 = arith.addf %242, %208 : vector<2x32xf32>
    %244 = arith.negf %243 : vector<2x32xf32>
    %245 = math.exp %244 : vector<2x32xf32>
    %cst_174 = arith.constant 1.000000e+00 : f32
    %246 = vector.broadcast %cst_174 : f32 to vector<2x32xf32>
    %247 = arith.addf %246, %245 : vector<2x32xf32>
    %248 = arith.divf %246, %247 : vector<2x32xf32>
    %249 = vector.extract_strided_slice %122 {offsets = [12, 0], sizes = [2, 32], strides = [1, 1]} : vector<16x32xf32> to vector<2x32xf32>
    %250 = vector.broadcast %126 : vector<1x32xf32> to vector<2x32xf32>
    %251 = arith.addf %209, %250 : vector<2x32xf32>
    %252 = arith.mulf %241, %251 : vector<2x32xf32>
    %253 = arith.addf %249, %252 : vector<2x32xf32>
    %254 = math.tanh %253 : vector<2x32xf32>
    %cst_175 = arith.constant 1.000000e+00 : f32
    %255 = vector.broadcast %cst_175 : f32 to vector<2x32xf32>
    %256 = arith.subf %255, %248 : vector<2x32xf32>
    %257 = arith.mulf %256, %254 : vector<2x32xf32>
    %258 = arith.mulf %248, %199 : vector<2x32xf32>
    %259 = arith.addf %257, %258 : vector<2x32xf32>
    %260 = vector.extract_strided_slice %80 {offsets = [2, 0], sizes = [2, 32], strides = [1, 1]} : vector<16x32xf32> to vector<2x32xf32>
    %261 = arith.maximumf %201, %260 : vector<2x32xf32>
    %262 = arith.maximumf %202, %234 : vector<2x32xf32>
    %263 = arith.maximumf %203, %259 : vector<2x32xf32>
    %cst_176 = arith.constant dense<0.000000e+00> : vector<2x32xf32>
    %264 = tpu.matmul %234, %128, %cst_176 {dimension_numbers = #tpu.dot_dimension_numbers<[1], [0], [0], [1], [0, 0, 1, 1], [], []>} : vector<2x32xf32>, vector<32x32xf32>, vector<2x32xf32> -> vector<2x32xf32>
    %cst_177 = arith.constant dense<0.000000e+00> : vector<2x32xf32>
    %265 = tpu.matmul %234, %130, %cst_177 {dimension_numbers = #tpu.dot_dimension_numbers<[1], [0], [0], [1], [0, 0, 1, 1], [], []>} : vector<2x32xf32>, vector<32x32xf32>, vector<2x32xf32> -> vector<2x32xf32>
    %cst_178 = arith.constant dense<0.000000e+00> : vector<2x32xf32>
    %266 = tpu.matmul %234, %132, %cst_178 {dimension_numbers = #tpu.dot_dimension_numbers<[1], [0], [0], [1], [0, 0, 1, 1], [], []>} : vector<2x32xf32>, vector<32x32xf32>, vector<2x32xf32> -> vector<2x32xf32>
    %cst_179 = arith.constant dense<0.000000e+00> : vector<2x32xf32>
    %267 = tpu.matmul %259, %134, %cst_179 {dimension_numbers = #tpu.dot_dimension_numbers<[1], [0], [0], [1], [0, 0, 1, 1], [], []>} : vector<2x32xf32>, vector<32x32xf32>, vector<2x32xf32> -> vector<2x32xf32>
    %cst_180 = arith.constant dense<0.000000e+00> : vector<2x32xf32>
    %268 = tpu.matmul %259, %136, %cst_180 {dimension_numbers = #tpu.dot_dimension_numbers<[1], [0], [0], [1], [0, 0, 1, 1], [], []>} : vector<2x32xf32>, vector<32x32xf32>, vector<2x32xf32> -> vector<2x32xf32>
    %cst_181 = arith.constant dense<0.000000e+00> : vector<2x32xf32>
    %269 = tpu.matmul %259, %138, %cst_181 {dimension_numbers = #tpu.dot_dimension_numbers<[1], [0], [0], [1], [0, 0, 1, 1], [], []>} : vector<2x32xf32>, vector<32x32xf32>, vector<2x32xf32> -> vector<2x32xf32>
    %270 = vector.extract_strided_slice %87 {offsets = [4, 0], sizes = [2, 32], strides = [1, 1]} : vector<16x32xf32> to vector<2x32xf32>
    %271 = arith.addf %270, %264 : vector<2x32xf32>
    %272 = arith.negf %271 : vector<2x32xf32>
    %273 = math.exp %272 : vector<2x32xf32>
    %cst_182 = arith.constant 1.000000e+00 : f32
    %274 = vector.broadcast %cst_182 : f32 to vector<2x32xf32>
    %275 = arith.addf %274, %273 : vector<2x32xf32>
    %276 = arith.divf %274, %275 : vector<2x32xf32>
    %277 = vector.extract_strided_slice %94 {offsets = [4, 0], sizes = [2, 32], strides = [1, 1]} : vector<16x32xf32> to vector<2x32xf32>
    %278 = arith.addf %277, %265 : vector<2x32xf32>
    %279 = arith.negf %278 : vector<2x32xf32>
    %280 = math.exp %279 : vector<2x32xf32>
    %cst_183 = arith.constant 1.000000e+00 : f32
    %281 = vector.broadcast %cst_183 : f32 to vector<2x32xf32>
    %282 = arith.addf %281, %280 : vector<2x32xf32>
    %283 = arith.divf %281, %282 : vector<2x32xf32>
    %284 = vector.extract_strided_slice %101 {offsets = [4, 0], sizes = [2, 32], strides = [1, 1]} : vector<16x32xf32> to vector<2x32xf32>
    %285 = vector.broadcast %124 : vector<1x32xf32> to vector<2x32xf32>
    %286 = arith.addf %266, %285 : vector<2x32xf32>
    %287 = arith.mulf %276, %286 : vector<2x32xf32>
    %288 = arith.addf %284, %287 : vector<2x32xf32>
    %289 = math.tanh %288 : vector<2x32xf32>
    %cst_184 = arith.constant 1.000000e+00 : f32
    %290 = vector.broadcast %cst_184 : f32 to vector<2x32xf32>
    %291 = arith.subf %290, %283 : vector<2x32xf32>
    %292 = arith.mulf %291, %289 : vector<2x32xf32>
    %293 = arith.mulf %283, %234 : vector<2x32xf32>
    %294 = arith.addf %292, %293 : vector<2x32xf32>
    %295 = vector.extract_strided_slice %108 {offsets = [10, 0], sizes = [2, 32], strides = [1, 1]} : vector<16x32xf32> to vector<2x32xf32>
    %296 = arith.addf %295, %267 : vector<2x32xf32>
    %297 = arith.negf %296 : vector<2x32xf32>
    %298 = math.exp %297 : vector<2x32xf32>
    %cst_185 = arith.constant 1.000000e+00 : f32
    %299 = vector.broadcast %cst_185 : f32 to vector<2x32xf32>
    %300 = arith.addf %299, %298 : vector<2x32xf32>
    %301 = arith.divf %299, %300 : vector<2x32xf32>
    %302 = vector.extract_strided_slice %115 {offsets = [10, 0], sizes = [2, 32], strides = [1, 1]} : vector<16x32xf32> to vector<2x32xf32>
    %303 = arith.addf %302, %268 : vector<2x32xf32>
    %304 = arith.negf %303 : vector<2x32xf32>
    %305 = math.exp %304 : vector<2x32xf32>
    %cst_186 = arith.constant 1.000000e+00 : f32
    %306 = vector.broadcast %cst_186 : f32 to vector<2x32xf32>
    %307 = arith.addf %306, %305 : vector<2x32xf32>
    %308 = arith.divf %306, %307 : vector<2x32xf32>
    %309 = vector.extract_strided_slice %122 {offsets = [10, 0], sizes = [2, 32], strides = [1, 1]} : vector<16x32xf32> to vector<2x32xf32>
    %310 = vector.broadcast %126 : vector<1x32xf32> to vector<2x32xf32>
    %311 = arith.addf %269, %310 : vector<2x32xf32>
    %312 = arith.mulf %301, %311 : vector<2x32xf32>
    %313 = arith.addf %309, %312 : vector<2x32xf32>
    %314 = math.tanh %313 : vector<2x32xf32>
    %cst_187 = arith.constant 1.000000e+00 : f32
    %315 = vector.broadcast %cst_187 : f32 to vector<2x32xf32>
    %316 = arith.subf %315, %308 : vector<2x32xf32>
    %317 = arith.mulf %316, %314 : vector<2x32xf32>
    %318 = arith.mulf %308, %259 : vector<2x32xf32>
    %319 = arith.addf %317, %318 : vector<2x32xf32>
    %320 = vector.extract_strided_slice %80 {offsets = [4, 0], sizes = [2, 32], strides = [1, 1]} : vector<16x32xf32> to vector<2x32xf32>
    %321 = arith.maximumf %261, %320 : vector<2x32xf32>
    %322 = arith.maximumf %262, %294 : vector<2x32xf32>
    %323 = arith.maximumf %263, %319 : vector<2x32xf32>
    %cst_188 = arith.constant dense<0.000000e+00> : vector<2x32xf32>
    %324 = tpu.matmul %294, %128, %cst_188 {dimension_numbers = #tpu.dot_dimension_numbers<[1], [0], [0], [1], [0, 0, 1, 1], [], []>} : vector<2x32xf32>, vector<32x32xf32>, vector<2x32xf32> -> vector<2x32xf32>
    %cst_189 = arith.constant dense<0.000000e+00> : vector<2x32xf32>
    %325 = tpu.matmul %294, %130, %cst_189 {dimension_numbers = #tpu.dot_dimension_numbers<[1], [0], [0], [1], [0, 0, 1, 1], [], []>} : vector<2x32xf32>, vector<32x32xf32>, vector<2x32xf32> -> vector<2x32xf32>
    %cst_190 = arith.constant dense<0.000000e+00> : vector<2x32xf32>
    %326 = tpu.matmul %294, %132, %cst_190 {dimension_numbers = #tpu.dot_dimension_numbers<[1], [0], [0], [1], [0, 0, 1, 1], [], []>} : vector<2x32xf32>, vector<32x32xf32>, vector<2x32xf32> -> vector<2x32xf32>
    %cst_191 = arith.constant dense<0.000000e+00> : vector<2x32xf32>
    %327 = tpu.matmul %319, %134, %cst_191 {dimension_numbers = #tpu.dot_dimension_numbers<[1], [0], [0], [1], [0, 0, 1, 1], [], []>} : vector<2x32xf32>, vector<32x32xf32>, vector<2x32xf32> -> vector<2x32xf32>
    %cst_192 = arith.constant dense<0.000000e+00> : vector<2x32xf32>
    %328 = tpu.matmul %319, %136, %cst_192 {dimension_numbers = #tpu.dot_dimension_numbers<[1], [0], [0], [1], [0, 0, 1, 1], [], []>} : vector<2x32xf32>, vector<32x32xf32>, vector<2x32xf32> -> vector<2x32xf32>
    %cst_193 = arith.constant dense<0.000000e+00> : vector<2x32xf32>
    %329 = tpu.matmul %319, %138, %cst_193 {dimension_numbers = #tpu.dot_dimension_numbers<[1], [0], [0], [1], [0, 0, 1, 1], [], []>} : vector<2x32xf32>, vector<32x32xf32>, vector<2x32xf32> -> vector<2x32xf32>
    %330 = vector.extract_strided_slice %87 {offsets = [6, 0], sizes = [2, 32], strides = [1, 1]} : vector<16x32xf32> to vector<2x32xf32>
    %331 = arith.addf %330, %324 : vector<2x32xf32>
    %332 = arith.negf %331 : vector<2x32xf32>
    %333 = math.exp %332 : vector<2x32xf32>
    %cst_194 = arith.constant 1.000000e+00 : f32
    %334 = vector.broadcast %cst_194 : f32 to vector<2x32xf32>
    %335 = arith.addf %334, %333 : vector<2x32xf32>
    %336 = arith.divf %334, %335 : vector<2x32xf32>
    %337 = vector.extract_strided_slice %94 {offsets = [6, 0], sizes = [2, 32], strides = [1, 1]} : vector<16x32xf32> to vector<2x32xf32>
    %338 = arith.addf %337, %325 : vector<2x32xf32>
    %339 = arith.negf %338 : vector<2x32xf32>
    %340 = math.exp %339 : vector<2x32xf32>
    %cst_195 = arith.constant 1.000000e+00 : f32
    %341 = vector.broadcast %cst_195 : f32 to vector<2x32xf32>
    %342 = arith.addf %341, %340 : vector<2x32xf32>
    %343 = arith.divf %341, %342 : vector<2x32xf32>
    %344 = vector.extract_strided_slice %101 {offsets = [6, 0], sizes = [2, 32], strides = [1, 1]} : vector<16x32xf32> to vector<2x32xf32>
    %345 = vector.broadcast %124 : vector<1x32xf32> to vector<2x32xf32>
    %346 = arith.addf %326, %345 : vector<2x32xf32>
    %347 = arith.mulf %336, %346 : vector<2x32xf32>
    %348 = arith.addf %344, %347 : vector<2x32xf32>
    %349 = math.tanh %348 : vector<2x32xf32>
    %cst_196 = arith.constant 1.000000e+00 : f32
    %350 = vector.broadcast %cst_196 : f32 to vector<2x32xf32>
    %351 = arith.subf %350, %343 : vector<2x32xf32>
    %352 = arith.mulf %351, %349 : vector<2x32xf32>
    %353 = arith.mulf %343, %294 : vector<2x32xf32>
    %354 = arith.addf %352, %353 : vector<2x32xf32>
    %355 = vector.extract_strided_slice %108 {offsets = [8, 0], sizes = [2, 32], strides = [1, 1]} : vector<16x32xf32> to vector<2x32xf32>
    %356 = arith.addf %355, %327 : vector<2x32xf32>
    %357 = arith.negf %356 : vector<2x32xf32>
    %358 = math.exp %357 : vector<2x32xf32>
    %cst_197 = arith.constant 1.000000e+00 : f32
    %359 = vector.broadcast %cst_197 : f32 to vector<2x32xf32>
    %360 = arith.addf %359, %358 : vector<2x32xf32>
    %361 = arith.divf %359, %360 : vector<2x32xf32>
    %362 = vector.extract_strided_slice %115 {offsets = [8, 0], sizes = [2, 32], strides = [1, 1]} : vector<16x32xf32> to vector<2x32xf32>
    %363 = arith.addf %362, %328 : vector<2x32xf32>
    %364 = arith.negf %363 : vector<2x32xf32>
    %365 = math.exp %364 : vector<2x32xf32>
    %cst_198 = arith.constant 1.000000e+00 : f32
    %366 = vector.broadcast %cst_198 : f32 to vector<2x32xf32>
    %367 = arith.addf %366, %365 : vector<2x32xf32>
    %368 = arith.divf %366, %367 : vector<2x32xf32>
    %369 = vector.extract_strided_slice %122 {offsets = [8, 0], sizes = [2, 32], strides = [1, 1]} : vector<16x32xf32> to vector<2x32xf32>
    %370 = vector.broadcast %126 : vector<1x32xf32> to vector<2x32xf32>
    %371 = arith.addf %329, %370 : vector<2x32xf32>
    %372 = arith.mulf %361, %371 : vector<2x32xf32>
    %373 = arith.addf %369, %372 : vector<2x32xf32>
    %374 = math.tanh %373 : vector<2x32xf32>
    %cst_199 = arith.constant 1.000000e+00 : f32
    %375 = vector.broadcast %cst_199 : f32 to vector<2x32xf32>
    %376 = arith.subf %375, %368 : vector<2x32xf32>
    %377 = arith.mulf %376, %374 : vector<2x32xf32>
    %378 = arith.mulf %368, %319 : vector<2x32xf32>
    %379 = arith.addf %377, %378 : vector<2x32xf32>
    %380 = vector.extract_strided_slice %80 {offsets = [6, 0], sizes = [2, 32], strides = [1, 1]} : vector<16x32xf32> to vector<2x32xf32>
    %381 = arith.maximumf %321, %380 : vector<2x32xf32>
    %382 = arith.maximumf %322, %354 : vector<2x32xf32>
    %383 = arith.maximumf %323, %379 : vector<2x32xf32>
    %cst_200 = arith.constant dense<0.000000e+00> : vector<2x32xf32>
    %384 = tpu.matmul %354, %128, %cst_200 {dimension_numbers = #tpu.dot_dimension_numbers<[1], [0], [0], [1], [0, 0, 1, 1], [], []>} : vector<2x32xf32>, vector<32x32xf32>, vector<2x32xf32> -> vector<2x32xf32>
    %cst_201 = arith.constant dense<0.000000e+00> : vector<2x32xf32>
    %385 = tpu.matmul %354, %130, %cst_201 {dimension_numbers = #tpu.dot_dimension_numbers<[1], [0], [0], [1], [0, 0, 1, 1], [], []>} : vector<2x32xf32>, vector<32x32xf32>, vector<2x32xf32> -> vector<2x32xf32>
    %cst_202 = arith.constant dense<0.000000e+00> : vector<2x32xf32>
    %386 = tpu.matmul %354, %132, %cst_202 {dimension_numbers = #tpu.dot_dimension_numbers<[1], [0], [0], [1], [0, 0, 1, 1], [], []>} : vector<2x32xf32>, vector<32x32xf32>, vector<2x32xf32> -> vector<2x32xf32>
    %cst_203 = arith.constant dense<0.000000e+00> : vector<2x32xf32>
    %387 = tpu.matmul %379, %134, %cst_203 {dimension_numbers = #tpu.dot_dimension_numbers<[1], [0], [0], [1], [0, 0, 1, 1], [], []>} : vector<2x32xf32>, vector<32x32xf32>, vector<2x32xf32> -> vector<2x32xf32>
    %cst_204 = arith.constant dense<0.000000e+00> : vector<2x32xf32>
    %388 = tpu.matmul %379, %136, %cst_204 {dimension_numbers = #tpu.dot_dimension_numbers<[1], [0], [0], [1], [0, 0, 1, 1], [], []>} : vector<2x32xf32>, vector<32x32xf32>, vector<2x32xf32> -> vector<2x32xf32>
    %cst_205 = arith.constant dense<0.000000e+00> : vector<2x32xf32>
    %389 = tpu.matmul %379, %138, %cst_205 {dimension_numbers = #tpu.dot_dimension_numbers<[1], [0], [0], [1], [0, 0, 1, 1], [], []>} : vector<2x32xf32>, vector<32x32xf32>, vector<2x32xf32> -> vector<2x32xf32>
    %390 = vector.extract_strided_slice %87 {offsets = [8, 0], sizes = [2, 32], strides = [1, 1]} : vector<16x32xf32> to vector<2x32xf32>
    %391 = arith.addf %390, %384 : vector<2x32xf32>
    %392 = arith.negf %391 : vector<2x32xf32>
    %393 = math.exp %392 : vector<2x32xf32>
    %cst_206 = arith.constant 1.000000e+00 : f32
    %394 = vector.broadcast %cst_206 : f32 to vector<2x32xf32>
    %395 = arith.addf %394, %393 : vector<2x32xf32>
    %396 = arith.divf %394, %395 : vector<2x32xf32>
    %397 = vector.extract_strided_slice %94 {offsets = [8, 0], sizes = [2, 32], strides = [1, 1]} : vector<16x32xf32> to vector<2x32xf32>
    %398 = arith.addf %397, %385 : vector<2x32xf32>
    %399 = arith.negf %398 : vector<2x32xf32>
    %400 = math.exp %399 : vector<2x32xf32>
    %cst_207 = arith.constant 1.000000e+00 : f32
    %401 = vector.broadcast %cst_207 : f32 to vector<2x32xf32>
    %402 = arith.addf %401, %400 : vector<2x32xf32>
    %403 = arith.divf %401, %402 : vector<2x32xf32>
    %404 = vector.extract_strided_slice %101 {offsets = [8, 0], sizes = [2, 32], strides = [1, 1]} : vector<16x32xf32> to vector<2x32xf32>
    %405 = vector.broadcast %124 : vector<1x32xf32> to vector<2x32xf32>
    %406 = arith.addf %386, %405 : vector<2x32xf32>
    %407 = arith.mulf %396, %406 : vector<2x32xf32>
    %408 = arith.addf %404, %407 : vector<2x32xf32>
    %409 = math.tanh %408 : vector<2x32xf32>
    %cst_208 = arith.constant 1.000000e+00 : f32
    %410 = vector.broadcast %cst_208 : f32 to vector<2x32xf32>
    %411 = arith.subf %410, %403 : vector<2x32xf32>
    %412 = arith.mulf %411, %409 : vector<2x32xf32>
    %413 = arith.mulf %403, %354 : vector<2x32xf32>
    %414 = arith.addf %412, %413 : vector<2x32xf32>
    %415 = vector.extract_strided_slice %108 {offsets = [6, 0], sizes = [2, 32], strides = [1, 1]} : vector<16x32xf32> to vector<2x32xf32>
    %416 = arith.addf %415, %387 : vector<2x32xf32>
    %417 = arith.negf %416 : vector<2x32xf32>
    %418 = math.exp %417 : vector<2x32xf32>
    %cst_209 = arith.constant 1.000000e+00 : f32
    %419 = vector.broadcast %cst_209 : f32 to vector<2x32xf32>
    %420 = arith.addf %419, %418 : vector<2x32xf32>
    %421 = arith.divf %419, %420 : vector<2x32xf32>
    %422 = vector.extract_strided_slice %115 {offsets = [6, 0], sizes = [2, 32], strides = [1, 1]} : vector<16x32xf32> to vector<2x32xf32>
    %423 = arith.addf %422, %388 : vector<2x32xf32>
    %424 = arith.negf %423 : vector<2x32xf32>
    %425 = math.exp %424 : vector<2x32xf32>
    %cst_210 = arith.constant 1.000000e+00 : f32
    %426 = vector.broadcast %cst_210 : f32 to vector<2x32xf32>
    %427 = arith.addf %426, %425 : vector<2x32xf32>
    %428 = arith.divf %426, %427 : vector<2x32xf32>
    %429 = vector.extract_strided_slice %122 {offsets = [6, 0], sizes = [2, 32], strides = [1, 1]} : vector<16x32xf32> to vector<2x32xf32>
    %430 = vector.broadcast %126 : vector<1x32xf32> to vector<2x32xf32>
    %431 = arith.addf %389, %430 : vector<2x32xf32>
    %432 = arith.mulf %421, %431 : vector<2x32xf32>
    %433 = arith.addf %429, %432 : vector<2x32xf32>
    %434 = math.tanh %433 : vector<2x32xf32>
    %cst_211 = arith.constant 1.000000e+00 : f32
    %435 = vector.broadcast %cst_211 : f32 to vector<2x32xf32>
    %436 = arith.subf %435, %428 : vector<2x32xf32>
    %437 = arith.mulf %436, %434 : vector<2x32xf32>
    %438 = arith.mulf %428, %379 : vector<2x32xf32>
    %439 = arith.addf %437, %438 : vector<2x32xf32>
    %440 = vector.extract_strided_slice %80 {offsets = [8, 0], sizes = [2, 32], strides = [1, 1]} : vector<16x32xf32> to vector<2x32xf32>
    %441 = arith.maximumf %381, %440 : vector<2x32xf32>
    %442 = arith.maximumf %382, %414 : vector<2x32xf32>
    %443 = arith.maximumf %383, %439 : vector<2x32xf32>
    %cst_212 = arith.constant dense<0.000000e+00> : vector<2x32xf32>
    %444 = tpu.matmul %414, %128, %cst_212 {dimension_numbers = #tpu.dot_dimension_numbers<[1], [0], [0], [1], [0, 0, 1, 1], [], []>} : vector<2x32xf32>, vector<32x32xf32>, vector<2x32xf32> -> vector<2x32xf32>
    %cst_213 = arith.constant dense<0.000000e+00> : vector<2x32xf32>
    %445 = tpu.matmul %414, %130, %cst_213 {dimension_numbers = #tpu.dot_dimension_numbers<[1], [0], [0], [1], [0, 0, 1, 1], [], []>} : vector<2x32xf32>, vector<32x32xf32>, vector<2x32xf32> -> vector<2x32xf32>
    %cst_214 = arith.constant dense<0.000000e+00> : vector<2x32xf32>
    %446 = tpu.matmul %414, %132, %cst_214 {dimension_numbers = #tpu.dot_dimension_numbers<[1], [0], [0], [1], [0, 0, 1, 1], [], []>} : vector<2x32xf32>, vector<32x32xf32>, vector<2x32xf32> -> vector<2x32xf32>
    %cst_215 = arith.constant dense<0.000000e+00> : vector<2x32xf32>
    %447 = tpu.matmul %439, %134, %cst_215 {dimension_numbers = #tpu.dot_dimension_numbers<[1], [0], [0], [1], [0, 0, 1, 1], [], []>} : vector<2x32xf32>, vector<32x32xf32>, vector<2x32xf32> -> vector<2x32xf32>
    %cst_216 = arith.constant dense<0.000000e+00> : vector<2x32xf32>
    %448 = tpu.matmul %439, %136, %cst_216 {dimension_numbers = #tpu.dot_dimension_numbers<[1], [0], [0], [1], [0, 0, 1, 1], [], []>} : vector<2x32xf32>, vector<32x32xf32>, vector<2x32xf32> -> vector<2x32xf32>
    %cst_217 = arith.constant dense<0.000000e+00> : vector<2x32xf32>
    %449 = tpu.matmul %439, %138, %cst_217 {dimension_numbers = #tpu.dot_dimension_numbers<[1], [0], [0], [1], [0, 0, 1, 1], [], []>} : vector<2x32xf32>, vector<32x32xf32>, vector<2x32xf32> -> vector<2x32xf32>
    %450 = vector.extract_strided_slice %87 {offsets = [10, 0], sizes = [2, 32], strides = [1, 1]} : vector<16x32xf32> to vector<2x32xf32>
    %451 = arith.addf %450, %444 : vector<2x32xf32>
    %452 = arith.negf %451 : vector<2x32xf32>
    %453 = math.exp %452 : vector<2x32xf32>
    %cst_218 = arith.constant 1.000000e+00 : f32
    %454 = vector.broadcast %cst_218 : f32 to vector<2x32xf32>
    %455 = arith.addf %454, %453 : vector<2x32xf32>
    %456 = arith.divf %454, %455 : vector<2x32xf32>
    %457 = vector.extract_strided_slice %94 {offsets = [10, 0], sizes = [2, 32], strides = [1, 1]} : vector<16x32xf32> to vector<2x32xf32>
    %458 = arith.addf %457, %445 : vector<2x32xf32>
    %459 = arith.negf %458 : vector<2x32xf32>
    %460 = math.exp %459 : vector<2x32xf32>
    %cst_219 = arith.constant 1.000000e+00 : f32
    %461 = vector.broadcast %cst_219 : f32 to vector<2x32xf32>
    %462 = arith.addf %461, %460 : vector<2x32xf32>
    %463 = arith.divf %461, %462 : vector<2x32xf32>
    %464 = vector.extract_strided_slice %101 {offsets = [10, 0], sizes = [2, 32], strides = [1, 1]} : vector<16x32xf32> to vector<2x32xf32>
    %465 = vector.broadcast %124 : vector<1x32xf32> to vector<2x32xf32>
    %466 = arith.addf %446, %465 : vector<2x32xf32>
    %467 = arith.mulf %456, %466 : vector<2x32xf32>
    %468 = arith.addf %464, %467 : vector<2x32xf32>
    %469 = math.tanh %468 : vector<2x32xf32>
    %cst_220 = arith.constant 1.000000e+00 : f32
    %470 = vector.broadcast %cst_220 : f32 to vector<2x32xf32>
    %471 = arith.subf %470, %463 : vector<2x32xf32>
    %472 = arith.mulf %471, %469 : vector<2x32xf32>
    %473 = arith.mulf %463, %414 : vector<2x32xf32>
    %474 = arith.addf %472, %473 : vector<2x32xf32>
    %475 = vector.extract_strided_slice %108 {offsets = [4, 0], sizes = [2, 32], strides = [1, 1]} : vector<16x32xf32> to vector<2x32xf32>
    %476 = arith.addf %475, %447 : vector<2x32xf32>
    %477 = arith.negf %476 : vector<2x32xf32>
    %478 = math.exp %477 : vector<2x32xf32>
    %cst_221 = arith.constant 1.000000e+00 : f32
    %479 = vector.broadcast %cst_221 : f32 to vector<2x32xf32>
    %480 = arith.addf %479, %478 : vector<2x32xf32>
    %481 = arith.divf %479, %480 : vector<2x32xf32>
    %482 = vector.extract_strided_slice %115 {offsets = [4, 0], sizes = [2, 32], strides = [1, 1]} : vector<16x32xf32> to vector<2x32xf32>
    %483 = arith.addf %482, %448 : vector<2x32xf32>
    %484 = arith.negf %483 : vector<2x32xf32>
    %485 = math.exp %484 : vector<2x32xf32>
    %cst_222 = arith.constant 1.000000e+00 : f32
    %486 = vector.broadcast %cst_222 : f32 to vector<2x32xf32>
    %487 = arith.addf %486, %485 : vector<2x32xf32>
    %488 = arith.divf %486, %487 : vector<2x32xf32>
    %489 = vector.extract_strided_slice %122 {offsets = [4, 0], sizes = [2, 32], strides = [1, 1]} : vector<16x32xf32> to vector<2x32xf32>
    %490 = vector.broadcast %126 : vector<1x32xf32> to vector<2x32xf32>
    %491 = arith.addf %449, %490 : vector<2x32xf32>
    %492 = arith.mulf %481, %491 : vector<2x32xf32>
    %493 = arith.addf %489, %492 : vector<2x32xf32>
    %494 = math.tanh %493 : vector<2x32xf32>
    %cst_223 = arith.constant 1.000000e+00 : f32
    %495 = vector.broadcast %cst_223 : f32 to vector<2x32xf32>
    %496 = arith.subf %495, %488 : vector<2x32xf32>
    %497 = arith.mulf %496, %494 : vector<2x32xf32>
    %498 = arith.mulf %488, %439 : vector<2x32xf32>
    %499 = arith.addf %497, %498 : vector<2x32xf32>
    %500 = vector.extract_strided_slice %80 {offsets = [10, 0], sizes = [2, 32], strides = [1, 1]} : vector<16x32xf32> to vector<2x32xf32>
    %501 = arith.maximumf %441, %500 : vector<2x32xf32>
    %502 = arith.maximumf %442, %474 : vector<2x32xf32>
    %503 = arith.maximumf %443, %499 : vector<2x32xf32>
    %cst_224 = arith.constant dense<0.000000e+00> : vector<2x32xf32>
    %504 = tpu.matmul %474, %128, %cst_224 {dimension_numbers = #tpu.dot_dimension_numbers<[1], [0], [0], [1], [0, 0, 1, 1], [], []>} : vector<2x32xf32>, vector<32x32xf32>, vector<2x32xf32> -> vector<2x32xf32>
    %cst_225 = arith.constant dense<0.000000e+00> : vector<2x32xf32>
    %505 = tpu.matmul %474, %130, %cst_225 {dimension_numbers = #tpu.dot_dimension_numbers<[1], [0], [0], [1], [0, 0, 1, 1], [], []>} : vector<2x32xf32>, vector<32x32xf32>, vector<2x32xf32> -> vector<2x32xf32>
    %cst_226 = arith.constant dense<0.000000e+00> : vector<2x32xf32>
    %506 = tpu.matmul %474, %132, %cst_226 {dimension_numbers = #tpu.dot_dimension_numbers<[1], [0], [0], [1], [0, 0, 1, 1], [], []>} : vector<2x32xf32>, vector<32x32xf32>, vector<2x32xf32> -> vector<2x32xf32>
    %cst_227 = arith.constant dense<0.000000e+00> : vector<2x32xf32>
    %507 = tpu.matmul %499, %134, %cst_227 {dimension_numbers = #tpu.dot_dimension_numbers<[1], [0], [0], [1], [0, 0, 1, 1], [], []>} : vector<2x32xf32>, vector<32x32xf32>, vector<2x32xf32> -> vector<2x32xf32>
    %cst_228 = arith.constant dense<0.000000e+00> : vector<2x32xf32>
    %508 = tpu.matmul %499, %136, %cst_228 {dimension_numbers = #tpu.dot_dimension_numbers<[1], [0], [0], [1], [0, 0, 1, 1], [], []>} : vector<2x32xf32>, vector<32x32xf32>, vector<2x32xf32> -> vector<2x32xf32>
    %cst_229 = arith.constant dense<0.000000e+00> : vector<2x32xf32>
    %509 = tpu.matmul %499, %138, %cst_229 {dimension_numbers = #tpu.dot_dimension_numbers<[1], [0], [0], [1], [0, 0, 1, 1], [], []>} : vector<2x32xf32>, vector<32x32xf32>, vector<2x32xf32> -> vector<2x32xf32>
    %510 = vector.extract_strided_slice %87 {offsets = [12, 0], sizes = [2, 32], strides = [1, 1]} : vector<16x32xf32> to vector<2x32xf32>
    %511 = arith.addf %510, %504 : vector<2x32xf32>
    %512 = arith.negf %511 : vector<2x32xf32>
    %513 = math.exp %512 : vector<2x32xf32>
    %cst_230 = arith.constant 1.000000e+00 : f32
    %514 = vector.broadcast %cst_230 : f32 to vector<2x32xf32>
    %515 = arith.addf %514, %513 : vector<2x32xf32>
    %516 = arith.divf %514, %515 : vector<2x32xf32>
    %517 = vector.extract_strided_slice %94 {offsets = [12, 0], sizes = [2, 32], strides = [1, 1]} : vector<16x32xf32> to vector<2x32xf32>
    %518 = arith.addf %517, %505 : vector<2x32xf32>
    %519 = arith.negf %518 : vector<2x32xf32>
    %520 = math.exp %519 : vector<2x32xf32>
    %cst_231 = arith.constant 1.000000e+00 : f32
    %521 = vector.broadcast %cst_231 : f32 to vector<2x32xf32>
    %522 = arith.addf %521, %520 : vector<2x32xf32>
    %523 = arith.divf %521, %522 : vector<2x32xf32>
    %524 = vector.extract_strided_slice %101 {offsets = [12, 0], sizes = [2, 32], strides = [1, 1]} : vector<16x32xf32> to vector<2x32xf32>
    %525 = vector.broadcast %124 : vector<1x32xf32> to vector<2x32xf32>
    %526 = arith.addf %506, %525 : vector<2x32xf32>
    %527 = arith.mulf %516, %526 : vector<2x32xf32>
    %528 = arith.addf %524, %527 : vector<2x32xf32>
    %529 = math.tanh %528 : vector<2x32xf32>
    %cst_232 = arith.constant 1.000000e+00 : f32
    %530 = vector.broadcast %cst_232 : f32 to vector<2x32xf32>
    %531 = arith.subf %530, %523 : vector<2x32xf32>
    %532 = arith.mulf %531, %529 : vector<2x32xf32>
    %533 = arith.mulf %523, %474 : vector<2x32xf32>
    %534 = arith.addf %532, %533 : vector<2x32xf32>
    %535 = vector.extract_strided_slice %108 {offsets = [2, 0], sizes = [2, 32], strides = [1, 1]} : vector<16x32xf32> to vector<2x32xf32>
    %536 = arith.addf %535, %507 : vector<2x32xf32>
    %537 = arith.negf %536 : vector<2x32xf32>
    %538 = math.exp %537 : vector<2x32xf32>
    %cst_233 = arith.constant 1.000000e+00 : f32
    %539 = vector.broadcast %cst_233 : f32 to vector<2x32xf32>
    %540 = arith.addf %539, %538 : vector<2x32xf32>
    %541 = arith.divf %539, %540 : vector<2x32xf32>
    %542 = vector.extract_strided_slice %115 {offsets = [2, 0], sizes = [2, 32], strides = [1, 1]} : vector<16x32xf32> to vector<2x32xf32>
    %543 = arith.addf %542, %508 : vector<2x32xf32>
    %544 = arith.negf %543 : vector<2x32xf32>
    %545 = math.exp %544 : vector<2x32xf32>
    %cst_234 = arith.constant 1.000000e+00 : f32
    %546 = vector.broadcast %cst_234 : f32 to vector<2x32xf32>
    %547 = arith.addf %546, %545 : vector<2x32xf32>
    %548 = arith.divf %546, %547 : vector<2x32xf32>
    %549 = vector.extract_strided_slice %122 {offsets = [2, 0], sizes = [2, 32], strides = [1, 1]} : vector<16x32xf32> to vector<2x32xf32>
    %550 = vector.broadcast %126 : vector<1x32xf32> to vector<2x32xf32>
    %551 = arith.addf %509, %550 : vector<2x32xf32>
    %552 = arith.mulf %541, %551 : vector<2x32xf32>
    %553 = arith.addf %549, %552 : vector<2x32xf32>
    %554 = math.tanh %553 : vector<2x32xf32>
    %cst_235 = arith.constant 1.000000e+00 : f32
    %555 = vector.broadcast %cst_235 : f32 to vector<2x32xf32>
    %556 = arith.subf %555, %548 : vector<2x32xf32>
    %557 = arith.mulf %556, %554 : vector<2x32xf32>
    %558 = arith.mulf %548, %499 : vector<2x32xf32>
    %559 = arith.addf %557, %558 : vector<2x32xf32>
    %560 = vector.extract_strided_slice %80 {offsets = [12, 0], sizes = [2, 32], strides = [1, 1]} : vector<16x32xf32> to vector<2x32xf32>
    %561 = arith.maximumf %501, %560 : vector<2x32xf32>
    %562 = arith.maximumf %502, %534 : vector<2x32xf32>
    %563 = arith.maximumf %503, %559 : vector<2x32xf32>
    %cst_236 = arith.constant dense<0.000000e+00> : vector<2x32xf32>
    %564 = tpu.matmul %534, %128, %cst_236 {dimension_numbers = #tpu.dot_dimension_numbers<[1], [0], [0], [1], [0, 0, 1, 1], [], []>} : vector<2x32xf32>, vector<32x32xf32>, vector<2x32xf32> -> vector<2x32xf32>
    %cst_237 = arith.constant dense<0.000000e+00> : vector<2x32xf32>
    %565 = tpu.matmul %534, %130, %cst_237 {dimension_numbers = #tpu.dot_dimension_numbers<[1], [0], [0], [1], [0, 0, 1, 1], [], []>} : vector<2x32xf32>, vector<32x32xf32>, vector<2x32xf32> -> vector<2x32xf32>
    %cst_238 = arith.constant dense<0.000000e+00> : vector<2x32xf32>
    %566 = tpu.matmul %534, %132, %cst_238 {dimension_numbers = #tpu.dot_dimension_numbers<[1], [0], [0], [1], [0, 0, 1, 1], [], []>} : vector<2x32xf32>, vector<32x32xf32>, vector<2x32xf32> -> vector<2x32xf32>
    %cst_239 = arith.constant dense<0.000000e+00> : vector<2x32xf32>
    %567 = tpu.matmul %559, %134, %cst_239 {dimension_numbers = #tpu.dot_dimension_numbers<[1], [0], [0], [1], [0, 0, 1, 1], [], []>} : vector<2x32xf32>, vector<32x32xf32>, vector<2x32xf32> -> vector<2x32xf32>
    %cst_240 = arith.constant dense<0.000000e+00> : vector<2x32xf32>
    %568 = tpu.matmul %559, %136, %cst_240 {dimension_numbers = #tpu.dot_dimension_numbers<[1], [0], [0], [1], [0, 0, 1, 1], [], []>} : vector<2x32xf32>, vector<32x32xf32>, vector<2x32xf32> -> vector<2x32xf32>
    %cst_241 = arith.constant dense<0.000000e+00> : vector<2x32xf32>
    %569 = tpu.matmul %559, %138, %cst_241 {dimension_numbers = #tpu.dot_dimension_numbers<[1], [0], [0], [1], [0, 0, 1, 1], [], []>} : vector<2x32xf32>, vector<32x32xf32>, vector<2x32xf32> -> vector<2x32xf32>
    %570 = vector.extract_strided_slice %87 {offsets = [14, 0], sizes = [2, 32], strides = [1, 1]} : vector<16x32xf32> to vector<2x32xf32>
    %571 = arith.addf %570, %564 : vector<2x32xf32>
    %572 = arith.negf %571 : vector<2x32xf32>
    %573 = math.exp %572 : vector<2x32xf32>
    %cst_242 = arith.constant 1.000000e+00 : f32
    %574 = vector.broadcast %cst_242 : f32 to vector<2x32xf32>
    %575 = arith.addf %574, %573 : vector<2x32xf32>
    %576 = arith.divf %574, %575 : vector<2x32xf32>
    %577 = vector.extract_strided_slice %94 {offsets = [14, 0], sizes = [2, 32], strides = [1, 1]} : vector<16x32xf32> to vector<2x32xf32>
    %578 = arith.addf %577, %565 : vector<2x32xf32>
    %579 = arith.negf %578 : vector<2x32xf32>
    %580 = math.exp %579 : vector<2x32xf32>
    %cst_243 = arith.constant 1.000000e+00 : f32
    %581 = vector.broadcast %cst_243 : f32 to vector<2x32xf32>
    %582 = arith.addf %581, %580 : vector<2x32xf32>
    %583 = arith.divf %581, %582 : vector<2x32xf32>
    %584 = vector.extract_strided_slice %101 {offsets = [14, 0], sizes = [2, 32], strides = [1, 1]} : vector<16x32xf32> to vector<2x32xf32>
    %585 = vector.broadcast %124 : vector<1x32xf32> to vector<2x32xf32>
    %586 = arith.addf %566, %585 : vector<2x32xf32>
    %587 = arith.mulf %576, %586 : vector<2x32xf32>
    %588 = arith.addf %584, %587 : vector<2x32xf32>
    %589 = math.tanh %588 : vector<2x32xf32>
    %cst_244 = arith.constant 1.000000e+00 : f32
    %590 = vector.broadcast %cst_244 : f32 to vector<2x32xf32>
    %591 = arith.subf %590, %583 : vector<2x32xf32>
    %592 = arith.mulf %591, %589 : vector<2x32xf32>
    %593 = arith.mulf %583, %534 : vector<2x32xf32>
    %594 = arith.addf %592, %593 : vector<2x32xf32>
    %595 = vector.extract_strided_slice %108 {offsets = [0, 0], sizes = [2, 32], strides = [1, 1]} : vector<16x32xf32> to vector<2x32xf32>
    %596 = arith.addf %595, %567 : vector<2x32xf32>
    %597 = arith.negf %596 : vector<2x32xf32>
    %598 = math.exp %597 : vector<2x32xf32>
    %cst_245 = arith.constant 1.000000e+00 : f32
    %599 = vector.broadcast %cst_245 : f32 to vector<2x32xf32>
    %600 = arith.addf %599, %598 : vector<2x32xf32>
    %601 = arith.divf %599, %600 : vector<2x32xf32>
    %602 = vector.extract_strided_slice %115 {offsets = [0, 0], sizes = [2, 32], strides = [1, 1]} : vector<16x32xf32> to vector<2x32xf32>
    %603 = arith.addf %602, %568 : vector<2x32xf32>
    %604 = arith.negf %603 : vector<2x32xf32>
    %605 = math.exp %604 : vector<2x32xf32>
    %cst_246 = arith.constant 1.000000e+00 : f32
    %606 = vector.broadcast %cst_246 : f32 to vector<2x32xf32>
    %607 = arith.addf %606, %605 : vector<2x32xf32>
    %608 = arith.divf %606, %607 : vector<2x32xf32>
    %609 = vector.extract_strided_slice %122 {offsets = [0, 0], sizes = [2, 32], strides = [1, 1]} : vector<16x32xf32> to vector<2x32xf32>
    %610 = vector.broadcast %126 : vector<1x32xf32> to vector<2x32xf32>
    %611 = arith.addf %569, %610 : vector<2x32xf32>
    %612 = arith.mulf %601, %611 : vector<2x32xf32>
    %613 = arith.addf %609, %612 : vector<2x32xf32>
    %614 = math.tanh %613 : vector<2x32xf32>
    %cst_247 = arith.constant 1.000000e+00 : f32
    %615 = vector.broadcast %cst_247 : f32 to vector<2x32xf32>
    %616 = arith.subf %615, %608 : vector<2x32xf32>
    %617 = arith.mulf %616, %614 : vector<2x32xf32>
    %618 = arith.mulf %608, %559 : vector<2x32xf32>
    %619 = arith.addf %617, %618 : vector<2x32xf32>
    %620 = vector.extract_strided_slice %80 {offsets = [14, 0], sizes = [2, 32], strides = [1, 1]} : vector<16x32xf32> to vector<2x32xf32>
    %621 = arith.maximumf %561, %620 : vector<2x32xf32>
    %622 = arith.maximumf %562, %594 : vector<2x32xf32>
    %623 = arith.maximumf %563, %619 : vector<2x32xf32>
    %c0_248 = arith.constant 0 : index
    %c0_249 = arith.constant 0 : index
    %624 = vector.load %arg8[%c0_248, %c0_249] : memref<32x4xf32, #tpu.memory_space<vmem>>, vector<32x4xf32>
    %cst_250 = arith.constant dense<0.000000e+00> : vector<2x4xf32>
    %625 = tpu.matmul %621, %624, %cst_250 {dimension_numbers = #tpu.dot_dimension_numbers<[1], [0], [0], [1], [0, 0, 1, 1], [], []>} : vector<2x32xf32>, vector<32x4xf32>, vector<2x4xf32> -> vector<2x4xf32>
    %c0_251 = arith.constant 0 : index
    %c0_252 = arith.constant 0 : index
    %626 = vector.load %arg9[%c0_251, %c0_252] : memref<32x4xf32, #tpu.memory_space<vmem>>, vector<32x4xf32>
    %cst_253 = arith.constant dense<0.000000e+00> : vector<2x4xf32>
    %627 = tpu.matmul %622, %626, %cst_253 {dimension_numbers = #tpu.dot_dimension_numbers<[1], [0], [0], [1], [0, 0, 1, 1], [], []>} : vector<2x32xf32>, vector<32x4xf32>, vector<2x4xf32> -> vector<2x4xf32>
    %628 = arith.addf %625, %627 : vector<2x4xf32>
    %c0_254 = arith.constant 0 : index
    %c0_255 = arith.constant 0 : index
    %629 = vector.load %arg10[%c0_254, %c0_255] : memref<32x4xf32, #tpu.memory_space<vmem>>, vector<32x4xf32>
    %cst_256 = arith.constant dense<0.000000e+00> : vector<2x4xf32>
    %630 = tpu.matmul %623, %629, %cst_256 {dimension_numbers = #tpu.dot_dimension_numbers<[1], [0], [0], [1], [0, 0, 1, 1], [], []>} : vector<2x32xf32>, vector<32x4xf32>, vector<2x4xf32> -> vector<2x4xf32>
    %631 = arith.addf %628, %630 : vector<2x4xf32>
    %c0_257 = arith.constant 0 : index
    %c0_258 = arith.constant 0 : index
    %632 = vector.load %arg11[%c0_257, %c0_258] : memref<1x4xf32, #tpu.memory_space<vmem>>, vector<1x4xf32>
    %633 = vector.broadcast %632 : vector<1x4xf32> to vector<2x4xf32>
    %634 = arith.addf %631, %633 : vector<2x4xf32>
    %c0_259 = arith.constant 0 : index
    %c0_260 = arith.constant 0 : index
    %635 = vector.load %arg12[%c0_259, %c0_260] : memref<2x4xf32, #tpu.memory_space<vmem>>, vector<2x4xf32>
    tpu.vector_store %arg12[%c0_259, %c0_260], %634 {strides = array<i32>} : memref<2x4xf32, #tpu.memory_space<vmem>>, vector<2x4xf32>,
    return
  }
}

</mosaic_0001>

<bundles_post_ra>
// kernel: rcnn_forward.1
= control target key start
LH: loop header
LB: loop body
LE: loop exit
PB: predicated region body
PF: predicated region fallthrough
CT: control target
= control target key end

     0   :  { %17 = vsyncpa [#allocation6], 0  ;;  %s3916_s0 = inlined_call_operand.vmem [shape: s32[2,8], index: 0, kind: input, shape index: {}]   ;;  %s3917_s1 = inlined_call_operand.vmem [shape: f32[50,1,32], index: 1, kind: input, shape index: {}]   ;;  %s3918_s2 = inlined_call_operand.vmem [shape: f32[3,32,32], index: 2, kind: input, shape index: {}]   ;;  %s3919_s3 = inlined_call_operand.hbm [shape: f32[3,32,32], index: 3, kind: input, shape index: {}]   ;;  %s3920_s4 = inlined_call_operand.vmem [shape: f32[4,1,32], index: 4, kind: input, shape index: {}]   ;;  %s3921_s5 = inlined_call_operand.hbm [shape: f32[3,32,32], index: 5, kind: input, shape index: {}]   ;;  %s3922_s6 = inlined_call_operand.hbm [shape: f32[3,32,32], index: 6, kind: input, shape index: {}]   ;;  %s3923_s7 = inlined_call_operand.vmem [shape: f32[4,1,32], index: 7, kind: input, shape index: {}]   ;;  %s3924_s8 = inlined_call_operand.vmem [shape: f32[32,4], index: 8, kind: input, shape index: {}]   ;;  %s3925_s9 = inlined_call_operand.vmem [shape: f32[32,4], index: 9, kind: input, shape index: {}]   ;;  %s3926_s10 = inlined_call_operand.vmem [shape: f32[32,4], index: 10, kind: input, shape index: {}]   ;;  %s3927_s11 = inlined_call_operand.vmem [shape: f32[1,4], index: 11, kind: input, shape index: {}]   ;;  %s3928_s12 = inlined_call_operand.hbm [shape: f32[2,4], index: 12, kind: output, shape index: {}]  }
   0x1   :  { %18 = vsyncpa [#allocation4], 0 }
   0x2   :  { %19 = vsyncpa [#allocation9], 0 }
   0x3   :  { %20 = vsyncpa [#allocation5], 0  ;;  %s53_s23 = sshll.u32 %s3921_s5, 4  ;;  %s2927_s24 = smov [#allocation8]   ;;  %s54_s23 = int_to_ptr.hbm [resolvable:$true] %s53_s23 }
   0x4   :  { %s55_s25 = sshll.u32 %s2927_s24, 4  ;;  %s26_s28 = sshll.u32 %s3916_s0, 4  ;;  %s56_s25 = int_to_ptr.vmem [resolvable:$true] %s55_s25  ;;  %s27_s28 = int_to_ptr.vmem [resolvable:$true] %s26_s28 }
   0x5   :  { %s2928_s29 = smov 128   ;;  %s2929_s30 = smov 8  }
   0x6   :  { %61 = dma.hbm_to_vmem [thread:$0]  %s54_s23, 1536, %s56_s25, [#allocation9], %s2928_s29, %s2928_s29, %s2929_s30  }
   0x7   :  { %s2930_s13 = smov [#allocation3]   ;;  %s38_s16 = sshll.u32 %s3919_s3, 4  ;;  %s39_s16 = int_to_ptr.hbm [resolvable:$true] %s38_s16 }
   0x8   :  { %29 = dma.vmem_to_smem %s27_s28, 32, %s2930_s13, [#allocation6]  }
   0x9   :  { %s2931_s5 = smov [#allocation7]   ;;  %s66_s20 = sshll.u32 %s3922_s6, 4  ;;  %s67_s20 = int_to_ptr.hbm [resolvable:$true] %s66_s20 }
   0xa   :  { %s40_s17 = sshll.u32 %s2931_s5, 4  ;;  %s2932_s0 = smov [#allocation10]   ;;  %s41_s17 = int_to_ptr.vmem [resolvable:$true] %s40_s17 }
   0xb   :  { %46 = dma.hbm_to_vmem [thread:$0]  %s39_s16, 1536, %s41_s17, [#allocation4], %s2928_s29, %s2928_s29, %s2929_s30  }
   0xc   :  { %s68_s21 = sshll.u32 %s2932_s0, 4  ;;  %s69_s21 = int_to_ptr.vmem [resolvable:$true] %s68_s21 }
   0xd   :  { %74 = dma.hbm_to_vmem [thread:$0]  %s67_s20, 1536, %s69_s21, [#allocation9], %s2928_s29, %s2928_s29, %s2929_s30  }
   0xe   :  { %2919 = dma.done.wait [#allocation6], 32  }
   0xf   :  { %2920 = vsyncadd [#allocation6], 4294967264 }
  0x10   :  { %2921 = dma.done.wait [#allocation4], 1536  }
  0x11   :  { %2922 = vsyncadd [#allocation4], 4294965760 }
  0x12   :  { %2923 = dma.done.wait [#allocation9], 3072  }
  0x13   :  { %2924 = vsyncadd [#allocation9], 4294964224 }
  0x14   :  { %101 = sfence }
  0x15   :  { %v2516_v0 = vld [vmem:[%s3918_s2 + $0x58] sm:$0xff]  ;;  %v277_v1 = vld [vmem:[#allocation8 + $0x18] sm:$0xff]  ;;  %v2515_v2 = vld [vmem:[%s3918_s2 + $0x50] sm:$0xff]  ;;  %s3018_s24 = sld [smem:[#allocation3]]  ;;  %vm105_vm0 = vcmask 253952   ;;  %vm177_vm1 = vcmask 261120  }
  0x16   :  { %262 = vmatpush.msra.mxu2 %v2516_v0  ;;  %293 = vmatpush.msra.mxu3 %v277_v1  ;;  %v276_v3 = vld [vmem:[#allocation8 + $0x10] sm:$0xff]  ;;  %s3020_s25 = sld [smem:[#allocation3 + $0x80]]  ;;  %v2514_v4 = vld [vmem:[%s3918_s2 + $0x48] sm:$0xff]  ;;  %v275_v5 = vld [vmem:[#allocation8 + $0x8] sm:$0xff]  ;;  %v2933_v1 = vmov 0.0  }
  0x17   :  { %v173_v6 = vld [vmem:[%s3918_s2 + $0x18] sm:$0xff]  ;;  %s3028_s30 = sld [smem:[#allocation3 + $0x1]]  ;;  %v172_v7 = vld [vmem:[%s3918_s2 + $0x10] sm:$0xff]  ;;  %v2513_v8 = vld [vmem:[%s3918_s2 + $0x40] sm:$0xff] }
  0x18   :  { %263 = vmatpush.msra.mxu2 %v2515_v2  ;;  %294 = vmatpush.msra.mxu3 %v276_v3  ;;  %s3030_s13 = sld [smem:[#allocation3 + $0x81]]  ;;  %v274_v9 = vld [vmem:[#allocation8] sm:$0xff]  ;;  %v3040_v10 = vld [vmem:[#allocation7 + $0x18] sm:$0xff]  ;;  %v3047_v12 = vld [vmem:[#allocation7 + $0x10] sm:$0xff] }
  0x19   :  { %196 = vmatpush.msra.mxu0 %v173_v6  ;;  %s3038_s17 = sld [smem:[#allocation3 + $0x2]]  ;;  %v171_v11 = vld [vmem:[%s3918_s2 + $0x8] sm:$0xff]  ;;  %v170_v13 = vld [vmem:[%s3918_s2] sm:$0xff]  ;;  %v2509_v16 = vld [vmem:[%s3918_s2 + $0x38] sm:$0xff] }
  0x1a   :  { %264 = vmatpush.msra.mxu2 %v2514_v4  ;;  %295 = vmatpush.msra.mxu3 %v275_v5  ;;  %s3042_s18 = sld [smem:[#allocation3 + $0x82]]  ;;  %v3058_v14 = vld [vmem:[#allocation7 + $0x38] sm:$0xff]  ;;  %v3060_v15 = vld [vmem:[#allocation7 + $0x30] sm:$0xff]  ;;  %v3071_v18 = vld [vmem:[#allocation7 + $0x8] sm:$0xff] }
  0x1b   :  { %s103_s23 = scalar_lea.vmem %s3917_s1, %s3018_s24  ;;  %s3056_s6 = sld [smem:[#allocation3 + $0x3]]  ;;  %197 = vmatpush.msra.mxu0 %v172_v7  ;;  %v2508_v19 = vld [vmem:[%s3918_s2 + $0x30] sm:$0xff]  ;;  %v310_v20 = vld [vmem:[#allocation8 + $0x38] sm:$0xff]  ;;  %v3084_v22 = vld [vmem:[#allocation7 + $0x28] sm:$0xff]  ;;  %229 = vmatpush.msra.mxu1 %v2509_v16 }
  0x1c   :  { %265 = vmatpush.msra.mxu2 %v2513_v8  ;;  %296 = vmatpush.msra.mxu3 %v274_v9  ;;  %v104_v17 = vld [vmem:[%s103_s23] sm:$0x1]  ;;  %s108_s24 = scalar_lea.vmem %s3917_s1, %s3020_s25  ;;  %s3069_s14 = sld [smem:[#allocation3 + $0x83]]  ;;  %v3094_v24 = vld [vmem:[#allocation7] sm:$0xff]  ;;  %v2507_v33 = vld [vmem:[%s3918_s2 + $0x28] sm:$0xff] }
  0x1d   :  { %106 = vst.msk [vmem:[#allocation2] sm:$0x1] %vm105_vm0, %v104_v17  ;;  %v109_v21 = vld [vmem:[%s108_s24] sm:$0x1]  ;;  %s112_s20 = scalar_lea.vmem %s3917_s1, %s3028_s30  ;;  %198 = vmatpush.msra.mxu0 %v171_v11  ;;  %s3082_s25 = sld [smem:[#allocation3 + $0x4]]  ;;  %v3104_v26 = vld [vmem:[#allocation7 + $0x20] sm:$0xff]  ;;  %230 = vmatpush.msra.mxu1 %v2508_v19 }
  0x1e   :  { %417 = vmatpush.msrb.mxu2 %v3040_v10  ;;  %110 = vst.msk [vmem:[#allocation2 + $0x1] sm:$0x1] %vm105_vm0, %v109_v21  ;;  %v113_v23 = vld [vmem:[%s112_s20] sm:$0x1]  ;;  %s116_s3 = scalar_lea.vmem %s3917_s1, %s3030_s13  ;;  %s3091_s22 = sld [smem:[#allocation3 + $0x84]]  ;;  %437 = vmatpush.msrb.mxu3 %v3058_v14  ;;  %v308_v39 = vld [vmem:[#allocation8 + $0x28] sm:$0xff] }
  0x1f   :  { %114 = vst.msk [vmem:[#allocation2 + $0x2] sm:$0x1] %vm105_vm0, %v113_v23  ;;  %v117_v25 = vld [vmem:[%s116_s3] sm:$0x1]  ;;  %s120_s26 = scalar_lea.vmem %s3917_s1, %s3038_s17  ;;  %199 = vmatpush.msra.mxu0 %v170_v13  ;;  %s3102_s27 = sld [smem:[#allocation3 + $0x5]]  ;;  %231 = vmatpush.msra.mxu1 %v2507_v33  ;;  %v307_v41 = vld [vmem:[#allocation8 + $0x20] sm:$0xff] }
  0x20   :  { %418 = vmatpush.msrb.mxu2 %v3047_v12  ;;  %118 = vst.msk [vmem:[#allocation2 + $0x3] sm:$0x1] %vm105_vm0, %v117_v25  ;;  %v121_v27 = vld [vmem:[%s120_s26] sm:$0x1]  ;;  %s124_s29 = scalar_lea.vmem %s3917_s1, %s3042_s18  ;;  %s3111_s24 = sld [smem:[#allocation3 + $0x85]]  ;;  %438 = vmatpush.msrb.mxu3 %v3060_v15  ;;  %v3182_v43 = vld [vmem:[#allocation10 + $0x18] sm:$0xff] }
  0x21   :  { %122 = vst.msk [vmem:[#allocation2 + $0x4] sm:$0x1] %vm105_vm0, %v121_v27  ;;  %v125_v28 = vld [vmem:[%s124_s29] sm:$0x1]  ;;  %s128_s16 = scalar_lea.vmem %s3917_s1, %s3056_s6  ;;  %s3119_s5 = sld [smem:[#allocation3 + $0x6]]  ;;  %326 = vmatpush.msrb.mxu0 %v310_v20  ;;  %v3185_v46 = vld [vmem:[#allocation10 + $0x38] sm:$0xff] }
  0x22   :  { %419 = vmatpush.msrb.mxu2 %v3071_v18  ;;  %126 = vst.msk [vmem:[#allocation2 + $0x5] sm:$0x1] %vm105_vm0, %v125_v28  ;;  %v129_v29 = vld [vmem:[%s128_s16] sm:$0x1]  ;;  %s132_s20 = scalar_lea.vmem %s3917_s1, %s3069_s14  ;;  %s3127_s0 = sld [smem:[#allocation3 + $0x86]]  ;;  %439 = vmatpush.msrb.mxu3 %v3084_v22  ;;  %v343_v48 = vld [vmem:[#allocation8 + $0x58] sm:$0xff] }
  0x23   :  { %130 = vst.msk [vmem:[#allocation2 + $0x6] sm:$0x1] %vm105_vm0, %v129_v29  ;;  %v133_v30 = vld [vmem:[%s132_s20] sm:$0x1]  ;;  %s136_s3 = scalar_lea.vmem %s3917_s1, %s3082_s25  ;;  %s3135_s30 = sld [smem:[#allocation3 + $0x7]]  ;;  %v3196_v50 = vld [vmem:[#allocation7 + $0x58] sm:$0xff] }
  0x24   :  { %420 = vmatpush.msrb.mxu2 %v3094_v24  ;;  %134 = vst.msk [vmem:[#allocation2 + $0x7] sm:$0x1] %vm105_vm0, %v133_v30  ;;  %v137_v31 = vld [vmem:[%s136_s3] sm:$0x1]  ;;  %s140_s26 = scalar_lea.vmem %s3917_s1, %s3091_s22  ;;  %s3143_s13 = sld [smem:[#allocation3 + $0x87]]  ;;  %440 = vmatpush.msrb.mxu3 %v3104_v26  ;;  %v3200_v51 = vld [vmem:[#allocation10 + $0x8] sm:$0xff] }
  0x25   :  { %138 = vst.msk [vmem:[#allocation2 + $0x8] sm:$0x1] %vm105_vm0, %v137_v31  ;;  %v141_v32 = vld [vmem:[%s140_s26] sm:$0x1]  ;;  %s144_s29 = scalar_lea.vmem %s3917_s1, %s3102_s27  ;;  %v3203_v53 = vld [vmem:[#allocation10 + $0x28] sm:$0xff]  ;;  %v3205_v54 = vld [vmem:[#allocation10] sm:$0xff] }
  0x26   :  { %142 = vst.msk [vmem:[#allocation2 + $0x9] sm:$0x1] %vm105_vm0, %v141_v32  ;;  %v145_v34 = vld [vmem:[%s144_s29] sm:$0x1]  ;;  %s148_s18 = scalar_lea.vmem %s3917_s1, %s3111_s24  ;;  %v3210_v56 = vld [vmem:[#allocation10 + $0x20] sm:$0xff]  ;;  %v341_v57 = vld [vmem:[#allocation8 + $0x48] sm:$0xff] }
  0x27   :  { %v309_v35 = vld [vmem:[#allocation8 + $0x30] sm:$0xff]  ;;  %146 = vst.msk [vmem:[#allocation2 + $0xa] sm:$0x1] %vm105_vm0, %v145_v34  ;;  %s152_s27 = scalar_lea.vmem %s3917_s1, %s3119_s5  ;;  %v3217_v59 = vld [vmem:[#allocation7 + $0x48] sm:$0xff]  ;;  %v340_v60 = vld [vmem:[#allocation8 + $0x40] sm:$0xff]  ;;  %s2460_s23 = sshll.u32 %s3928_s12, 4  ;;  %s2461_s23 = int_to_ptr.hbm [resolvable:$true] %s2460_s23 }
  0x28   :  { %v149_v36 = vld [vmem:[%s148_s18] sm:$0x1]  ;;  %327 = vmatpush.msrb.mxu0 %v309_v35  ;;  %s156_s14 = scalar_lea.vmem %s3917_s1, %s3127_s0  ;;  %v3223_v61 = vld [vmem:[#allocation10 + $0x58] sm:$0xff]  ;;  %v3225_v62 = vld [vmem:[#allocation7 + $0x40] sm:$0xff] }
  0x29   :  { %v2506_v37 = vld [vmem:[%s3918_s2 + $0x20] sm:$0xff]  ;;  %150 = vst.msk [vmem:[#allocation2 + $0xb] sm:$0x1] %vm105_vm0, %v149_v36  ;;  %s160_s26 = scalar_lea.vmem %s3917_s1, %s3135_s30  ;;  %v3234_v0 = vld [vmem:[#allocation10 + $0x48] sm:$0xff]  ;;  %v3236_v2 = vld [vmem:[#allocation10 + $0x40] sm:$0xff] }
  0x2a   :  { %v153_v38 = vld [vmem:[%s152_s27] sm:$0x1]  ;;  %232 = vmatpush.msra.mxu1 %v2506_v37  ;;  %328 = vmatpush.msrb.mxu0 %v308_v39  ;;  %s164_s28 = scalar_lea.vmem %s3917_s1, %s3143_s13  ;;  %v2617_v13 = vld [vmem:[%s3920_s4 + $0x1] ss:$0 sm:$0xff]  ;;  %v3296_v20 = vld [vmem:[%s3920_s4 + $0x2] ss:$0 sm:$0xff] }
  0x2b   :  { %154 = vst.msk [vmem:[#allocation2 + $0xc] sm:$0x1] %vm105_vm0, %v153_v38  ;;  %v157_v40 = vld [vmem:[%s156_s14] sm:$0x1]  ;;  %v2618_v25 = vld [vmem:[%s3923_s7 + $0x1] ss:$0 sm:$0xff] }
  0x2c   :  { %158 = vst.msk [vmem:[#allocation2 + $0xd] sm:$0x1] %vm105_vm0, %v157_v40  ;;  %v161_v42 = vld [vmem:[%s160_s26] sm:$0x1]  ;;  %329 = vmatpush.msrb.mxu0 %v307_v41  ;;  %359 = vmatpush.msrb.mxu1 %v343_v48  ;;  %v3307_v28 = vld [vmem:[%s3923_s7 + $0x2] ss:$0 sm:$0xff] }
  0x2d   :  { %v167_v44 = vld [vmem:[#allocation2] sm:$0xff]  ;;  %162 = vst.msk [vmem:[#allocation2 + $0xe] sm:$0x1] %vm105_vm0, %v161_v42  ;;  %s2934_s14 = smov [#allocation11]  }
  0x2e   :  { %v165_v45 = vld [vmem:[%s164_s28] sm:$0x1]  ;;  %2517 = vmatmul.msk.f32.vlgmr.msra.gmra.mxu2 %vm177_vm1, %v167_v44  ;;  %2519 = vmatmul.msk.f32.vlgmr.msra.gmra.mxu3 %vm177_vm1, %v167_v44 }
  0x2f   :  { %166 = vst.msk [vmem:[#allocation2 + $0xf] sm:$0x1] %vm105_vm0, %v165_v45  ;;  %v3190_v47 = vld [vmem:[#allocation10 + $0x10] sm:$0xff]  ;;  %2503 = vmatmul.msk.f32.vlgmr.msra.gmra.mxu0 %vm177_vm1, %v167_v44  ;;  %457 = vmatpush.msra.mxu2 %v3182_v43 }
  0x30   :  { %v3194_v49 = vld [vmem:[#allocation10 + $0x30] sm:$0xff]  ;;  %477 = vmatpush.msra.mxu3 %v3185_v46  ;;  %2510 = vmatmul.msk.f32.vlgmr.msra.gmra.mxu1 %vm177_vm1, %v167_v44 }
  0x31   :  { %v342_v52 = vld [vmem:[#allocation8 + $0x50] sm:$0xff]  ;;  %458 = vmatpush.msra.mxu2 %v3190_v47  ;;  %540 = vmatpush.msra.mxu0 %v3196_v50 }
  0x32   :  { %v3207_v55 = vld [vmem:[#allocation7 + $0x50] sm:$0xff]  ;;  %478 = vmatpush.msra.mxu3 %v3194_v49  ;;  %360 = vmatpush.msrb.mxu1 %v342_v52 }
  0x33   :  { %459 = vmatpush.msra.mxu2 %v3200_v51  ;;  %541 = vmatpush.msra.mxu0 %v3207_v55  ;;  %v3229_v63 = vld [vmem:[#allocation10 + $0x50] sm:$0xff] }
  0x34   :  { %479 = vmatpush.msra.mxu3 %v3203_v53  ;;  %361 = vmatpush.msrb.mxu1 %v341_v57  ;;  %v2616_v5 = vld [vmem:[%s3923_s7] ss:$0 sm:$0xff] }
  0x35   :  { %460 = vmatpush.msra.mxu2 %v3205_v54  ;;  %542 = vmatpush.msra.mxu0 %v3217_v59  ;;  %v2614_v9 = vld [vmem:[%s3920_s4] ss:$0 sm:$0xff] }
  0x36   :  { %v168_v58 = vld [vmem:[#allocation2 + $0x8] sm:$0xff]  ;;  %480 = vmatpush.msra.mxu3 %v3210_v56  ;;  %362 = vmatpush.msrb.mxu1 %v340_v60 }
  0x37   :  { %2518 = vmatmul.msk.f32.gmra.mxu2 %vm177_vm1, %v168_v58  ;;  %2520 = vmatmul.msk.f32.gmra.mxu3 %vm177_vm1, %v168_v58 }
  0x38   :  { %2504 = vmatmul.msk.f32.gmra.mxu0 %vm177_vm1, %v168_v58  ;;  %2511 = vmatmul.msk.f32.gmra.mxu1 %vm177_vm1, %v168_v58 }
  0x39   :  { %616 = vmatpush.msra.mxu1 %v3223_v61  ;;  %543 = vmatpush.msra.mxu0 %v3225_v62 }
  0x3b   :  { %617 = vmatpush.msra.mxu1 %v3229_v63 }
  0x3d   :  { %618 = vmatpush.msra.mxu1 %v3234_v0 }
  0x3f   :  { %421 = vmatmul.f32.vlgmr.msrb.gmra.mxu2 %v2933_v1  ;;  %441 = vmatmul.f32.vlgmr.msrb.gmra.mxu3 %v2933_v1 }
  0x40   :  { %2522 = vmatmul.msk.f32.vlgmr.msrb.gmra.mxu0 %vm177_vm1, %v167_v44  ;;  %2525 = vmatmul.msk.f32.vlgmr.msrb.gmra.mxu1 %vm177_vm1, %v167_v44 }
  0x41   :  { %652 = vmatpush.msrb.mxu2 %v3040_v10  ;;  %619 = vmatpush.msra.mxu1 %v3236_v2 }
  0x42   :  { %672 = vmatpush.msrb.mxu3 %v3058_v14  ;;  %696 = vmatpush.msrb.mxu0 %v3182_v43 }
  0x43   :  { %653 = vmatpush.msrb.mxu2 %v3047_v12  ;;  %716 = vmatpush.msrb.mxu1 %v3185_v46 }
  0x44   :  { %673 = vmatpush.msrb.mxu3 %v3060_v15  ;;  %697 = vmatpush.msrb.mxu0 %v3190_v47 }
  0x45   :  { %654 = vmatpush.msrb.mxu2 %v3071_v18  ;;  %717 = vmatpush.msrb.mxu1 %v3194_v49 }
  0x46   :  { %674 = vmatpush.msrb.mxu3 %v3084_v22  ;;  %698 = vmatpush.msrb.mxu0 %v3200_v51 }
  0x47   :  { %461 = vmatmul.f32.vlgmr.msra.gmra.mxu2 %v2933_v1  ;;  %481 = vmatmul.f32.vlgmr.msra.gmra.mxu3 %v2933_v1 }
  0x48   :  { %2523 = vmatmul.msk.f32.gmra.mxu0 %vm177_vm1, %v168_v58  ;;  %655 = vmatpush.msrb.mxu2 %v3094_v24 }
  0x49   :  { %2526 = vmatmul.msk.f32.gmra.mxu1 %vm177_vm1, %v168_v58  ;;  %675 = vmatpush.msrb.mxu3 %v3104_v26 }
  0x4a   :  { %782 = vmatpush.msra.mxu2 %v3196_v50  ;;  %718 = vmatpush.msrb.mxu1 %v3203_v53 }
  0x4b   :  { %860 = vmatpush.msra.mxu3 %v3223_v61  ;;  %699 = vmatpush.msrb.mxu0 %v3205_v54 }
  0x4c   :  { %783 = vmatpush.msra.mxu2 %v3207_v55  ;;  %719 = vmatpush.msrb.mxu1 %v3210_v56 }
  0x4d   :  { %861 = vmatpush.msra.mxu3 %v3229_v63 }
  0x4e   :  { %784 = vmatpush.msra.mxu2 %v3217_v59 }
  0x4f   :  { %862 = vmatpush.msra.mxu3 %v3234_v0 }
  0x50   :  { %544 = vmatmul.f32.vlgmr.msra.gmra.mxu0 %v2933_v1  ;;  %785 = vmatpush.msra.mxu2 %v3225_v62 }
  0x51   :  { %620 = vmatmul.f32.vlgmr.msra.gmra.mxu1 %v2933_v1  ;;  %863 = vmatpush.msra.mxu3 %v3236_v2 }
  0x52   :  { %905 = vmatpush.msra.mxu0 %v3040_v10  ;;  %925 = vmatpush.msra.mxu1 %v3058_v14 }
  0x54   :  { %906 = vmatpush.msra.mxu0 %v3047_v12  ;;  %926 = vmatpush.msra.mxu1 %v3060_v15 }
  0x56   :  { %907 = vmatpush.msra.mxu0 %v3071_v18  ;;  %927 = vmatpush.msra.mxu1 %v3084_v22 }
  0x58   :  { %908 = vmatpush.msra.mxu0 %v3094_v24  ;;  %928 = vmatpush.msra.mxu1 %v3104_v26 }
  0xac   :  { %v201_v3 = vpop.f32.mrf.mxu0 }
  0xad   :  { %v234_v4 = vpop.f32.mrf.mxu1  ;;  %v3316_v34 = vadd.f32 %v2614_v9, %v201_v3 }
  0xae   :  { %v3311_v32 = vadd.f32 %v2617_v13, %v234_v4 }
  0xb1   :  { %v3279_v6 = vpop.f32.mrf.mxu2  ;;  %v298_v7 = vpop.f32.mrf.mxu3 }
  0xb2   :  { %v3281_v8 = vadd.f32 %v2616_v5, %v298_v7 }
  0xb4   :  { %3933 = vst [vmem:[#allocation16_spill] sm:$0xff] %v3281_v8 }
  0xb5   :  { %v204_v11 = vpop.f32.mrf.mxu0  ;;  %v237_v17 = vpop.f32.mrf.mxu1 }
  0xb6   :  { %v3289_v16 = vadd.f32 %v2614_v9, %v204_v11  ;;  %v3291_v19 = vadd.f32 %v2617_v13, %v237_v17 }
  0xba   :  { %v270_v21 = vpop.f32.mrf.mxu2  ;;  %v301_v23 = vpop.f32.mrf.mxu3 }
  0xbb   :  { %v3302_v27 = vadd.f32 %v3296_v20, %v270_v21  ;;  %v3322_v48 = vadd.f32 %v2616_v5, %v301_v23 }
  0xbd   :  { %3934 = vst [vmem:[#allocation17_spill] sm:$0xff] %v3302_v27  ;;  %v331_v29 = vpop.f32.mrf.mxu0  ;;  %v364_v31 = vpop.f32.mrf.mxu1 }
  0xbe   :  { %v3309_v30 = vadd.f32 %v2618_v25, %v331_v29  ;;  %v3314_v33 = vadd.f32 %v3307_v28, %v364_v31 }
  0xc0   :  { %3935 = vst [vmem:[#allocation18_spill] sm:$0xff] %v3309_v30 }
  0xc1   :  { %3936 = vst [vmem:[#allocation19_spill] sm:$0xff] %v3314_v33 }
  0xc2   :  { %v422_v35 = vpop.f32.mrf.mxu2  ;;  %v442_v36 = vpop.f32.mrf.mxu3 }
  0xc3   :  { %v485_v37 = vadd.f32 %v422_v35, %v3316_v34  ;;  %v505_v38 = vadd.f32 %v442_v36, %v3311_v32  ;;  %v3329_v36 = vld [vmem:[%s3920_s4 + $0x3] ss:$0 sm:$0xff] }
  0xc5   :  { %v2529_v39 = vmul.f32 -1.442695, %v485_v37  ;;  %v2530_v40 = vmul.f32 -1.442695, %v505_v38  ;;  %v334_v41 = vpop.f32.mrf.mxu0 }
  0xc6   :  { %v3320_v42 = vadd.f32 %v2618_v25, %v334_v41  ;;  %v367_v5 = vpop.f32.mrf.mxu1 }
  0xc7   :  { %2623 = vpow2.f32 %v2529_v39 }
  0xc8   :  { %2625 = vpow2.f32 %v2530_v40 }
  0xca   :  { %v462_v44 = vpop.f32.mrf.mxu2  ;;  %v482_v45 = vpop.f32.mrf.mxu3 }
  0xcb   :  { %v556_v52 = vrot.slane %v462_v44, 2  ;;  %v579_v57 = vrot.slane %v482_v45, 2 }
  0xcd   :  { %v2624_v58 = vpop.eup %2623  ;;  %v558_v60 = vadd.f32 %v556_v52, %v3322_v48  ;;  %v581_v1 = vadd.f32 %v579_v57, %v3320_v42  ;;  %v545_v40 = vpop.f32.mrf.mxu0 }
  0xce   :  { %v2626_v3 = vpop.eup %2625  ;;  %v489_v4 = vadd.f32 1.0, %v2624_v58  ;;  %v546_v57 = vadd.f32 %v3329_v36, %v545_v40 }
  0xcf   :  { %v509_v7 = vadd.f32 1.0, %v2626_v3  ;;  %v2531_v9 = vmul.f32 -1.442695, %v558_v60  ;;  %v2532_v11 = vmul.f32 -1.442695, %v581_v1 }
  0xd0   :  { %2627 = vrcp.f32 %v489_v4  ;;  %v501_v39 = vand.u32 2147483648, %v489_v4  ;;  %v499_v44 = vand.u32 2147483647, %v489_v4  ;;  %vm495_vm3 = vweird.f32 %v489_v4 }
  0xd1   :  { %2629 = vrcp.f32 %v509_v7  ;;  %vm515_vm6 = vweird.f32 %v509_v7 }
  0xd2   :  { %2631 = vpow2.f32 %v2531_v9  ;;  %v502_v58 = vor.u32 1.1754944e-38, %v501_v39  ;;  %vm500_vm5 = vcmp.eq.f32.partialorder %v499_v44, 8.507059e+37  ;;  %v3338_v9 = vld [vmem:[%s3923_s7 + $0x3] ss:$0 sm:$0xff] }
  0xd3   :  { %2633 = vpow2.f32 %v2532_v11 }
  0xd6   :  { %v2628_v13 = vpop.eup %2627 }
  0xd7   :  { %v2630_v17 = vpop.eup %2629  ;;  %v491_v21 = vmul.f32 %v2628_v13, %v489_v4  ;;  %vm496_vm2 = vweird.f32 %v2628_v13  ;;  %v521_v4 = vand.u32 2147483648, %v509_v7 }
  0xd8   :  { %v2632_v23 = vpop.eup %2631  ;;  %v511_v25 = vmul.f32 %v2630_v17, %v509_v7  ;;  %vm497_vm4 = vmor %vm495_vm3, %vm496_vm2  ;;  %vm516_vm7 = vweird.f32 %v2630_v17 }
  0xd9   :  { %v2634_v29 = vpop.eup %2633  ;;  %v562_v31 = vadd.f32 1.0, %v2632_v23  ;;  %v492_v35 = vsub.f32 1.0, %v491_v21  ;;  %v3342_v21 = vadd.f32 %v3296_v20, %v3279_v6  ;;  %vm3344_vm8 = vmor %vm515_vm6, %vm516_vm7  ;;  %v522_v20 = vor.u32 1.1754944e-38, %v521_v4 }
  0xda   :  { %v512_v37 = vsub.f32 1.0, %v511_v25  ;;  %v3331_v38 = vadd.f32 1.0, %v2634_v29  ;;  %v621_v25 = vpop.f32.mrf.mxu1 }
  0xdb   :  { %2635 = vrcp.f32 %v562_v31  ;;  %v493_v41 = vmul.f32 %v2628_v13, %v492_v35  ;;  %v622_v6 = vadd.f32 %v3338_v9, %v621_v25  ;;  %vm568_vm11 = vweird.f32 %v562_v31 }
  0xdc   :  { %v513_v45 = vmul.f32 %v2630_v17, %v512_v37  ;;  %2637 = vrcp.f32 %v3331_v38  ;;  %vm591_vm14 = vweird.f32 %v3331_v38  ;;  %v597_v37 = vand.u32 2147483648, %v3331_v38 }
  0xdd   :  { %v494_v52 = vadd.f32 %v2628_v13, %v493_v41  ;;  %v625_v33 = vrot.slane %v622_v6, 2 }
  0xde   :  { %v514_v1 = vadd.f32 %v2630_v17, %v513_v45 }
  0xdf   :  { %v498_v60 = vsel %vm497_vm4, %v2628_v13, %v494_v52  ;;  %v519_v13 = vand.u32 2147483647, %v509_v7  ;;  %v574_v52 = vand.u32 2147483648, %v562_v31 }
  0xe0   :  { %v503_v3 = vsel %vm500_vm5, %v502_v58, %v498_v60  ;;  %v518_v41 = vsel %vm3344_vm8, %v2630_v17, %v514_v1  ;;  %v3354_v17 = vadd.f32 %v3307_v28, %v367_v5 }
  0xe1   :  { %v2636_v11 = vpop.eup %2635  ;;  %v548_v23 = vmul.f32 %v546_v57, %v503_v3  ;;  %vm520_vm9 = vcmp.eq.f32.partialorder %v519_v13, 8.507059e+37  ;;  %v572_v57 = vand.u32 2147483647, %v562_v31 }
  0xe2   :  { %v2638_v29 = vpop.eup %2637  ;;  %v564_v35 = vmul.f32 %v2636_v11, %v562_v31  ;;  %vm569_vm10 = vweird.f32 %v2636_v11  ;;  %v523_v60 = vsel %vm520_vm9, %v522_v20, %v518_v41  ;;  %v595_v41 = vand.u32 2147483647, %v3331_v38 }
  0xe3   :  { %v587_v39 = vmul.f32 %v2638_v29, %v3331_v38  ;;  %v549_v40 = vadd.f32 %v548_v23, %v3342_v21  ;;  %vm570_vm12 = vmor %vm568_vm11, %vm569_vm10  ;;  %v575_v23 = vor.u32 1.1754944e-38, %v574_v52  ;;  %v551_v1 = vsub.f32 1.0, %v523_v60 }
  0xe4   :  { %v565_v44 = vsub.f32 1.0, %v564_v35  ;;  %vm573_vm13 = vcmp.eq.f32.partialorder %v572_v57, 8.507059e+37  ;;  %vm592_vm15 = vweird.f32 %v2638_v29  ;;  %v553_v31 = vmul.f32 0.0, %v523_v60 }
  0xe5   :  { %v588_v45 = vsub.f32 1.0, %v587_v39  ;;  %2639 = vtanh.f32 %v549_v40  ;;  %vm593_vm0 = vmor %vm591_vm14, %vm592_vm15  ;;  %vm596_vm2 = vcmp.eq.f32.partialorder %v595_v41, 8.507059e+37 }
  0xe6   :  { %v566_v7 = vmul.f32 %v2636_v11, %v565_v44  ;;  %v598_v44 = vor.u32 1.1754944e-38, %v597_v37 }
  0xe7   :  { %v589_v58 = vmul.f32 %v2638_v29, %v588_v45 }
  0xe8   :  { %v567_v3 = vadd.f32 %v2636_v11, %v566_v7 }
  0xe9   :  { %v590_v35 = vadd.f32 %v2638_v29, %v589_v58 }
  0xea   :  { %v571_v25 = vsel %vm570_vm12, %v2636_v11, %v567_v3 }
  0xeb   :  { %v2640_v4 = vpop.eup %2639  ;;  %v576_v13 = vsel %vm573_vm13, %v575_v23, %v571_v25  ;;  %v594_v11 = vsel %vm593_vm0, %v2638_v29, %v590_v35 }
  0xec   :  { %v552_v39 = vmul.f32 %v2640_v4, %v551_v1  ;;  %v627_v40 = vmul.f32 %v625_v33, %v576_v13  ;;  %v599_v33 = vsel %vm596_vm2, %v598_v44, %v594_v11 }
  0xed   :  { %v630_v38 = vsub.f32 1.0, %v599_v33  ;;  %v632_v20 = vmul.f32 0.0, %v599_v33 }
  0xee   :  { %v628_v28 = vadd.f32 %v627_v40, %v3354_v17  ;;  %v3360_v5 = vadd.f32 %v553_v31, %v552_v39 }
  0xf0   :  { %2641 = vtanh.f32 %v628_v28  ;;  %2533 = vmatmul.msk.f32.vlgmr.msrb.gmra.mxu2 %vm177_vm1, %v3360_v5  ;;  %2534 = vmatmul.msk.f32.vlgmr.msrb.gmra.mxu3 %vm177_vm1, %v3360_v5 }
  0xf1   :  { %948 = vmatpush.msrb.mxu2 %v3182_v43  ;;  %968 = vmatpush.msrb.mxu3 %v3185_v46 }
  0xf3   :  { %949 = vmatpush.msrb.mxu2 %v3190_v47  ;;  %969 = vmatpush.msrb.mxu3 %v3194_v49 }
  0xf5   :  { %950 = vmatpush.msrb.mxu2 %v3200_v51  ;;  %970 = vmatpush.msrb.mxu3 %v3203_v53 }
  0xf6   :  { %v2642_v29 = vpop.eup %2641 }
  0xf7   :  { %v631_v6 = vmul.f32 %v2642_v29, %v630_v38  ;;  %951 = vmatpush.msrb.mxu2 %v3205_v54  ;;  %971 = vmatpush.msrb.mxu3 %v3210_v56 }
  0xf8   :  { %2539 = vmatmul.msk.f32.vlgmr.msra.gmra.mxu2 %vm177_vm1, %v3360_v5 }
  0xf9   :  { %v3376_v45 = vadd.f32 %v632_v20, %v631_v6  ;;  %1157 = vmatpush.msra.mxu2 %v3040_v10 }
  0xfb   :  { %v681_v52 = vrot.slane %v3376_v45, 6  ;;  %1158 = vmatpush.msra.mxu2 %v3047_v12 }
  0xfd   :  { %2535 = vmatmul.msk.f32.vlgmr.msrb.gmra.mxu0 %vm177_vm1, %v681_v52  ;;  %2536 = vmatmul.msk.f32.vlgmr.msrb.gmra.mxu1 %vm177_vm1, %v681_v52 }
  0xfe   :  { %2542 = vmatmul.msk.f32.vlgmr.msra.gmra.mxu3 %vm177_vm1, %v681_v52  ;;  %1034 = vmatpush.msrb.mxu0 %v3196_v50 }
  0xff   :  { %1112 = vmatpush.msrb.mxu1 %v3223_v61  ;;  %1177 = vmatpush.msra.mxu3 %v3058_v14 }
 0x100   :  { %1035 = vmatpush.msrb.mxu0 %v3207_v55  ;;  %1159 = vmatpush.msra.mxu2 %v3071_v18 }
 0x101   :  { %1113 = vmatpush.msrb.mxu1 %v3229_v63  ;;  %1178 = vmatpush.msra.mxu3 %v3060_v15 }
 0x102   :  { %1036 = vmatpush.msrb.mxu0 %v3217_v59  ;;  %1160 = vmatpush.msra.mxu2 %v3094_v24 }
 0x103   :  { %1114 = vmatpush.msrb.mxu1 %v3234_v0  ;;  %1179 = vmatpush.msra.mxu3 %v3084_v22 }
 0x104   :  { %1037 = vmatpush.msrb.mxu0 %v3225_v62 }
 0x105   :  { %1115 = vmatpush.msrb.mxu1 %v3236_v2  ;;  %1180 = vmatpush.msra.mxu3 %v3104_v26 }
 0x173   :  { %v657_v7 = vpop.f32.mrf.mxu2  ;;  %v677_v57 = vpop.f32.mrf.mxu3 }
 0x174   :  { %v725_v58 = vrot.slane %v657_v7, 6  ;;  %v748_v60 = vrot.slane %v677_v57, 6 }
 0x176   :  { %v727_v3 = vadd.f32 %v725_v58, %v3316_v34  ;;  %v750_v23 = vadd.f32 %v748_v60, %v3311_v32 }
 0x178   :  { %v2537_v1 = vmul.f32 -1.442695, %v727_v3  ;;  %v2538_v25 = vmul.f32 -1.442695, %v750_v23 }
 0x17a   :  { %2643 = vpow2.f32 %v2537_v1  ;;  %v701_v4 = vpop.f32.mrf.mxu0  ;;  %v721_v13 = vpop.f32.mrf.mxu1 }
 0x17b   :  { %2645 = vpow2.f32 %v2538_v25  ;;  %v803_v35 = vrot.slane %v701_v4, 4  ;;  %v826_v37 = vrot.slane %v721_v13, 4  ;;  %v787_v58 = vpop.f32.mrf.mxu2 }
 0x17c   :  { %v788_v25 = vadd.f32 %v3329_v36, %v787_v58 }
 0x17d   :  { %v805_v39 = vadd.f32 %v803_v35, %v3322_v48  ;;  %v828_v40 = vadd.f32 %v826_v37, %v3320_v42 }
 0x17f   :  { %v2540_v31 = vmul.f32 -1.442695, %v805_v39  ;;  %v2541_v41 = vmul.f32 -1.442695, %v828_v40 }
 0x180   :  { %v2644_v28 = vpop.eup %2643 }
 0x181   :  { %v2646_v11 = vpop.eup %2645  ;;  %v731_v44 = vadd.f32 1.0, %v2644_v28  ;;  %2647 = vpow2.f32 %v2540_v31  ;;  %v865_v35 = vpop.f32.mrf.mxu3  ;;  %v791_v28 = vrot.slane %v788_v25, 6 }
 0x182   :  { %v754_v33 = vadd.f32 1.0, %v2646_v11  ;;  %2649 = vpow2.f32 %v2541_v41 }
 0x183   :  { %2651 = vrcp.f32 %v731_v44  ;;  %v743_v1 = vand.u32 2147483648, %v731_v44  ;;  %v741_v13 = vand.u32 2147483647, %v731_v44  ;;  %vm737_vm4 = vweird.f32 %v731_v44 }
 0x184   :  { %2653 = vrcp.f32 %v754_v33  ;;  %vm760_vm6 = vweird.f32 %v754_v33  ;;  %v764_v30 = vand.u32 2147483647, %v754_v33 }
 0x185   :  { %v744_v41 = vor.u32 1.1754944e-38, %v743_v1  ;;  %vm742_vm7 = vcmp.eq.f32.partialorder %v741_v13, 8.507059e+37 }
 0x186   :  { %vm765_vm13 = vcmp.eq.f32.partialorder %v764_v30, 8.507059e+37  ;;  %v798_v30 = vrot.slane %v3360_v5, 6 }
 0x187   :  { %v2648_v38 = vpop.eup %2647 }
 0x188   :  { %v2650_v29 = vpop.eup %2649  ;;  %v809_v6 = vadd.f32 1.0, %v2648_v38  ;;  %v866_v38 = vadd.f32 %v3338_v9, %v865_v35 }
 0x189   :  { %v2652_v20 = vpop.eup %2651  ;;  %v3402_v52 = vadd.f32 1.0, %v2650_v29 }
 0x18a   :  { %v2654_v7 = vpop.eup %2653  ;;  %2655 = vrcp.f32 %v809_v6  ;;  %v733_v57 = vmul.f32 %v2652_v20, %v731_v44  ;;  %vm738_vm3 = vweird.f32 %v2652_v20  ;;  %v821_v44 = vand.u32 2147483648, %v809_v6 }
 0x18b   :  { %v756_v60 = vmul.f32 %v2654_v7, %v754_v33  ;;  %2657 = vrcp.f32 %v3402_v52  ;;  %vm739_vm5 = vmor %vm737_vm4, %vm738_vm3  ;;  %vm761_vm8 = vweird.f32 %v2654_v7  ;;  %v819_v1 = vand.u32 2147483647, %v809_v6 }
 0x18c   :  { %v734_v3 = vsub.f32 1.0, %v733_v57  ;;  %vm3409_vm10 = vmor %vm760_vm6, %vm761_vm8  ;;  %vm815_vm11 = vweird.f32 %v809_v6  ;;  %vm838_vm0 = vweird.f32 %v3402_v52 }
 0x18d   :  { %v757_v23 = vsub.f32 1.0, %v756_v60  ;;  %vm820_vm14 = vcmp.eq.f32.partialorder %v819_v1, 8.507059e+37  ;;  %v635_v1 = vmax.f32 %v3360_v5, 0.0  ;;  %v636_v5 = vmax.f32 %v3376_v45, 0.0 }
 0x18e   :  { %v735_v4 = vmul.f32 %v2652_v20, %v734_v3 }
 0x18f   :  { %v758_v37 = vmul.f32 %v2654_v7, %v757_v23  ;;  %v766_v23 = vand.u32 2147483648, %v754_v33  ;;  %v869_v33 = vrot.slane %v866_v38, 4 }
 0x190   :  { %v2656_v39 = vpop.eup %2655  ;;  %v736_v40 = vadd.f32 %v2652_v20, %v735_v4 }
 0x191   :  { %v2658_v31 = vpop.eup %2657  ;;  %v811_v11 = vmul.f32 %v2656_v39, %v809_v6  ;;  %v759_v60 = vadd.f32 %v2654_v7, %v758_v37  ;;  %vm816_vm9 = vweird.f32 %v2656_v39 }
 0x192   :  { %v834_v29 = vmul.f32 %v2658_v31, %v3402_v52  ;;  %v740_v57 = vsel %vm739_vm5, %v2652_v20, %v736_v40  ;;  %v767_v40 = vor.u32 1.1754944e-38, %v766_v23  ;;  %vm817_vm12 = vmor %vm815_vm11, %vm816_vm9  ;;  %vm839_vm15 = vweird.f32 %v2658_v31 }
 0x193   :  { %v745_v58 = vsel %vm742_vm7, %v744_v41, %v740_v57  ;;  %v812_v3 = vsub.f32 1.0, %v811_v11  ;;  %v763_v13 = vsel %vm3409_vm10, %v2654_v7, %v759_v60  ;;  %v822_v41 = vor.u32 1.1754944e-38, %v821_v44  ;;  %vm840_vm2 = vmor %vm838_vm0, %vm839_vm15 }
 0x194   :  { %v835_v27 = vsub.f32 1.0, %v834_v29  ;;  %v793_v4 = vmul.f32 %v791_v28, %v745_v58  ;;  %v768_v11 = vsel %vm765_vm13, %v767_v40, %v763_v13 }
 0x195   :  { %v813_v8 = vmul.f32 %v2656_v39, %v812_v3  ;;  %v796_v6 = vsub.f32 1.0, %v768_v11  ;;  %v800_v23 = vmul.f32 %v798_v30, %v768_v11 }
 0x196   :  { %v836_v35 = vmul.f32 %v2658_v31, %v835_v27  ;;  %v794_v20 = vadd.f32 %v793_v4, %v3342_v21  ;;  %v844_v27 = vand.u32 2147483648, %v3402_v52 }
 0x197   :  { %v814_v37 = vadd.f32 %v2656_v39, %v813_v8  ;;  %v842_v8 = vand.u32 2147483647, %v3402_v52 }
 0x198   :  { %2659 = vtanh.f32 %v794_v20  ;;  %v837_v57 = vadd.f32 %v2658_v31, %v836_v35  ;;  %v845_v38 = vor.u32 1.1754944e-38, %v844_v27  ;;  %v876_v35 = vrot.slane %v3376_v45, 2 }
 0x199   :  { %v818_v28 = vsel %vm817_vm12, %v2656_v39, %v814_v37  ;;  %vm843_vm3 = vcmp.eq.f32.partialorder %v842_v8, 8.507059e+37 }
 0x19a   :  { %v823_v29 = vsel %vm820_vm14, %v822_v41, %v818_v28  ;;  %v841_v60 = vsel %vm840_vm2, %v2658_v31, %v837_v57 }
 0x19b   :  { %v871_v58 = vmul.f32 %v869_v33, %v823_v29  ;;  %v846_v4 = vsel %vm843_vm3, %v845_v38, %v841_v60 }
 0x19c   :  { %v874_v25 = vsub.f32 1.0, %v846_v4  ;;  %v878_v37 = vmul.f32 %v876_v35, %v846_v4 }
 0x19d   :  { %v872_v7 = vadd.f32 %v871_v58, %v3354_v17 }
 0x19e   :  { %v2660_v39 = vpop.eup %2659 }
 0x19f   :  { %v797_v3 = vmul.f32 %v2660_v39, %v796_v6  ;;  %2661 = vtanh.f32 %v872_v7 }
 0x1a1   :  { %v3421_v44 = vadd.f32 %v800_v23, %v797_v3 }
 0x1a3   :  { %v884_v52 = vrot.slane %v3421_v44, 2 }
 0x1a5   :  { %v2662_v20 = vpop.eup %2661  ;;  %v3426_v13 = vmax.f32 %v635_v1, %v884_v52  ;;  %2543 = vmatmul.msk.f32.vlgmr.msra.gmra.mxu0 %vm177_vm1, %v884_v52  ;;  %2544 = vmatmul.msk.f32.vlgmr.msra.gmra.mxu1 %vm177_vm1, %v884_v52 }
 0x1a6   :  { %v875_v31 = vmul.f32 %v2662_v20, %v874_v25  ;;  %1200 = vmatpush.msra.mxu0 %v3182_v43  ;;  %1220 = vmatpush.msra.mxu1 %v3185_v46 }
 0x1a8   :  { %v3432_v40 = vadd.f32 %v878_v37, %v875_v31  ;;  %1201 = vmatpush.msra.mxu0 %v3190_v47  ;;  %1221 = vmatpush.msra.mxu1 %v3194_v49 }
 0x1aa   :  { %v888_v41 = vrot.slane %v3432_v40, 6  ;;  %v933_v28 = vrot.slane %v3432_v40, 4  ;;  %1202 = vmatpush.msra.mxu0 %v3200_v51  ;;  %1222 = vmatpush.msra.mxu1 %v3203_v53 }
 0x1ac   :  { %2545 = vmatmul.msk.f32.vlgmr.msrb.gmra.mxu2 %vm177_vm1, %v933_v28  ;;  %2546 = vmatmul.msk.f32.vlgmr.msrb.gmra.mxu3 %vm177_vm1, %v933_v28  ;;  %v3443_v43 = vmax.f32 %v636_v5, %v888_v41 }
 0x1ad   :  { %2549 = vmatmul.msk.f32.vlgmr.msrb.gmra.mxu0 %vm177_vm1, %v884_v52  ;;  %2552 = vmatmul.msk.f32.vlgmr.msrb.gmra.mxu1 %vm177_vm1, %v933_v28 }
 0x1ae   :  { %1286 = vmatpush.msrb.mxu2 %v3196_v50  ;;  %1358 = vmatpush.msrb.mxu3 %v3223_v61 }
 0x1af   :  { %1203 = vmatpush.msra.mxu0 %v3205_v54  ;;  %1223 = vmatpush.msra.mxu1 %v3210_v56 }
 0x1b0   :  { %1287 = vmatpush.msrb.mxu2 %v3207_v55  ;;  %1359 = vmatpush.msrb.mxu3 %v3229_v63 }
 0x1b1   :  { %1399 = vmatpush.msrb.mxu0 %v3040_v10  ;;  %1419 = vmatpush.msrb.mxu1 %v3058_v14 }
 0x1b2   :  { %1288 = vmatpush.msrb.mxu2 %v3217_v59  ;;  %1360 = vmatpush.msrb.mxu3 %v3234_v0 }
 0x1b3   :  { %1400 = vmatpush.msrb.mxu0 %v3047_v12  ;;  %1420 = vmatpush.msrb.mxu1 %v3060_v15 }
 0x1b4   :  { %1289 = vmatpush.msrb.mxu2 %v3225_v62  ;;  %1361 = vmatpush.msrb.mxu3 %v3236_v2 }
 0x1b5   :  { %1401 = vmatpush.msrb.mxu0 %v3071_v18  ;;  %1421 = vmatpush.msrb.mxu1 %v3084_v22 }
 0x1b7   :  { %1402 = vmatpush.msrb.mxu0 %v3094_v24  ;;  %1422 = vmatpush.msrb.mxu1 %v3104_v26 }
 0x222   :  { %v910_v10 = vpop.f32.mrf.mxu0  ;;  %v930_v14 = vpop.f32.mrf.mxu1 }
 0x223   :  { %v977_v46 = vrot.slane %v910_v10, 4  ;;  %v1000_v47 = vrot.slane %v930_v14, 4 }
 0x225   :  { %v979_v12 = vadd.f32 %v977_v46, %v3316_v34  ;;  %v1002_v15 = vadd.f32 %v1000_v47, %v3311_v32 }
 0x227   :  { %v2547_v49 = vmul.f32 -1.442695, %v979_v12  ;;  %v2548_v50 = vmul.f32 -1.442695, %v1002_v15 }
 0x229   :  { %2663 = vpow2.f32 %v2547_v49 }
 0x22a   :  { %2665 = vpow2.f32 %v2548_v50  ;;  %v1039_v27 = vpop.f32.mrf.mxu0  ;;  %v1117_v12 = vpop.f32.mrf.mxu1 }
 0x22b   :  { %v1040_v39 = vadd.f32 %v3329_v36, %v1039_v27 }
 0x22d   :  { %v1043_v35 = vrot.slane %v1040_v39, 4 }
 0x22f   :  { %v2664_v51 = vpop.eup %2663  ;;  %v953_v18 = vpop.f32.mrf.mxu2 }
 0x230   :  { %v973_v53 = vpop.f32.mrf.mxu3  ;;  %v2666_v22 = vpop.eup %2665  ;;  %v983_v54 = vadd.f32 1.0, %v2664_v51  ;;  %v1055_v24 = vrot.slane %v953_v18, 6  ;;  %v1050_v18 = vrot.slane %v3421_v44, 6 }
 0x231   :  { %v1078_v55 = vrot.slane %v973_v53, 6  ;;  %v1006_v26 = vadd.f32 1.0, %v2666_v22  ;;  %v1118_v53 = vadd.f32 %v3338_v9, %v1117_v12 }
 0x232   :  { %2667 = vrcp.f32 %v983_v54  ;;  %v1057_v56 = vadd.f32 %v1055_v24, %v3322_v48  ;;  %v995_v6 = vand.u32 2147483648, %v983_v54  ;;  %v993_v30 = vand.u32 2147483647, %v983_v54 }
 0x233   :  { %2669 = vrcp.f32 %v1006_v26  ;;  %v1080_v59 = vadd.f32 %v1078_v55, %v3320_v42  ;;  %vm989_vm5 = vweird.f32 %v983_v54  ;;  %v1018_v37 = vand.u32 2147483648, %v1006_v26 }
 0x234   :  { %v2550_v62 = vmul.f32 -1.442695, %v1057_v56  ;;  %v996_v1 = vor.u32 1.1754944e-38, %v995_v6  ;;  %vm994_vm7 = vcmp.eq.f32.partialorder %v993_v30, 8.507059e+37  ;;  %vm1012_vm9 = vweird.f32 %v1006_v26 }
 0x235   :  { %v2551_v45 = vmul.f32 -1.442695, %v1080_v59  ;;  %v1016_v41 = vand.u32 2147483647, %v1006_v26  ;;  %v1019_v46 = vor.u32 1.1754944e-38, %v1018_v37 }
 0x236   :  { %2671 = vpow2.f32 %v2550_v62 }
 0x237   :  { %2673 = vpow2.f32 %v2551_v45  ;;  %vm1017_vm11 = vcmp.eq.f32.partialorder %v1016_v41, 8.507059e+37  ;;  %v3517_v41 = vld [vmem:[#allocation10] sm:$0xff] }
 0x238   :  { %v2668_v33 = vpop.eup %2667 }
 0x239   :  { %v2670_v11 = vpop.eup %2669  ;;  %v985_v29 = vmul.f32 %v2668_v33, %v983_v54  ;;  %vm990_vm4 = vweird.f32 %v2668_v33 }
 0x23a   :  { %v1008_v57 = vmul.f32 %v2670_v11, %v1006_v26  ;;  %vm991_vm6 = vmor %vm989_vm5, %vm990_vm4  ;;  %vm1013_vm8 = vweird.f32 %v2670_v11 }
 0x23b   :  { %v986_v58 = vsub.f32 1.0, %v985_v29  ;;  %vm1014_vm10 = vmor %vm1012_vm9, %vm1013_vm8  ;;  %v1121_v29 = vrot.slane %v1118_v53, 6  ;;  %v3549_v53 = vld [vmem:[#allocation7 + $0x38] sm:$0xff] }
 0x23c   :  { %v1009_v8 = vsub.f32 1.0, %v1008_v57  ;;  %v2672_v60 = vpop.eup %2671 }
 0x23d   :  { %v987_v7 = vmul.f32 %v2668_v33, %v986_v58  ;;  %v2674_v3 = vpop.eup %2673  ;;  %v1061_v4 = vadd.f32 1.0, %v2672_v60 }
 0x23e   :  { %v1010_v38 = vmul.f32 %v2670_v11, %v1009_v8  ;;  %v3470_v52 = vadd.f32 1.0, %v2674_v3 }
 0x23f   :  { %v988_v23 = vadd.f32 %v2668_v33, %v987_v7  ;;  %2675 = vrcp.f32 %v1061_v4  ;;  %v1073_v22 = vand.u32 2147483648, %v1061_v4  ;;  %v1071_v26 = vand.u32 2147483647, %v1061_v4 }
 0x240   :  { %v1011_v31 = vadd.f32 %v2670_v11, %v1010_v38  ;;  %2677 = vrcp.f32 %v3470_v52  ;;  %vm1067_vm13 = vweird.f32 %v1061_v4  ;;  %v1096_v6 = vand.u32 2147483648, %v3470_v52 }
 0x241   :  { %v992_v25 = vsel %vm991_vm6, %v2668_v33, %v988_v23  ;;  %vm1072_vm15 = vcmp.eq.f32.partialorder %v1071_v26, 8.507059e+37  ;;  %vm1090_vm2 = vweird.f32 %v3470_v52  ;;  %v1094_v30 = vand.u32 2147483647, %v3470_v52  ;;  %v3498_v23 = vld [vmem:[#allocation10 + $0x18] sm:$0xff] }
 0x242   :  { %v997_v20 = vsel %vm994_vm7, %v996_v1, %v992_v25  ;;  %v1015_v10 = vsel %vm1014_vm10, %v2670_v11, %v1011_v31  ;;  %v1074_v11 = vor.u32 1.1754944e-38, %v1073_v22  ;;  %v1097_v1 = vor.u32 1.1754944e-38, %v1096_v6  ;;  %v3507_v25 = vld [vmem:[#allocation10 + $0x30] sm:$0xff]  ;;  %v3513_v31 = vld [vmem:[#allocation10 + $0x28] sm:$0xff]  ;;  %v3555_v22 = vld [vmem:[#allocation7] sm:$0xff] }
 0x243   :  { %v1045_v5 = vmul.f32 %v1043_v35, %v997_v20  ;;  %v1020_v49 = vsel %vm1017_vm11, %v1019_v46, %v1015_v10  ;;  %vm1095_vm4 = vcmp.eq.f32.partialorder %v1094_v30, 8.507059e+37  ;;  %v3510_v20 = vld [vmem:[#allocation10 + $0x8] sm:$0xff] }
 0x244   :  { %v1048_v24 = vsub.f32 1.0, %v1020_v49  ;;  %v1052_v33 = vmul.f32 %v1050_v18, %v1020_v49  ;;  %v3545_v18 = vld [vmem:[#allocation7 + $0x58] sm:$0xff] }
 0x245   :  { %v1046_v28 = vadd.f32 %v1045_v5, %v3342_v21  ;;  %v2676_v14 = vpop.eup %2675  ;;  %v1128_v5 = vrot.slane %v3432_v40, 2  ;;  %v3528_v40 = vld [vmem:[#allocation7 + $0x10] sm:$0xff] }
 0x246   :  { %v2678_v47 = vpop.eup %2677  ;;  %v1063_v15 = vmul.f32 %v2676_v14, %v1061_v4  ;;  %vm1068_vm12 = vweird.f32 %v2676_v14  ;;  %v3501_v4 = vld [vmem:[#allocation10 + $0x38] sm:$0xff] }
 0x247   :  { %2679 = vtanh.f32 %v1046_v28  ;;  %v1086_v50 = vmul.f32 %v2678_v47, %v3470_v52  ;;  %vm1069_vm14 = vmor %vm1067_vm13, %vm1068_vm12  ;;  %vm1091_vm0 = vweird.f32 %v2678_v47  ;;  %v3504_v52 = vld [vmem:[#allocation10 + $0x10] sm:$0xff]  ;;  %v3520_v28 = vld [vmem:[#allocation10 + $0x20] sm:$0xff] }
 0x248   :  { %v1064_v51 = vsub.f32 1.0, %v1063_v15  ;;  %vm3485_vm3 = vmor %vm1090_vm2, %vm1091_vm0 }
 0x249   :  { %v1087_v54 = vsub.f32 1.0, %v1086_v50  ;;  %v3533_v50 = vld [vmem:[#allocation7 + $0x8] sm:$0xff] }
 0x24a   :  { %v1065_v55 = vmul.f32 %v2676_v14, %v1064_v51 }
 0x24b   :  { %v1088_v59 = vmul.f32 %v2678_v47, %v1087_v54  ;;  %v3559_v54 = vld [vmem:[#allocation7 + $0x30] sm:$0xff] }
 0x24c   :  { %v1066_v45 = vadd.f32 %v2676_v14, %v1065_v55  ;;  %v3569_v55 = vld [vmem:[#allocation7 + $0x40] sm:$0xff] }
 0x24d   :  { %v2680_v56 = vpop.eup %2679  ;;  %v1089_v58 = vadd.f32 %v2678_v47, %v1088_v59 }
 0x24e   :  { %v1049_v62 = vmul.f32 %v2680_v56, %v1048_v24  ;;  %v1070_v57 = vsel %vm1069_vm14, %v2676_v14, %v1066_v45  ;;  %v3562_v24 = vld [vmem:[#allocation7 + $0x48] sm:$0xff] }
 0x24f   :  { %v1075_v27 = vsel %vm1072_vm15, %v1074_v11, %v1070_v57  ;;  %v1093_v3 = vsel %vm3485_vm3, %v2678_v47, %v1089_v58  ;;  %v3525_v47 = vld [vmem:[#allocation7 + $0x18] sm:$0xff] }
 0x250   :  { %v3477_v44 = vadd.f32 %v1052_v33, %v1049_v62  ;;  %v1123_v8 = vmul.f32 %v1121_v29, %v1075_v27  ;;  %v1098_v35 = vsel %vm1095_vm4, %v1097_v1, %v1093_v3 }
 0x251   :  { %v1126_v37 = vsub.f32 1.0, %v1098_v35  ;;  %v1130_v46 = vmul.f32 %v1128_v5, %v1098_v35 }
 0x252   :  { %v3481_v7 = vrot.slane %v3477_v44, 4  ;;  %v1124_v38 = vadd.f32 %v1123_v8, %v3354_v17 }
 0x254   :  { %v1138_v60 = vmax.f32 %v3426_v13, %v3481_v7  ;;  %2553 = vmatmul.msk.f32.vlgmr.msra.gmra.mxu2 %vm177_vm1, %v3481_v7  ;;  %2554 = vmatmul.msk.f32.vlgmr.msra.gmra.mxu3 %vm177_vm1, %v3481_v7  ;;  %2681 = vtanh.f32 %v1124_v38 }
 0x255   :  { %1441 = vmatpush.msra.mxu2 %v3498_v23  ;;  %1461 = vmatpush.msra.mxu3 %v3501_v4 }
 0x257   :  { %1442 = vmatpush.msra.mxu2 %v3504_v52  ;;  %1462 = vmatpush.msra.mxu3 %v3507_v25 }
 0x259   :  { %1443 = vmatpush.msra.mxu2 %v3510_v20  ;;  %1463 = vmatpush.msra.mxu3 %v3513_v31 }
 0x25a   :  { %v2682_v10 = vpop.eup %2681 }
 0x25b   :  { %1444 = vmatpush.msra.mxu2 %v3517_v41  ;;  %1464 = vmatpush.msra.mxu3 %v3520_v28  ;;  %v1127_v14 = vmul.f32 %v2682_v10, %v1126_v37 }
 0x25c   :  { %2559 = vmatmul.msk.f32.vlgmr.msrb.gmra.mxu2 %vm177_vm1, %v3481_v7 }
 0x25d   :  { %1630 = vmatpush.msrb.mxu2 %v3525_v47  ;;  %v1131_v12 = vadd.f32 %v1130_v46, %v1127_v14 }
 0x25f   :  { %1631 = vmatpush.msrb.mxu2 %v3528_v40  ;;  %v1140_v15 = vrot.slane %v1131_v12, 4  ;;  %v3531_v49 = vrot.slane %v1131_v12, 2 }
 0x261   :  { %1632 = vmatpush.msrb.mxu2 %v3533_v50  ;;  %v3537_v51 = vmax.f32 %v3443_v43, %v1140_v15  ;;  %2555 = vmatmul.msk.f32.vlgmr.msra.gmra.mxu0 %vm177_vm1, %v3531_v49  ;;  %v3552_v43 = vld [vmem:[#allocation7 + $0x50] sm:$0xff] }
 0x262   :  { %2556 = vmatmul.msk.f32.vlgmr.msra.gmra.mxu1 %vm177_vm1, %v3531_v49  ;;  %2562 = vmatmul.msk.f32.vlgmr.msrb.gmra.mxu3 %vm177_vm1, %v3531_v49 }
 0x263   :  { %1521 = vmatpush.msra.mxu0 %v3545_v18  ;;  %1594 = vmatpush.msra.mxu1 %v3223_v61  ;;  %v3566_v61 = vld [vmem:[#allocation7 + $0x28] sm:$0xff] }
 0x264   :  { %1650 = vmatpush.msrb.mxu3 %v3549_v53  ;;  %1633 = vmatpush.msrb.mxu2 %v3555_v22 }
 0x265   :  { %1522 = vmatpush.msra.mxu0 %v3552_v43  ;;  %1595 = vmatpush.msra.mxu1 %v3229_v63  ;;  %v3573_v63 = vld [vmem:[#allocation7 + $0x20] sm:$0xff] }
 0x266   :  { %1651 = vmatpush.msrb.mxu3 %v3559_v54 }
 0x267   :  { %1523 = vmatpush.msra.mxu0 %v3562_v24  ;;  %1596 = vmatpush.msra.mxu1 %v3234_v0 }
 0x268   :  { %1652 = vmatpush.msrb.mxu3 %v3566_v61 }
 0x269   :  { %1524 = vmatpush.msra.mxu0 %v3569_v55  ;;  %1597 = vmatpush.msra.mxu1 %v3236_v2 }
 0x26a   :  { %1653 = vmatpush.msrb.mxu3 %v3573_v63 }
 0x2d7   :  { %v1162_v26 = vpop.f32.mrf.mxu2  ;;  %v1182_v56 = vpop.f32.mrf.mxu3 }
 0x2d8   :  { %v1229_v59 = vrot.slane %v1162_v26, 2  ;;  %v1252_v62 = vrot.slane %v1182_v56, 2 }
 0x2da   :  { %v1231_v0 = vadd.f32 %v1229_v59, %v3316_v34  ;;  %v1254_v45 = vadd.f32 %v1252_v62, %v3311_v32 }
 0x2dc   :  { %v2557_v33 = vmul.f32 -1.442695, %v1231_v0  ;;  %v2558_v11 = vmul.f32 -1.442695, %v1254_v45 }
 0x2de   :  { %2683 = vpow2.f32 %v2557_v33  ;;  %v1205_v29 = vpop.f32.mrf.mxu0 }
 0x2df   :  { %2685 = vpow2.f32 %v2558_v11  ;;  %v1225_v57 = vpop.f32.mrf.mxu1  ;;  %v1306_v2 = vadd.f32 %v1205_v29, %v3322_v48 }
 0x2e0   :  { %v1326_v27 = vadd.f32 %v1225_v57, %v3320_v42  ;;  %v1291_v42 = vpop.f32.mrf.mxu2 }
 0x2e1   :  { %v2560_v58 = vmul.f32 -1.442695, %v1306_v2  ;;  %v1292_v12 = vadd.f32 %v3329_v36, %v1291_v42 }
 0x2e2   :  { %v2561_v8 = vmul.f32 -1.442695, %v1326_v27 }
 0x2e3   :  { %2687 = vpow2.f32 %v2560_v58  ;;  %v1295_v33 = vrot.slane %v1292_v12, 2 }
 0x2e4   :  { %v2684_v6 = vpop.eup %2683  ;;  %2689 = vpow2.f32 %v2561_v8 }
 0x2e5   :  { %v2686_v30 = vpop.eup %2685  ;;  %v1235_v39 = vadd.f32 1.0, %v2684_v6 }
 0x2e6   :  { %v1258_v38 = vadd.f32 1.0, %v2686_v30 }
 0x2e7   :  { %2691 = vrcp.f32 %v1235_v39  ;;  %v1247_v46 = vand.u32 2147483648, %v1235_v39  ;;  %v1245_v26 = vand.u32 2147483647, %v1235_v39  ;;  %vm1241_vm6 = vweird.f32 %v1235_v39 }
 0x2e8   :  { %2693 = vrcp.f32 %v1258_v38  ;;  %vm1264_vm8 = vweird.f32 %v1258_v38  ;;  %v1270_v58 = vand.u32 2147483648, %v1258_v38 }
 0x2e9   :  { %v2688_v32 = vpop.eup %2687  ;;  %v1248_v45 = vor.u32 1.1754944e-38, %v1247_v46  ;;  %vm1246_vm9 = vcmp.eq.f32.partialorder %v1245_v26, 8.507059e+37 }
 0x2ea   :  { %v2690_v34 = vpop.eup %2689  ;;  %v1310_v3 = vadd.f32 1.0, %v2688_v32  ;;  %v1268_v32 = vand.u32 2147483647, %v1258_v38  ;;  %v1271_v46 = vor.u32 1.1754944e-38, %v1270_v58 }
 0x2eb   :  { %v3580_v35 = vadd.f32 1.0, %v2690_v34 }
 0x2ec   :  { %2695 = vrcp.f32 %v1310_v3  ;;  %v1322_v30 = vand.u32 2147483648, %v1310_v3  ;;  %v1320_v34 = vand.u32 2147483647, %v1310_v3  ;;  %vm1316_vm13 = vweird.f32 %v1310_v3 }
 0x2ed   :  { %v2692_v1 = vpop.eup %2691  ;;  %2697 = vrcp.f32 %v3580_v35  ;;  %vm1269_vm15 = vcmp.eq.f32.partialorder %v1268_v32, 8.507059e+37  ;;  %vm1336_vm3 = vweird.f32 %v3580_v35  ;;  %v3639_v32 = vld [vmem:[#allocation10 + $0x40] sm:$0xff] }
 0x2ee   :  { %v2694_v37 = vpop.eup %2693  ;;  %v1237_v48 = vmul.f32 %v2692_v1, %v1235_v39  ;;  %vm1242_vm5 = vweird.f32 %v2692_v1  ;;  %v1323_v12 = vor.u32 1.1754944e-38, %v1322_v30  ;;  %vm1321_vm0 = vcmp.eq.f32.partialorder %v1320_v34, 8.507059e+37  ;;  %v3633_v30 = vld [vmem:[#allocation10 + $0x48] sm:$0xff] }
 0x2ef   :  { %v1260_v5 = vmul.f32 %v2694_v37, %v1258_v38  ;;  %vm1243_vm7 = vmor %vm1241_vm6, %vm1242_vm5  ;;  %vm1265_vm10 = vweird.f32 %v2694_v37 }
 0x2f0   :  { %v1238_v10 = vsub.f32 1.0, %v1237_v48  ;;  %vm3586_vm12 = vmor %vm1264_vm8, %vm1265_vm10 }
 0x2f1   :  { %v1261_v14 = vsub.f32 1.0, %v1260_v5  ;;  %v1363_v5 = vpop.f32.mrf.mxu3 }
 0x2f2   :  { %v1239_v15 = vmul.f32 %v2692_v1, %v1238_v10  ;;  %v2696_v59 = vpop.eup %2695  ;;  %v1364_v38 = vadd.f32 %v3338_v9, %v1363_v5 }
 0x2f3   :  { %v1262_v56 = vmul.f32 %v2694_v37, %v1261_v14  ;;  %v2698_v0 = vpop.eup %2697  ;;  %v1312_v11 = vmul.f32 %v2696_v59, %v1310_v3  ;;  %vm1317_vm11 = vweird.f32 %v2696_v59  ;;  %v1340_v3 = vand.u32 2147483647, %v3580_v35 }
 0x2f4   :  { %v1240_v62 = vadd.f32 %v2692_v1, %v1239_v15  ;;  %v1332_v29 = vmul.f32 %v2698_v0, %v3580_v35  ;;  %vm1318_vm14 = vmor %vm1316_vm13, %vm1317_vm11  ;;  %vm1337_vm2 = vweird.f32 %v2698_v0 }
 0x2f5   :  { %v1263_v36 = vadd.f32 %v2694_v37, %v1262_v56  ;;  %v1313_v27 = vsub.f32 1.0, %v1312_v11  ;;  %vm1338_vm4 = vmor %vm1336_vm3, %vm1337_vm2  ;;  %vm1341_vm5 = vcmp.eq.f32.partialorder %v1340_v3, 8.507059e+37 }
 0x2f6   :  { %v1244_v57 = vsel %vm1243_vm7, %v2692_v1, %v1240_v62  ;;  %v1333_v8 = vsub.f32 1.0, %v1332_v29 }
 0x2f7   :  { %v1249_v2 = vsel %vm1246_vm9, %v1248_v45, %v1244_v57  ;;  %v1314_v39 = vmul.f32 %v2696_v59, %v1313_v27  ;;  %v1267_v10 = vsel %vm3586_vm12, %v2694_v37, %v1263_v36  ;;  %v1302_v37 = vrot.slane %v3477_v44, 6 }
 0x2f8   :  { %v1297_v6 = vmul.f32 %v1295_v33, %v1249_v2  ;;  %v1334_v42 = vmul.f32 %v2698_v0, %v1333_v8  ;;  %v1272_v56 = vsel %vm1269_vm15, %v1271_v46, %v1267_v10 }
 0x2f9   :  { %v1315_v14 = vadd.f32 %v2696_v59, %v1314_v39  ;;  %v1300_v33 = vsub.f32 1.0, %v1272_v56  ;;  %v1304_v2 = vmul.f32 %v1302_v37, %v1272_v56 }
 0x2fa   :  { %v1298_v1 = vadd.f32 %v1297_v6, %v3342_v21  ;;  %v1335_v26 = vadd.f32 %v2698_v0, %v1334_v42  ;;  %v1342_v21 = vand.u32 2147483648, %v3580_v35 }
 0x2fb   :  { %v1319_v15 = vsel %vm1318_vm14, %v2696_v59, %v1315_v14 }
 0x2fc   :  { %2699 = vtanh.f32 %v1298_v1  ;;  %v1324_v62 = vsel %vm1321_vm0, %v1323_v12, %v1319_v15  ;;  %v1339_v29 = vsel %vm1338_vm4, %v2698_v0, %v1335_v26  ;;  %v1343_v9 = vor.u32 1.1754944e-38, %v1342_v21  ;;  %v3617_v0 = vld [vmem:[#allocation10 + $0x58] sm:$0xff] }
 0x2fd   :  { %v1366_v45 = vmul.f32 %v1364_v38, %v1324_v62  ;;  %v3945_v62 = vld [vmem:[#allocation16_spill] sm:$0xff] }
 0x2fe   :  { %v1344_v36 = vsel %vm1341_vm5, %v1343_v9, %v1339_v29 }
 0x2ff   :  { %v1367_v59 = vadd.f32 %v1366_v45, %v3354_v17  ;;  %v1369_v8 = vsub.f32 1.0, %v1344_v36  ;;  %v1372_v44 = vmul.f32 %v1344_v36, %v3531_v49  ;;  %v3627_v49 = vld [vmem:[#allocation10 + $0x50] sm:$0xff] }
 0x300   :  { %v3946_v45 = vld [vmem:[#allocation18_spill] sm:$0xff] }
 0x301   :  { %2701 = vtanh.f32 %v1367_v59 }
 0x302   :  { %v2700_v11 = vpop.eup %2699 }
 0x303   :  { %v1301_v57 = vmul.f32 %v2700_v11, %v1300_v33 }
 0x305   :  { %v1305_v27 = vadd.f32 %v1304_v2, %v1301_v57 }
 0x307   :  { %v3599_v58 = vrot.slane %v1305_v27, 6  ;;  %v2702_v6 = vpop.eup %2701 }
 0x308   :  { %v1370_v17 = vmul.f32 %v2702_v6, %v1369_v8 }
 0x309   :  { %2563 = vmatmul.msk.f32.vlgmr.msrb.gmra.mxu0 %vm177_vm1, %v3599_v58  ;;  %2564 = vmatmul.msk.f32.vlgmr.msrb.gmra.mxu1 %vm177_vm1, %v3599_v58 }
 0x30a   :  { %1674 = vmatpush.msrb.mxu0 %v3498_v23  ;;  %1694 = vmatpush.msrb.mxu1 %v3501_v4  ;;  %v3608_v35 = vadd.f32 %v1372_v44, %v1370_v17 }
 0x30c   :  { %1675 = vmatpush.msrb.mxu0 %v3504_v52  ;;  %1695 = vmatpush.msrb.mxu1 %v3507_v25 }
 0x30d   :  { %2565 = vmatmul.msk.f32.vlgmr.msra.gmra.mxu2 %vm177_vm1, %v3608_v35  ;;  %2566 = vmatmul.msk.f32.vlgmr.msra.gmra.mxu3 %vm177_vm1, %v3608_v35 }
 0x30e   :  { %1760 = vmatpush.msra.mxu2 %v3545_v18  ;;  %1838 = vmatpush.msra.mxu3 %v3617_v0 }
 0x30f   :  { %1676 = vmatpush.msrb.mxu0 %v3510_v20  ;;  %1696 = vmatpush.msrb.mxu1 %v3513_v31 }
 0x310   :  { %1761 = vmatpush.msra.mxu2 %v3552_v43  ;;  %1839 = vmatpush.msra.mxu3 %v3627_v49 }
 0x311   :  { %2569 = vmatmul.msk.f32.vlgmr.msra.gmra.mxu0 %vm177_vm1, %v3599_v58  ;;  %2572 = vmatmul.msk.f32.vlgmr.msra.gmra.mxu1 %vm177_vm1, %v3608_v35 }
 0x312   :  { %1677 = vmatpush.msrb.mxu0 %v3517_v41  ;;  %1697 = vmatpush.msrb.mxu1 %v3520_v28 }
 0x313   :  { %1762 = vmatpush.msra.mxu2 %v3562_v24  ;;  %1840 = vmatpush.msra.mxu3 %v3633_v30 }
 0x314   :  { %1883 = vmatpush.msra.mxu0 %v3525_v47  ;;  %1903 = vmatpush.msra.mxu1 %v3549_v53 }
 0x315   :  { %1763 = vmatpush.msra.mxu2 %v3569_v55  ;;  %1841 = vmatpush.msra.mxu3 %v3639_v32 }
 0x316   :  { %1884 = vmatpush.msra.mxu0 %v3528_v40  ;;  %1904 = vmatpush.msra.mxu1 %v3559_v54 }
 0x318   :  { %1885 = vmatpush.msra.mxu0 %v3533_v50  ;;  %1905 = vmatpush.msra.mxu1 %v3566_v61 }
 0x31a   :  { %1886 = vmatpush.msra.mxu0 %v3555_v22  ;;  %1906 = vmatpush.msra.mxu1 %v3573_v63 }
 0x386   :  { %v1404_v39 = vpop.f32.mrf.mxu0  ;;  %v1424_v34 = vpop.f32.mrf.mxu1 }
 0x387   :  { %v1469_v48 = vadd.f32 %v1404_v39, %v3289_v16  ;;  %v1489_v42 = vadd.f32 %v1424_v34, %v3291_v19 }
 0x389   :  { %v2567_v1 = vmul.f32 -1.442695, %v1469_v48  ;;  %v2568_v5 = vmul.f32 -1.442695, %v1489_v42 }
 0x38b   :  { %2703 = vpow2.f32 %v2567_v1 }
 0x38c   :  { %2705 = vpow2.f32 %v2568_v5 }
 0x38e   :  { %v1526_v48 = vpop.f32.mrf.mxu0 }
 0x390   :  { %v1446_v14 = vpop.f32.mrf.mxu2  ;;  %v1466_v46 = vpop.f32.mrf.mxu3 }
 0x391   :  { %v2704_v10 = vpop.eup %2703  ;;  %v1537_v38 = vrot.slane %v1446_v14, 2  ;;  %v1560_v26 = vrot.slane %v1466_v46, 2 }
 0x392   :  { %v2706_v12 = vpop.eup %2705  ;;  %v1473_v15 = vadd.f32 1.0, %v2704_v10  ;;  %v3658_v10 = vld [vmem:[%s3920_s4 + $0x3] ss:$0 sm:$0xff]  ;;  %s2458_s4 = sshll.u32 %s2934_s14, 4  ;;  %s2459_s4 = int_to_ptr.vmem [resolvable:$true] %s2458_s4 }
 0x393   :  { %v1493_v56 = vadd.f32 1.0, %v2706_v12  ;;  %v1539_v21 = vadd.f32 %v1537_v38, %v3945_v62  ;;  %v1562_v3 = vadd.f32 %v1560_v26, %v3946_v45  ;;  %v1527_v14 = vadd.f32 %v3658_v10, %v1526_v48 }
 0x394   :  { %2707 = vrcp.f32 %v1473_v15  ;;  %v1485_v27 = vand.u32 2147483648, %v1473_v15  ;;  %v1483_v44 = vand.u32 2147483647, %v1473_v15  ;;  %vm1479_vm7 = vweird.f32 %v1473_v15 }
 0x395   :  { %2709 = vrcp.f32 %v1493_v56  ;;  %v2570_v37 = vmul.f32 -1.442695, %v1539_v21  ;;  %v2571_v33 = vmul.f32 -1.442695, %v1562_v3  ;;  %v1505_v38 = vand.u32 2147483648, %v1493_v56  ;;  %v3947_v3 = vld [vmem:[#allocation17_spill] sm:$0xff] }
 0x396   :  { %v1486_v1 = vor.u32 1.1754944e-38, %v1485_v27  ;;  %vm1484_vm9 = vcmp.eq.f32.partialorder %v1483_v44, 8.507059e+37  ;;  %vm1499_vm11 = vweird.f32 %v1493_v56 }
 0x397   :  { %2711 = vpow2.f32 %v2570_v37 }
 0x398   :  { %2713 = vpow2.f32 %v2571_v33 }
 0x39a   :  { %v2708_v59 = vpop.eup %2707 }
 0x39b   :  { %v2710_v11 = vpop.eup %2709  ;;  %v1475_v29 = vmul.f32 %v2708_v59, %v1473_v15  ;;  %vm1480_vm6 = vweird.f32 %v2708_v59  ;;  %v1503_v15 = vand.u32 2147483647, %v1493_v56 }
 0x39c   :  { %v1495_v9 = vmul.f32 %v2710_v11, %v1493_v56  ;;  %vm1481_vm8 = vmor %vm1479_vm7, %vm1480_vm6  ;;  %vm1500_vm10 = vweird.f32 %v2710_v11  ;;  %v3666_v56 = vld [vmem:[%s3923_s7 + $0x3] ss:$0 sm:$0xff] }
 0x39d   :  { %v1476_v57 = vsub.f32 1.0, %v1475_v29  ;;  %v2712_v2 = vpop.eup %2711  ;;  %vm1501_vm12 = vmor %vm1499_vm11, %vm1500_vm10  ;;  %vm1504_vm13 = vcmp.eq.f32.partialorder %v1503_v15, 8.507059e+37 }
 0x39e   :  { %v1496_v36 = vsub.f32 1.0, %v1495_v9  ;;  %v2714_v8 = vpop.eup %2713  ;;  %v1543_v6 = vadd.f32 1.0, %v2712_v2  ;;  %v1599_v9 = vpop.f32.mrf.mxu1 }
 0x39f   :  { %v1477_v17 = vmul.f32 %v2708_v59, %v1476_v57  ;;  %v3652_v34 = vadd.f32 1.0, %v2714_v8  ;;  %v1506_v57 = vor.u32 1.1754944e-38, %v1505_v38  ;;  %v1600_v44 = vadd.f32 %v3666_v56, %v1599_v9 }
 0x3a0   :  { %v1497_v39 = vmul.f32 %v2710_v11, %v1496_v36  ;;  %2715 = vrcp.f32 %v1543_v6  ;;  %vm1549_vm15 = vweird.f32 %v1543_v6 }
 0x3a1   :  { %v1478_v42 = vadd.f32 %v2708_v59, %v1477_v17  ;;  %2717 = vrcp.f32 %v3652_v34  ;;  %v1555_v17 = vand.u32 2147483648, %v1543_v6  ;;  %vm1572_vm4 = vweird.f32 %v3652_v34 }
 0x3a2   :  { %v1498_v46 = vadd.f32 %v2710_v11, %v1497_v39 }
 0x3a3   :  { %v1482_v5 = vsel %vm1481_vm8, %v2708_v59, %v1478_v42 }
 0x3a4   :  { %v1487_v12 = vsel %vm1484_vm9, %v1486_v1, %v1482_v5  ;;  %v1502_v59 = vsel %vm1501_vm12, %v2710_v11, %v1498_v46  ;;  %v1553_v11 = vand.u32 2147483647, %v1543_v6  ;;  %v1603_v46 = vrot.slane %v1600_v44, 2 }
 0x3a5   :  { %v1529_v26 = vmul.f32 %v1527_v14, %v1487_v12  ;;  %v1507_v8 = vsel %vm1504_vm13, %v1506_v57, %v1502_v59  ;;  %v1556_v14 = vor.u32 1.1754944e-38, %v1555_v17  ;;  %v1578_v59 = vand.u32 2147483648, %v3652_v34  ;;  %v3948_v57 = vld [vmem:[#allocation19_spill] sm:$0xff] }
 0x3a6   :  { %v2716_v21 = vpop.eup %2715  ;;  %v1532_v42 = vsub.f32 1.0, %v1507_v8  ;;  %vm1554_vm2 = vcmp.eq.f32.partialorder %v1553_v11, 8.507059e+37 }
 0x3a7   :  { %v1530_v37 = vadd.f32 %v1529_v26, %v3947_v3  ;;  %v2718_v33 = vpop.eup %2717  ;;  %v1545_v29 = vmul.f32 %v2716_v21, %v1543_v6  ;;  %vm1550_vm14 = vweird.f32 %v2716_v21  ;;  %v1534_v26 = vmul.f32 %v1507_v8, %v3599_v58 }
 0x3a8   :  { %v1568_v2 = vmul.f32 %v2718_v33, %v3652_v34  ;;  %vm1551_vm0 = vmor %vm1549_vm15, %vm1550_vm14  ;;  %vm1573_vm3 = vweird.f32 %v2718_v33  ;;  %v3677_v6 = vmax.f32 %v1138_v60, %v3599_v58  ;;  %v1579_v13 = vor.u32 1.1754944e-38, %v1578_v59 }
 0x3a9   :  { %2719 = vtanh.f32 %v1530_v37  ;;  %v1546_v36 = vsub.f32 1.0, %v1545_v29  ;;  %vm1574_vm5 = vmor %vm1572_vm4, %vm1573_vm3  ;;  %v1382_v60 = vrot.slane %v3608_v35, 2 }
 0x3aa   :  { %v1569_v27 = vsub.f32 1.0, %v1568_v2 }
 0x3ab   :  { %v1547_v39 = vmul.f32 %v2716_v21, %v1546_v36  ;;  %v3704_v44 = vmax.f32 %v3537_v51, %v1382_v60 }
 0x3ac   :  { %v1570_v48 = vmul.f32 %v2718_v33, %v1569_v27 }
 0x3ad   :  { %v1548_v1 = vadd.f32 %v2716_v21, %v1547_v39 }
 0x3ae   :  { %v1571_v37 = vadd.f32 %v2718_v33, %v1570_v48 }
 0x3af   :  { %v2720_v5 = vpop.eup %2719  ;;  %v1552_v38 = vsel %vm1551_vm0, %v2716_v21, %v1548_v1  ;;  %v1576_v21 = vand.u32 2147483647, %v3652_v34 }
 0x3b0   :  { %v1533_v12 = vmul.f32 %v2720_v5, %v1532_v42  ;;  %v1557_v15 = vsel %vm1554_vm2, %v1556_v14, %v1552_v38  ;;  %v1575_v27 = vsel %vm1574_vm5, %v2718_v33, %v1571_v37 }
 0x3b1   :  { %v1605_v29 = vmul.f32 %v1603_v46, %v1557_v15  ;;  %vm1577_vm6 = vcmp.eq.f32.partialorder %v1576_v21, 8.507059e+37 }
 0x3b2   :  { %v3671_v9 = vadd.f32 %v1534_v26, %v1533_v12  ;;  %v1580_v7 = vsel %vm1577_vm6, %v1579_v13, %v1575_v27 }
 0x3b3   :  { %v1606_v2 = vadd.f32 %v1605_v29, %v3948_v57  ;;  %v1608_v58 = vsub.f32 1.0, %v1580_v7  ;;  %v1610_v8 = vmul.f32 %v1580_v7, %v1382_v60 }
 0x3b4   :  { %2573 = vmatmul.msk.f32.vlgmr.msrb.gmra.mxu2 %vm177_vm1, %v3671_v9  ;;  %2574 = vmatmul.msk.f32.vlgmr.msrb.gmra.mxu3 %vm177_vm1, %v3671_v9  ;;  %v1613_v36 = vmax.f32 %v3677_v6, %v3671_v9 }
 0x3b5   :  { %1926 = vmatpush.msrb.mxu2 %v3498_v23  ;;  %1946 = vmatpush.msrb.mxu3 %v3501_v4  ;;  %2721 = vtanh.f32 %v1606_v2 }
 0x3b7   :  { %1927 = vmatpush.msrb.mxu2 %v3504_v52  ;;  %1947 = vmatpush.msrb.mxu3 %v3507_v25 }
 0x3b9   :  { %1928 = vmatpush.msrb.mxu2 %v3510_v20  ;;  %1948 = vmatpush.msrb.mxu3 %v3513_v31 }
 0x3bb   :  { %1929 = vmatpush.msrb.mxu2 %v3517_v41  ;;  %1949 = vmatpush.msrb.mxu3 %v3520_v28  ;;  %v2722_v34 = vpop.eup %2721 }
 0x3bc   :  { %2579 = vmatmul.msk.f32.vlgmr.msra.gmra.mxu2 %vm177_vm1, %v3671_v9  ;;  %v1609_v33 = vmul.f32 %v2722_v34, %v1608_v58 }
 0x3bd   :  { %2135 = vmatpush.msra.mxu2 %v3525_v47 }
 0x3be   :  { %v3700_v17 = vadd.f32 %v1610_v8, %v1609_v33 }
 0x3bf   :  { %2136 = vmatpush.msra.mxu2 %v3528_v40 }
 0x3c0   :  { %v1659_v35 = vrot.slane %v3700_v17, 6  ;;  %v1614_v39 = vmax.f32 %v3704_v44, %v3700_v17 }
 0x3c1   :  { %2137 = vmatpush.msra.mxu2 %v3533_v50 }
 0x3c2   :  { %2575 = vmatmul.msk.f32.vlgmr.msrb.gmra.mxu0 %vm177_vm1, %v1659_v35  ;;  %2576 = vmatmul.msk.f32.vlgmr.msrb.gmra.mxu1 %vm177_vm1, %v1659_v35 }
 0x3c3   :  { %2582 = vmatmul.msk.f32.vlgmr.msra.gmra.mxu3 %vm177_vm1, %v1659_v35  ;;  %2012 = vmatpush.msrb.mxu0 %v3545_v18 }
 0x3c4   :  { %2090 = vmatpush.msrb.mxu1 %v3617_v0  ;;  %2155 = vmatpush.msra.mxu3 %v3549_v53 }
 0x3c5   :  { %2013 = vmatpush.msrb.mxu0 %v3552_v43  ;;  %2138 = vmatpush.msra.mxu2 %v3555_v22 }
 0x3c6   :  { %2091 = vmatpush.msrb.mxu1 %v3627_v49  ;;  %2156 = vmatpush.msra.mxu3 %v3559_v54 }
 0x3c7   :  { %2014 = vmatpush.msrb.mxu0 %v3562_v24 }
 0x3c8   :  { %2092 = vmatpush.msrb.mxu1 %v3633_v30  ;;  %2157 = vmatpush.msra.mxu3 %v3566_v61 }
 0x3c9   :  { %2015 = vmatpush.msrb.mxu0 %v3569_v55 }
 0x3ca   :  { %2093 = vmatpush.msrb.mxu1 %v3639_v32  ;;  %2158 = vmatpush.msra.mxu3 %v3573_v63 }
 0x437   :  { %v1635_v47 = vpop.f32.mrf.mxu2  ;;  %v1655_v40 = vpop.f32.mrf.mxu3 }
 0x438   :  { %v1703_v50 = vrot.slane %v1635_v47, 6  ;;  %v1726_v51 = vrot.slane %v1655_v40, 6 }
 0x43a   :  { %v1705_v53 = vadd.f32 %v1703_v50, %v3289_v16  ;;  %v1728_v22 = vadd.f32 %v1726_v51, %v3291_v19 }
 0x43c   :  { %v2577_v54 = vmul.f32 -1.442695, %v1705_v53  ;;  %v2578_v11 = vmul.f32 -1.442695, %v1728_v22 }
 0x43e   :  { %2723 = vpow2.f32 %v2577_v54 }
 0x43f   :  { %2725 = vpow2.f32 %v2578_v11  ;;  %v1679_v48 = vpop.f32.mrf.mxu0  ;;  %v1699_v61 = vpop.f32.mrf.mxu1 }
 0x440   :  { %v1781_v42 = vrot.slane %v1679_v48, 4  ;;  %v1804_v1 = vrot.slane %v1699_v61, 4  ;;  %v1765_v21 = vpop.f32.mrf.mxu2 }
 0x441   :  { %v1766_v8 = vadd.f32 %v3658_v10, %v1765_v21 }
 0x442   :  { %v1783_v5 = vadd.f32 %v1781_v42, %v3945_v62  ;;  %v1806_v63 = vadd.f32 %v1804_v1, %v3946_v45 }
 0x443   :  { %v1769_v22 = vrot.slane %v1766_v8, 6 }
 0x444   :  { %v2724_v14 = vpop.eup %2723  ;;  %v2580_v38 = vmul.f32 -1.442695, %v1783_v5  ;;  %v2581_v15 = vmul.f32 -1.442695, %v1806_v63 }
 0x445   :  { %v2726_v46 = vpop.eup %2725  ;;  %v1709_v12 = vadd.f32 1.0, %v2724_v14 }
 0x446   :  { %v1732_v26 = vadd.f32 1.0, %v2726_v46  ;;  %v1843_v1 = vpop.f32.mrf.mxu3 }
 0x447   :  { %2727 = vrcp.f32 %v1709_v12  ;;  %v1721_v33 = vand.u32 2147483648, %v1709_v12  ;;  %v1719_v47 = vand.u32 2147483647, %v1709_v12  ;;  %vm1715_vm8 = vweird.f32 %v1709_v12 }
 0x448   :  { %2729 = vrcp.f32 %v1732_v26  ;;  %v1744_v61 = vand.u32 2147483648, %v1732_v26  ;;  %vm1738_vm12 = vweird.f32 %v1732_v26  ;;  %v1742_v63 = vand.u32 2147483647, %v1732_v26 }
 0x449   :  { %2731 = vpow2.f32 %v2580_v38  ;;  %v1722_v51 = vor.u32 1.1754944e-38, %v1721_v33  ;;  %vm1720_vm10 = vcmp.eq.f32.partialorder %v1719_v47, 8.507059e+37 }
 0x44a   :  { %2733 = vpow2.f32 %v2581_v15  ;;  %v1745_v21 = vor.u32 1.1754944e-38, %v1744_v61  ;;  %vm1743_vm14 = vcmp.eq.f32.partialorder %v1742_v63, 8.507059e+37 }
 0x44d   :  { %v2728_v37 = vpop.eup %2727 }
 0x44e   :  { %v2730_v59 = vpop.eup %2729  ;;  %v1711_v29 = vmul.f32 %v2728_v37, %v1709_v12  ;;  %vm1716_vm7 = vweird.f32 %v2728_v37 }
 0x44f   :  { %v2732_v2 = vpop.eup %2731  ;;  %v1734_v27 = vmul.f32 %v2730_v59, %v1732_v26  ;;  %vm1717_vm9 = vmor %vm1715_vm8, %vm1716_vm7  ;;  %vm1739_vm11 = vweird.f32 %v2730_v59 }
 0x450   :  { %v2734_v13 = vpop.eup %2733  ;;  %v1787_v7 = vadd.f32 1.0, %v2732_v2  ;;  %v1712_v60 = vsub.f32 1.0, %v1711_v29  ;;  %vm3734_vm13 = vmor %vm1738_vm12, %vm1739_vm11  ;;  %v1844_v29 = vadd.f32 %v3666_v56, %v1843_v1 }
 0x451   :  { %v1735_v58 = vsub.f32 1.0, %v1734_v27  ;;  %v3730_v34 = vadd.f32 1.0, %v2734_v13 }
 0x452   :  { %2735 = vrcp.f32 %v1787_v7  ;;  %v1713_v35 = vmul.f32 %v2728_v37, %v1712_v60  ;;  %v1799_v27 = vand.u32 2147483648, %v1787_v7  ;;  %v1797_v13 = vand.u32 2147483647, %v1787_v7 }
 0x453   :  { %v1736_v40 = vmul.f32 %v2730_v59, %v1735_v58  ;;  %2737 = vrcp.f32 %v3730_v34  ;;  %vm1793_vm0 = vweird.f32 %v1787_v7  ;;  %vm1816_vm5 = vweird.f32 %v3730_v34 }
 0x454   :  { %v1714_v50 = vadd.f32 %v2728_v37, %v1713_v35  ;;  %v1800_v8 = vor.u32 1.1754944e-38, %v1799_v27  ;;  %v1776_v35 = vrot.slane %v3671_v9, 6  ;;  %vm1798_vm3 = vcmp.eq.f32.partialorder %v1797_v13, 8.507059e+37 }
 0x455   :  { %v1737_v11 = vadd.f32 %v2730_v59, %v1736_v40  ;;  %v1847_v40 = vrot.slane %v1844_v29, 4 }
 0x456   :  { %v1718_v53 = vsel %vm1717_vm9, %v2728_v37, %v1714_v50 }
 0x457   :  { %v1723_v54 = vsel %vm1720_vm10, %v1722_v51, %v1718_v53  ;;  %v1741_v15 = vsel %vm3734_vm13, %v2730_v59, %v1737_v11 }
 0x458   :  { %v2736_v48 = vpop.eup %2735  ;;  %v1771_v42 = vmul.f32 %v1769_v22, %v1723_v54  ;;  %v1746_v58 = vsel %vm1743_vm14, %v1745_v21, %v1741_v15  ;;  %v1822_v22 = vand.u32 2147483648, %v3730_v34 }
 0x459   :  { %v2738_v5 = vpop.eup %2737  ;;  %v1789_v14 = vmul.f32 %v2736_v48, %v1787_v7  ;;  %vm1794_vm15 = vweird.f32 %v2736_v48  ;;  %v1774_v59 = vsub.f32 1.0, %v1746_v58  ;;  %v1778_v61 = vmul.f32 %v1776_v35, %v1746_v58 }
 0x45a   :  { %v1812_v12 = vmul.f32 %v2738_v5, %v3730_v34  ;;  %v1772_v38 = vadd.f32 %v1771_v42, %v3947_v3  ;;  %vm1795_vm2 = vmor %vm1793_vm0, %vm1794_vm15  ;;  %vm1817_vm4 = vweird.f32 %v2738_v5  ;;  %v1820_v7 = vand.u32 2147483647, %v3730_v34 }
 0x45b   :  { %v1790_v37 = vsub.f32 1.0, %v1789_v14  ;;  %vm1818_vm6 = vmor %vm1816_vm5, %vm1817_vm4  ;;  %v1823_v63 = vor.u32 1.1754944e-38, %v1822_v22 }
 0x45c   :  { %v1813_v2 = vsub.f32 1.0, %v1812_v12  ;;  %2739 = vtanh.f32 %v1772_v38  ;;  %vm1821_vm7 = vcmp.eq.f32.partialorder %v1820_v7, 8.507059e+37  ;;  %v1854_v12 = vrot.slane %v3700_v17, 2 }
 0x45d   :  { %v1791_v26 = vmul.f32 %v2736_v48, %v1790_v37 }
 0x45e   :  { %v1814_v60 = vmul.f32 %v2738_v5, %v1813_v2 }
 0x45f   :  { %v1792_v33 = vadd.f32 %v2736_v48, %v1791_v26 }
 0x460   :  { %v1815_v53 = vadd.f32 %v2738_v5, %v1814_v60 }
 0x461   :  { %v1796_v47 = vsel %vm1795_vm2, %v2736_v48, %v1792_v33 }
 0x462   :  { %v2740_v50 = vpop.eup %2739  ;;  %v1801_v51 = vsel %vm1798_vm3, %v1800_v8, %v1796_v47  ;;  %v1819_v48 = vsel %vm1818_vm6, %v2738_v5, %v1815_v53 }
 0x463   :  { %v1775_v54 = vmul.f32 %v2740_v50, %v1774_v59  ;;  %v1849_v11 = vmul.f32 %v1847_v40, %v1801_v51  ;;  %v1824_v46 = vsel %vm1821_vm7, %v1823_v63, %v1819_v48 }
 0x464   :  { %v1852_v5 = vsub.f32 1.0, %v1824_v46  ;;  %v1856_v37 = vmul.f32 %v1854_v12, %v1824_v46 }
 0x465   :  { %v1850_v42 = vadd.f32 %v1849_v11, %v3948_v57  ;;  %v3748_v1 = vadd.f32 %v1778_v61, %v1775_v54 }
 0x467   :  { %2741 = vtanh.f32 %v1850_v42  ;;  %v1862_v14 = vrot.slane %v3748_v1, 2 }
 0x469   :  { %2583 = vmatmul.msk.f32.vlgmr.msra.gmra.mxu0 %vm177_vm1, %v1862_v14  ;;  %2584 = vmatmul.msk.f32.vlgmr.msra.gmra.mxu1 %vm177_vm1, %v1862_v14  ;;  %v3756_v34 = vmax.f32 %v1613_v36, %v1862_v14 }
 0x46a   :  { %2178 = vmatpush.msra.mxu0 %v3498_v23  ;;  %2198 = vmatpush.msra.mxu1 %v3501_v4 }
 0x46c   :  { %2179 = vmatpush.msra.mxu0 %v3504_v52  ;;  %2199 = vmatpush.msra.mxu1 %v3507_v25 }
 0x46d   :  { %v2742_v38 = vpop.eup %2741 }
 0x46e   :  { %v1853_v15 = vmul.f32 %v2742_v38, %v1852_v5  ;;  %2180 = vmatpush.msra.mxu0 %v3510_v20  ;;  %2200 = vmatpush.msra.mxu1 %v3513_v31 }
 0x470   :  { %v3765_v9 = vadd.f32 %v1856_v37, %v1853_v15  ;;  %2181 = vmatpush.msra.mxu0 %v3517_v41  ;;  %2201 = vmatpush.msra.mxu1 %v3520_v28 }
 0x471   :  { %2589 = vmatmul.msk.f32.vlgmr.msrb.gmra.mxu0 %vm177_vm1, %v1862_v14 }
 0x472   :  { %v1911_v23 = vrot.slane %v3765_v9, 4  ;;  %v1866_v4 = vrot.slane %v3765_v9, 6 }
 0x474   :  { %2585 = vmatmul.msk.f32.vlgmr.msrb.gmra.mxu2 %vm177_vm1, %v1911_v23  ;;  %2586 = vmatmul.msk.f32.vlgmr.msrb.gmra.mxu3 %vm177_vm1, %v1911_v23  ;;  %v3777_v52 = vmax.f32 %v1614_v39, %v1866_v4 }
 0x475   :  { %2592 = vmatmul.msk.f32.vlgmr.msrb.gmra.mxu1 %vm177_vm1, %v1911_v23  ;;  %2264 = vmatpush.msrb.mxu2 %v3545_v18 }
 0x476   :  { %2336 = vmatpush.msrb.mxu3 %v3617_v0 }
 0x477   :  { %2265 = vmatpush.msrb.mxu2 %v3552_v43 }
 0x478   :  { %2337 = vmatpush.msrb.mxu3 %v3627_v49 }
 0x479   :  { %2266 = vmatpush.msrb.mxu2 %v3562_v24 }
 0x47a   :  { %2338 = vmatpush.msrb.mxu3 %v3633_v30 }
 0x47b   :  { %2267 = vmatpush.msrb.mxu2 %v3569_v55 }
 0x47c   :  { %2339 = vmatpush.msrb.mxu3 %v3639_v32 }
 0x4e6   :  { %v1888_v25 = vpop.f32.mrf.mxu0  ;;  %v1908_v20 = vpop.f32.mrf.mxu1 }
 0x4e7   :  { %v1955_v31 = vrot.slane %v1888_v25, 4  ;;  %v1978_v41 = vrot.slane %v1908_v20, 4 }
 0x4e9   :  { %v1957_v28 = vadd.f32 %v1955_v31, %v3289_v16  ;;  %v1980_v18 = vadd.f32 %v1978_v41, %v3291_v19  ;;  %v2028_v31 = vrot.slane %v3748_v1, 6 }
 0x4eb   :  { %v2587_v0 = vmul.f32 -1.442695, %v1957_v28  ;;  %v2588_v43 = vmul.f32 -1.442695, %v1980_v18 }
 0x4ed   :  { %2743 = vpow2.f32 %v2587_v0 }
 0x4ee   :  { %2745 = vpow2.f32 %v2588_v43  ;;  %v2017_v60 = vpop.f32.mrf.mxu0 }
 0x4ef   :  { %v2018_v47 = vadd.f32 %v3658_v10, %v2017_v60 }
 0x4f1   :  { %v2021_v11 = vrot.slane %v2018_v47, 4  ;;  %v2106_v47 = vrot.slane %v3765_v9, 2 }
 0x4f2   :  { %v2095_v4 = vpop.f32.mrf.mxu1 }
 0x4f3   :  { %v2744_v49 = vpop.eup %2743  ;;  %v2096_v0 = vadd.f32 %v3666_v56, %v2095_v4 }
 0x4f4   :  { %v2746_v24 = vpop.eup %2745  ;;  %v1961_v6 = vadd.f32 1.0, %v2744_v49 }
 0x4f5   :  { %v1984_v30 = vadd.f32 1.0, %v2746_v24  ;;  %v2099_v1 = vrot.slane %v2096_v0, 6  ;;  %v2366_v0 = vld [vmem:[%s3924_s8 + $0x18] sm:$0xff] }
 0x4f6   :  { %2747 = vrcp.f32 %v1961_v6  ;;  %v1973_v8 = vand.u32 2147483648, %v1961_v6  ;;  %v1971_v59 = vand.u32 2147483647, %v1961_v6  ;;  %vm1967_vm9 = vweird.f32 %v1961_v6  ;;  %2409 = vmatpush.msrb.mxu1 %v2366_v0 }
 0x4f7   :  { %2749 = vrcp.f32 %v1984_v30  ;;  %v1931_v55 = vpop.f32.mrf.mxu2  ;;  %v1951_v32 = vpop.f32.mrf.mxu3  ;;  %v1996_v63 = vand.u32 2147483648, %v1984_v30  ;;  %vm1990_vm13 = vweird.f32 %v1984_v30  ;;  %v1994_v46 = vand.u32 2147483647, %v1984_v30 }
 0x4f8   :  { %v2033_v36 = vrot.slane %v1931_v55, 6  ;;  %v2056_v17 = vrot.slane %v1951_v32, 6  ;;  %v1974_v53 = vor.u32 1.1754944e-38, %v1973_v8  ;;  %vm1972_vm11 = vcmp.eq.f32.partialorder %v1971_v59, 8.507059e+37 }
 0x4f9   :  { %v1997_v38 = vor.u32 1.1754944e-38, %v1996_v63  ;;  %vm1995_vm15 = vcmp.eq.f32.partialorder %v1994_v46, 8.507059e+37 }
 0x4fa   :  { %v2035_v44 = vadd.f32 %v2033_v36, %v3945_v62  ;;  %v2058_v39 = vadd.f32 %v2056_v17, %v3946_v45 }
 0x4fc   :  { %v2748_v29 = vpop.eup %2747  ;;  %v2590_v21 = vmul.f32 -1.442695, %v2035_v44  ;;  %v2591_v2 = vmul.f32 -1.442695, %v2058_v39 }
 0x4fd   :  { %v2750_v27 = vpop.eup %2749  ;;  %v1963_v26 = vmul.f32 %v2748_v29, %v1961_v6  ;;  %vm1968_vm8 = vweird.f32 %v2748_v29 }
 0x4fe   :  { %v1986_v13 = vmul.f32 %v2750_v27, %v1984_v30  ;;  %2751 = vpow2.f32 %v2590_v21  ;;  %vm1969_vm10 = vmor %vm1967_vm9, %vm1968_vm8  ;;  %vm1991_vm12 = vweird.f32 %v2750_v27 }
 0x4ff   :  { %v1964_v58 = vsub.f32 1.0, %v1963_v26  ;;  %2753 = vpow2.f32 %v2591_v2  ;;  %vm1992_vm14 = vmor %vm1990_vm13, %vm1991_vm12 }
 0x500   :  { %v1987_v33 = vsub.f32 1.0, %v1986_v13 }
 0x501   :  { %v1965_v35 = vmul.f32 %v2748_v29, %v1964_v58 }
 0x502   :  { %v1988_v40 = vmul.f32 %v2750_v27, %v1987_v33 }
 0x503   :  { %v1966_v50 = vadd.f32 %v2748_v29, %v1965_v35 }
 0x504   :  { %v2752_v51 = vpop.eup %2751  ;;  %v1989_v42 = vadd.f32 %v2750_v27, %v1988_v40 }
 0x505   :  { %v2754_v22 = vpop.eup %2753  ;;  %v1970_v54 = vsel %vm1969_vm10, %v2748_v29, %v1966_v50  ;;  %v2039_v61 = vadd.f32 1.0, %v2752_v51 }
 0x506   :  { %v1975_v7 = vsel %vm1972_vm11, %v1974_v53, %v1970_v54  ;;  %v2062_v48 = vadd.f32 1.0, %v2754_v22  ;;  %v1993_v12 = vsel %vm1992_vm14, %v2750_v27, %v1989_v42 }
 0x507   :  { %v2023_v14 = vmul.f32 %v2021_v11, %v1975_v7  ;;  %2755 = vrcp.f32 %v2039_v61  ;;  %v1998_v37 = vsel %vm1995_vm15, %v1997_v38, %v1993_v12  ;;  %v2049_v43 = vand.u32 2147483647, %v2039_v61 }
 0x508   :  { %2757 = vrcp.f32 %v2062_v48  ;;  %v2026_v41 = vsub.f32 1.0, %v1998_v37  ;;  %v2051_v49 = vand.u32 2147483648, %v2039_v61  ;;  %v2030_v55 = vmul.f32 %v2028_v31, %v1998_v37  ;;  %v2809_v37 = vld [vmem:[#allocation2] sm:$0xff] }
 0x509   :  { %v2024_v5 = vadd.f32 %v2023_v14, %v3947_v3  ;;  %vm2045_vm2 = vweird.f32 %v2039_v61  ;;  %vm2050_vm4 = vcmp.eq.f32.partialorder %v2049_v43, 8.507059e+37  ;;  %v2074_v26 = vand.u32 2147483648, %v2062_v48 }
 0x50a   :  { %v2052_v44 = vor.u32 1.1754944e-38, %v2051_v49  ;;  %vm2068_vm6 = vweird.f32 %v2062_v48  ;;  %v2072_v60 = vand.u32 2147483647, %v2062_v48  ;;  %v880_v4 = vrot.slane %v2809_v37, 2 }
 0x50b   :  { %2759 = vtanh.f32 %v2024_v5  ;;  %v2075_v8 = vor.u32 1.1754944e-38, %v2074_v26 }
 0x50c   :  { %vm2073_vm8 = vcmp.eq.f32.partialorder %v2072_v60, 8.507059e+37 }
 0x50d   :  { %v2756_v15 = vpop.eup %2755 }
 0x50e   :  { %v2758_v23 = vpop.eup %2757  ;;  %v2041_v25 = vmul.f32 %v2756_v15, %v2039_v61  ;;  %vm2046_vm0 = vweird.f32 %v2756_v15 }
 0x50f   :  { %v2064_v20 = vmul.f32 %v2758_v23, %v2062_v48  ;;  %vm2047_vm3 = vmor %vm2045_vm2, %vm2046_vm0  ;;  %vm2069_vm5 = vweird.f32 %v2758_v23 }
 0x510   :  { %v2042_v28 = vsub.f32 1.0, %v2041_v25  ;;  %vm2070_vm7 = vmor %vm2068_vm6, %vm2069_vm5 }
 0x511   :  { %v2760_v18 = vpop.eup %2759  ;;  %v2065_v24 = vsub.f32 1.0, %v2064_v20 }
 0x512   :  { %v2027_v6 = vmul.f32 %v2760_v18, %v2026_v41  ;;  %v2043_v30 = vmul.f32 %v2756_v15, %v2042_v28  ;;  %v1132_v28 = vrot.slane %v2809_v37, 4  ;;  %v2370_v18 = vld [vmem:[%s3925_s9 + $0x18] sm:$0xff] }
 0x513   :  { %v2066_v32 = vmul.f32 %v2758_v23, %v2065_v24  ;;  %2386 = vmatpush.msrb.mxu0 %v2370_v18 }
 0x514   :  { %v2044_v36 = vadd.f32 %v2756_v15, %v2043_v30  ;;  %v3796_v17 = vadd.f32 %v2030_v55, %v2027_v6  ;;  %v2810_v6 = vld [vmem:[#allocation2 + $0x8] sm:$0xff] }
 0x515   :  { %v2067_v2 = vadd.f32 %v2758_v23, %v2066_v32  ;;  %v1858_v30 = vrot.slane %v2810_v6, 2 }
 0x516   :  { %v2048_v39 = vsel %vm2047_vm3, %v2756_v15, %v2044_v36  ;;  %v3799_v29 = vrot.slane %v3796_v17, 4  ;;  %v2369_v36 = vld [vmem:[%s3925_s9 + $0x10] sm:$0xff] }
 0x517   :  { %v2053_v21 = vsel %vm2050_vm4, %v2052_v44, %v2048_v39  ;;  %v2071_v33 = vsel %vm2070_vm7, %v2758_v23, %v2067_v2  ;;  %v634_v23 = vmax.f32 %v2809_v37, 0.0  ;;  %v2365_v44 = vld [vmem:[%s3924_s8 + $0x10] sm:$0xff]  ;;  %2387 = vmatpush.msrb.mxu0 %v2369_v36 }
 0x518   :  { %v2101_v27 = vmul.f32 %v2099_v1, %v2053_v21  ;;  %2593 = vmatmul.msk.f32.vlgmr.msra.gmra.mxu2 %vm177_vm1, %v3799_v29  ;;  %2594 = vmatmul.msk.f32.vlgmr.msra.gmra.mxu3 %vm177_vm1, %v3799_v29  ;;  %v2116_v13 = vmax.f32 %v3756_v34, %v3799_v29  ;;  %v2076_v35 = vsel %vm2073_vm8, %v2075_v8, %v2071_v33  ;;  %v2368_v33 = vld [vmem:[%s3925_s9 + $0x8] sm:$0xff]  ;;  %v2622_v34 = vld [vmem:[%s3927_s11] ss:$0 sm:$0xff] }
 0x519   :  { %v2104_v59 = vsub.f32 1.0, %v2076_v35  ;;  %v2108_v51 = vmul.f32 %v2106_v47, %v2076_v35  ;;  %v882_v41 = vmax.f32 %v634_v23, %v880_v4  ;;  %2410 = vmatpush.msrb.mxu1 %v2365_v44  ;;  %v2364_v8 = vld [vmem:[%s3924_s8 + $0x8] sm:$0xff]  ;;  %2388 = vmatpush.msrb.mxu0 %v2368_v33  ;;  %v2420_v47 = vld [vmem:[%s3926_s10 + $0x18] sm:$0xff] }
 0x51a   :  { %v2102_v58 = vadd.f32 %v2101_v27, %v3948_v57  ;;  %2437 = vmatpush.msra.mxu2 %v2420_v47 }
 0x51b   :  { %2411 = vmatpush.msrb.mxu1 %v2364_v8 }
 0x51c   :  { %2761 = vtanh.f32 %v2102_v58 }
 0x520   :  { %2599 = vmatmul.msk.f32.vlgmr.msrb.gmra.mxu2 %vm177_vm1, %v3799_v29 }
 0x522   :  { %v2762_v40 = vpop.eup %2761 }
 0x523   :  { %v2105_v50 = vmul.f32 %v2762_v40, %v2104_v59  ;;  %v2363_v40 = vld [vmem:[%s3924_s8] sm:$0xff] }
 0x524   :  { %2412 = vmatpush.msrb.mxu1 %v2363_v40 }
 0x525   :  { %v2109_v53 = vadd.f32 %v2108_v51, %v2105_v50  ;;  %v2110_v51 = vrot.slane %v2810_v6, 4 }
 0x527   :  { %v2118_v22 = vrot.slane %v2109_v53, 4  ;;  %v3811_v54 = vrot.slane %v2109_v53, 2 }
 0x529   :  { %2595 = vmatmul.msk.f32.vlgmr.msra.gmra.mxu0 %vm177_vm1, %v3811_v54  ;;  %2596 = vmatmul.msk.f32.vlgmr.msra.gmra.mxu1 %vm177_vm1, %v3811_v54  ;;  %v3818_v11 = vmax.f32 %v3777_v52, %v2118_v22 }
 0x52a   :  { %2602 = vmatmul.msk.f32.vlgmr.msrb.gmra.mxu3 %vm177_vm1, %v3811_v54 }
 0x59b   :  { %v2140_v9 = vpop.f32.mrf.mxu2  ;;  %v2160_v61 = vpop.f32.mrf.mxu3 }
 0x59c   :  { %v2207_v7 = vrot.slane %v2140_v9, 2  ;;  %v2230_v42 = vrot.slane %v2160_v61, 2  ;;  %v2419_v9 = vld [vmem:[%s3926_s10 + $0x10] sm:$0xff] }
 0x59d   :  { %2438 = vmatpush.msra.mxu2 %v2419_v9 }
 0x59e   :  { %v2209_v48 = vadd.f32 %v2207_v7, %v3289_v16  ;;  %v2232_v63 = vadd.f32 %v2230_v42, %v3291_v19  ;;  %v2352_v7 = vrot.slane %v2810_v6, 6  ;;  %v2418_v42 = vld [vmem:[%s3926_s10 + $0x8] sm:$0xff] }
 0x59f   :  { %2439 = vmatpush.msra.mxu2 %v2418_v42 }
 0x5a0   :  { %v2597_v14 = vmul.f32 -1.442695, %v2209_v48  ;;  %v2598_v46 = vmul.f32 -1.442695, %v2232_v63 }
 0x5a2   :  { %2763 = vpow2.f32 %v2597_v14 }
 0x5a3   :  { %2765 = vpow2.f32 %v2598_v46  ;;  %v2269_v49 = vpop.f32.mrf.mxu2  ;;  %v2417_v46 = vld [vmem:[%s3926_s10] sm:$0xff] }
 0x5a4   :  { %v2270_v58 = vadd.f32 %v3658_v10, %v2269_v49  ;;  %v2367_v10 = vld [vmem:[%s3925_s9] sm:$0xff]  ;;  %2440 = vmatpush.msra.mxu2 %v2417_v46 }
 0x5a5   :  { %2389 = vmatpush.msrb.mxu0 %v2367_v10 }
 0x5a6   :  { %v2183_v5 = vpop.f32.mrf.mxu0  ;;  %v2203_v12 = vpop.f32.mrf.mxu1 }
 0x5a7   :  { %v2284_v52 = vadd.f32 %v2183_v5, %v3945_v62  ;;  %v2304_v38 = vadd.f32 %v2203_v12, %v3946_v45  ;;  %v1134_v62 = vmax.f32 %v882_v41, %v1132_v28  ;;  %v1374_v45 = vrot.slane %v2809_v37, 6 }
 0x5a8   :  { %v2764_v15 = vpop.eup %2763  ;;  %v2273_v12 = vrot.slane %v2270_v58, 2 }
 0x5a9   :  { %v2766_v25 = vpop.eup %2765  ;;  %v3826_v20 = vadd.f32 1.0, %v2764_v15  ;;  %v2600_v16 = vmul.f32 -1.442695, %v2284_v52  ;;  %v2601_v19 = vmul.f32 -1.442695, %v2304_v38  ;;  %v1376_v24 = vmax.f32 %v1134_v62, %v1374_v45 }
 0x5aa   :  { %v3828_v31 = vadd.f32 1.0, %v2766_v25 }
 0x5ab   :  { %2767 = vrcp.f32 %v3826_v20  ;;  %v1612_v21 = vmax.f32 %v1376_v24, %v2810_v6  ;;  %v2225_v60 = vand.u32 2147483648, %v3826_v20  ;;  %v2223_v22 = vand.u32 2147483647, %v3826_v20 }
 0x5ac   :  { %2769 = vrcp.f32 %v3828_v31  ;;  %vm2219_vm10 = vweird.f32 %v3826_v20  ;;  %v2248_v23 = vand.u32 2147483648, %v3828_v31  ;;  %vm2242_vm14 = vweird.f32 %v3828_v31 }
 0x5ad   :  { %2771 = vpow2.f32 %v2600_v16  ;;  %v1860_v50 = vmax.f32 %v1612_v21, %v1858_v30  ;;  %v2226_v63 = vor.u32 1.1754944e-38, %v2225_v60  ;;  %vm2224_vm12 = vcmp.eq.f32.partialorder %v2223_v22, 8.507059e+37  ;;  %v2341_v6 = vpop.f32.mrf.mxu3 }
 0x5ae   :  { %2773 = vpow2.f32 %v2601_v19  ;;  %v2249_v45 = vor.u32 1.1754944e-38, %v2248_v23  ;;  %v2342_v44 = vadd.f32 %v3666_v56, %v2341_v6 }
 0x5af   :  { %v2112_v14 = vmax.f32 %v1860_v50, %v2110_v51 }
 0x5b1   :  { %v2768_v43 = vpop.eup %2767  ;;  %v2354_v15 = vmax.f32 %v2112_v14, %v2352_v7 }
 0x5b2   :  { %v3838_v55 = vpop.eup %2769  ;;  %v2215_v32 = vmul.f32 %v2768_v43, %v3826_v20  ;;  %vm2220_vm9 = vweird.f32 %v2768_v43  ;;  %v2246_v20 = vand.u32 2147483647, %v3828_v31 }
 0x5b3   :  { %v2772_v1 = vpop.eup %2771  ;;  %v2238_v39 = vmul.f32 %v3838_v55, %v3828_v31  ;;  %vm2221_vm11 = vmor %vm2219_vm10, %vm2220_vm9  ;;  %vm2243_vm13 = vweird.f32 %v3838_v55  ;;  %2604 = vmatmul.msk.f32.vlgmr.msrb.gmra.mxu1 %vm177_vm1, %v2354_v15  ;;  %vm2451_vm10 = vcmask 25600  }
 0x5b4   :  { %v2774_v2 = vpop.eup %2773  ;;  %v3849_v27 = vadd.f32 1.0, %v2772_v1  ;;  %v2216_v26 = vsub.f32 1.0, %v2215_v32  ;;  %vm2244_vm15 = vmor %vm2242_vm14, %vm2243_vm13  ;;  %vm2247_vm0 = vcmp.eq.f32.partialorder %v2246_v20, 8.507059e+37 }
 0x5b5   :  { %v2239_v35 = vsub.f32 1.0, %v2238_v39  ;;  %v3859_v59 = vadd.f32 1.0, %v2774_v2 }
 0x5b6   :  { %2775 = vrcp.f32 %v3849_v27  ;;  %v2217_v53 = vmul.f32 %v2768_v43, %v2216_v26  ;;  %v2300_v0 = vand.u32 2147483648, %v3849_v27  ;;  %v2298_v31 = vand.u32 2147483647, %v3849_v27 }
 0x5b7   :  { %v2240_v61 = vmul.f32 %v3838_v55, %v2239_v35  ;;  %2777 = vrcp.f32 %v3859_v59  ;;  %vm2294_vm3 = vweird.f32 %v3849_v27  ;;  %v2320_v2 = vand.u32 2147483648, %v3859_v59 }
 0x5b8   :  { %v2218_v48 = vadd.f32 %v2768_v43, %v2217_v53  ;;  %vm2299_vm5 = vcmp.eq.f32.partialorder %v2298_v31, 8.507059e+37  ;;  %vm2314_vm7 = vweird.f32 %v3859_v59 }
 0x5b9   :  { %v2241_v38 = vadd.f32 %v3838_v55, %v2240_v61  ;;  %v2321_v35 = vor.u32 1.1754944e-38, %v2320_v2 }
 0x5ba   :  { %v2222_v5 = vsel %vm2221_vm11, %v2768_v43, %v2218_v48 }
 0x5bb   :  { %v2227_v52 = vsel %vm2224_vm12, %v2226_v63, %v2222_v5  ;;  %v2245_v28 = vsel %vm2244_vm15, %v3838_v55, %v2241_v38  ;;  %v2301_v55 = vor.u32 1.1754944e-38, %v2300_v0 }
 0x5bc   :  { %v2776_v37 = vpop.eup %2775  ;;  %v2275_v4 = vmul.f32 %v2273_v12, %v2227_v52  ;;  %v2250_v24 = vsel %vm2247_vm0, %v2249_v45, %v2245_v28 }
 0x5bd   :  { %v2778_v25 = vpop.eup %2777  ;;  %v2290_v16 = vmul.f32 %v2776_v37, %v3849_v27  ;;  %vm2295_vm2 = vweird.f32 %v2776_v37  ;;  %v2278_v32 = vsub.f32 1.0, %v2250_v24 }
 0x5be   :  { %v2310_v19 = vmul.f32 %v2778_v25, %v3859_v59  ;;  %v2276_v41 = vadd.f32 %v2275_v4, %v3947_v3  ;;  %v2280_v3 = vrot.slane %v3796_v17, 6  ;;  %vm2296_vm4 = vmor %vm2294_vm3, %vm2295_vm2  ;;  %vm2315_vm6 = vweird.f32 %v2778_v25 }
 0x5bf   :  { %v2291_v62 = vsub.f32 1.0, %v2290_v16  ;;  %v2318_v17 = vand.u32 2147483647, %v3859_v59  ;;  %vm2316_vm8 = vmor %vm2314_vm7, %vm2315_vm6 }
 0x5c0   :  { %v2311_v18 = vsub.f32 1.0, %v2310_v19  ;;  %2779 = vtanh.f32 %v2276_v41  ;;  %v2282_v58 = vmul.f32 %v2280_v3, %v2250_v24 }
 0x5c1   :  { %v2292_v43 = vmul.f32 %v2776_v37, %v2291_v62  ;;  %vm2319_vm9 = vcmp.eq.f32.partialorder %v2318_v17, 8.507059e+37 }
 0x5c2   :  { %v2312_v49 = vmul.f32 %v2778_v25, %v2311_v18 }
 0x5c3   :  { %v2293_v30 = vadd.f32 %v2776_v37, %v2292_v43 }
 0x5c4   :  { %v2313_v39 = vadd.f32 %v2778_v25, %v2312_v49 }
 0x5c5   :  { %v2297_v36 = vsel %vm2296_vm4, %v2776_v37, %v2293_v30 }
 0x5c6   :  { %v2780_v1 = vpop.eup %2779  ;;  %v2302_v21 = vsel %vm2299_vm5, %v2301_v55, %v2297_v36  ;;  %v2317_v8 = vsel %vm2316_vm8, %v2778_v25, %v2313_v39 }
 0x5c7   :  { %v2279_v26 = vmul.f32 %v2780_v1, %v2278_v32  ;;  %v2344_v60 = vmul.f32 %v2342_v44, %v2302_v21  ;;  %v2322_v47 = vsel %vm2319_vm9, %v2321_v35, %v2317_v8 }
 0x5c8   :  { %v2347_v40 = vsub.f32 1.0, %v2322_v47  ;;  %v2350_v59 = vmul.f32 %v2322_v47, %v3811_v54 }
 0x5c9   :  { %v2345_v27 = vadd.f32 %v2344_v60, %v3948_v57  ;;  %v2283_v33 = vadd.f32 %v2282_v58, %v2279_v26 }
 0x5cb   :  { %2781 = vtanh.f32 %v2345_v27  ;;  %v2356_v56 = vrot.slane %v2283_v33, 6 }
 0x5cd   :  { %v2358_v10 = vmax.f32 %v2116_v13, %v2356_v56 }
 0x5cf   :  { %2603 = vmatmul.msk.f32.vlgmr.msrb.gmra.mxu0 %vm177_vm1, %v2358_v10 }
 0x5d1   :  { %v2782_v50 = vpop.eup %2781 }
 0x5d2   :  { %v2348_v51 = vmul.f32 %v2782_v50, %v2347_v40 }
 0x5d4   :  { %v2351_v53 = vadd.f32 %v2350_v59, %v2348_v51 }
 0x5d6   :  { %v2360_v57 = vrot.slane %v2351_v53, 2 }
 0x5d8   :  { %v2362_v22 = vmax.f32 %v3818_v11, %v2360_v57 }
 0x5da   :  { %v2422_v9 = vrot.slane %v2362_v22, 6 }
 0x5dc   :  { %2605 = vmatmul.msk.f32.vlgmr.msra.gmra.mxu2 %vm177_vm1, %v2422_v9 }
 0x630   :  { %v2414_v7 = vpop.f32.mrf.mxu1 }
 0x64c   :  { %v2391_v61 = vpop.f32.mrf.mxu0 }
 0x64d   :  { %v2415_v42 = vadd.f32 %v2414_v7, %v2391_v61 }
 0x65f   :  { %v2442_v29 = vpop.f32.mrf.mxu2 }
 0x660   :  { %v2445_v13 = vadd.f32 %v2442_v29, %v2415_v42 }
 0x662   :  { %v2450_v54 = vadd.f32 %v2622_v34, %v2445_v13 }
 0x664   :  { %2452 = vst.msk [vmem:[#allocation11] sm:$0x3] %vm2451_vm10, %v2450_v54 }
 0x665   :  { %2463 = dma.vmem_to_hbm [thread:$0]  %s2459_s4, 32, %s2461_s23, [#allocation5]  }
 0x666   :  { %2925 = dma.done.wait [#allocation5], 32  }
 0x667   :  { %2926 = vsyncadd [#allocation5], 4294967264 }
 0x668   :  { %2468 = vsyncpa [#allocation4], 1 }
 0x669   :  { %2469 = vsyncpa [#allocation9], 1 }
 0x66a   :  { %2470 = vsyncpa [#allocation5], 1 }
 0x66b   :  { %2471 = vsyncpa [#allocation6], 1 }

</bundles_post_ra>
